<compile_context>
chip_gen: v7x
topology: tpu7x:2x2x1
jax: 0.10.0
libtpu: 0.0.40
codegen_flags: <defaults>
</compile_context>

<pallas_src>
import functools
import math

import jax
import jax.numpy as jnp
from jax.experimental import pallas as pl
from jax.experimental.pallas import tpu as pltpu


def _ru(x, m):
    return (x + m - 1) // m * m


# ---------------------------------------------------------------------------
# Static per-layer configuration (pure Python ints -> compile-time constants).
# ---------------------------------------------------------------------------
def _build_configs(in_channels, network_capacity, image_size, nlayers):
    chans = [in_channels] + [network_capacity * 2 ** i for i in range(nlayers)]
    cfgs = []
    s = image_size
    for i in range(nlayers):
        k = min(3, s)
        # TODO(synk): imsize<=2 gives an even kernel (k=2) with asymmetric
        # 'same' padding; only the odd-k (k=3) path is implemented here.
        assert k == 3 and s % 2 == 0, "only k=3 convs over even spatial sizes"
        cin, cout = chans[i], chans[i + 1]
        ho = s // 2                                   # pooled output size
        if i == 0:
            # layer 0 is driven by a host-built im2col LHS: no junk columns.
            cfgs.append(dict(S=s, k=k, cin=cin, cout=cout, Ho=ho,
                             m_rows=ho * ho, out_w=ho))
        else:
            hq = (s + k - 1) // 2                     # padded size / 2 (phase dim)
            m_rows = _ru(ho * hq, 8)                  # matmul M (junk col + pad rows)
            mq_pad = _ru((k // 2) * (hq + 1) + m_rows, 8)
            cfgs.append(dict(S=s, k=k, cin=cin, cout=cout, Ho=ho, Hq=hq,
                             m_rows=m_rows, mq_pad=mq_pad, out_w=hq))
        s = ho
    return cfgs, chans


# ---------------------------------------------------------------------------
# Host-side (one-time, on the raw network input only): per-pool-quadrant
# im2col for layer 0, K = k*k*Cin.
# ---------------------------------------------------------------------------
def _build_lhs0(x_nhwc, k):
    bsz, s, _, c = x_nhwc.shape
    pad = (k - 1) // 2
    xp = jnp.pad(x_nhwc, ((0, 0), (pad, pad), (pad, pad), (0, 0)))
    ho = s // 2
    quads = []
    for dh in range(2):
        for dw in range(2):
            taps = []
            for kh in range(k):
                for kw in range(k):
                    taps.append(xp[:, dh + kh:dh + kh + s:2,
                                   dw + kw:dw + kw + s:2, :])
            quad = jnp.concatenate(taps, axis=-1)       # (B, Ho, Ho, k*k*C)
            quads.append(quad.reshape(bsz, 1, ho * ho, k * k * c))
    return jnp.concatenate(quads, axis=1)               # (B, 4, Ho*Ho, k*k*C)


# ---------------------------------------------------------------------------
# The single fused kernel: all conv layers + flatten + latent head.
# ---------------------------------------------------------------------------
def _fused_encoder_kernel(*refs, cfgs, latent_dim):
    nl = len(cfgs)

    # ---- unpack refs: inputs, output, scratch --------------------------------
    lhs0_ref, w0_ref, b0_ref = refs[0], refs[1], refs[2]
    pos = 3
    inner_wb = []
    for _ in range(nl - 1):
        inner_wb.append((refs[pos], refs[pos + 1]))
        pos += 2
    wlat_ref, blat_ref, out_ref = refs[pos], refs[pos + 1], refs[pos + 2]
    scr = refs[pos + 3:]
    pool_bufs = [scr[0]]                      # per-layer pooled activations
    ph_bufs = [None]                          # per-layer polyphase planes (i>=1)
    q = 1
    for _ in range(nl - 1):
        ph_bufs.append(scr[q])
        pool_bufs.append(scr[q + 1])
        q += 2

    # ---- layer 0: 4 quadrant matmuls over the host-built im2col LHS ----------
    # (same RHS for all 4 quadrants -> weights staged on the MXU once)
    mx = None
    for quad in range(4):
        y = jnp.dot(lhs0_ref[0, quad], w0_ref[...],
                    preferred_element_type=jnp.float32)
        mx = y if mx is None else jnp.maximum(mx, y)
    # bias + ReLU hoisted out of the quadrant max (both commute with max)
    pool_bufs[0][...] = jnp.maximum(mx + b0_ref[...], 0.0)

    # ---- inner layers: in-VMEM polyphase re-layout + conv + bias/ReLU + pool --
    for li in range(1, nl):
        cfg = cfgs[li]
        prev = cfgs[li - 1]
        k, hq, m_rows = cfg["k"], cfg["Hq"], cfg["m_rows"]
        ph = ph_bufs[li]
        w_ref, b_ref = inner_wb[li - 1]

        # (a) zero the polyphase planes; the zeros double as 'same' padding.
        ph[...] = jnp.zeros(ph.shape, ph.dtype)

        # (b) scatter the previous pooled output into the 4 polyphase planes of
        #     its zero-padded (pad=1) image: padded pos = out pos + 1.
        half = cfg["S"] // 2
        src_w = prev["out_w"]
        src_buf = pool_bufs[li - 1]
        for pa in range(2):                   # padded-row parity
            for pb in range(2):               # padded-col parity
                for t in range(half):
                    oh = (1 - pa) + 2 * t                  # source pooled row
                    qh = (1 - pa) + t                      # dest phase row
                    row = src_buf[pl.ds(oh * src_w + (1 - pb), half, 2), :]
                    ph[2 * pa + pb, pl.ds(qh * hq + (1 - pb), half), :] = row

        # (c) conv taps OUTER (RHS staged once), pool quadrants INNER
        #     (4 f32 accumulators); every LHS is a contiguous pl.ds slab.
        accs = [None, None, None, None]
        for kh in range(k):
            for kw in range(k):
                w_tap = w_ref[kh * k + kw]                 # (Cin, Cout)
                for dh in range(2):
                    for dw in range(2):
                        pa = (dh + kh) % 2
                        pb = (dw + kw) % 2
                        off = ((dh + kh) // 2) * hq + (dw + kw) // 2
                        lhs = ph[2 * pa + pb, pl.ds(off, m_rows), :]
                        y = jnp.dot(lhs, w_tap,
                                    preferred_element_type=jnp.float32)
                        qi = 2 * dh + dw
                        accs[qi] = y if accs[qi] is None else accs[qi] + y
        pooled = jnp.maximum(jnp.maximum(accs[0], accs[1]),
                             jnp.maximum(accs[2], accs[3]))
        pool_bufs[li][...] = jnp.maximum(pooled + b_ref[...], 0.0)

    # ---- latent head: flatten folded into per-position matmuls ----------------
    last = cfgs[-1]
    acc = blat_ref[...]                                   # (1, Npad) f32
    for oh in range(last["Ho"]):
        for ow in range(last["Ho"]):
            j = oh * last["Ho"] + ow
            row = pool_bufs[nl - 1][pl.ds(oh * last["out_w"] + ow, 1), :]
            acc = acc + jnp.dot(row, wlat_ref[j],
                                preferred_element_type=jnp.float32)

    # mu in cols [0, L), softplus(logvar)+eps in cols [L, 2L); single
    # lane-dense 128-wide store.
    col = jax.lax.broadcasted_iota(jnp.int32, acc.shape, 1)
    # torch.nn.Softplus (beta=1, threshold=20) + eps=1e-8
    sp = jnp.where(acc > 20.0, acc,
                   jnp.log1p(jnp.exp(jnp.minimum(acc, 20.0)))) + 1e-8
    out_ref[0] = jnp.where(col < latent_dim, acc, sp)


# ---------------------------------------------------------------------------
# Wrapper: builds the single pallas_call.
# ---------------------------------------------------------------------------
def encoder_with_pooling_forward(params, x_nchw, *, cfgs, latent_dim, n_out_pad):
    """Returns (mu, scale, scale_tril) of the MultivariateNormal the PyTorch
    module would construct."""
    nl = len(cfgs)
    x = jnp.transpose(x_nchw, (0, 2, 3, 1)).astype(jnp.float32)   # NCHW -> NHWC
    lhs0 = _build_lhs0(x, cfgs[0]["k"])
    bsz = x.shape[0]

    def full_spec(arr):
        return pl.BlockSpec(arr.shape, lambda b, n=arr.ndim: (0,) * n)

    in_arrays = [lhs0, params["conv"][0][0], params["conv"][0][1]]
    in_specs = [
        pl.BlockSpec((1,) + lhs0.shape[1:], lambda b: (b, 0, 0, 0)),
        full_spec(in_arrays[1]),
        full_spec(in_arrays[2]),
    ]
    for i in range(1, nl):
        w, bias = params["conv"][i]
        in_arrays += [w, bias]
        in_specs += [full_spec(w), full_spec(bias)]
    in_arrays += [params["w_lat"], params["b_lat"]]
    in_specs += [full_spec(params["w_lat"]), full_spec(params["b_lat"])]

    scratch = [pltpu.VMEM((cfgs[0]["m_rows"], cfgs[0]["cout"]), jnp.float32)]
    for i in range(1, nl):
        c = cfgs[i]
        scratch.append(pltpu.VMEM((4, c["mq_pad"], c["cin"]), jnp.float32))
        scratch.append(pltpu.VMEM((c["m_rows"], c["cout"]), jnp.float32))

    out = pl.pallas_call(
        functools.partial(_fused_encoder_kernel, cfgs=cfgs,
                          latent_dim=latent_dim),
        out_shape=jax.ShapeDtypeStruct((bsz, 1, n_out_pad), jnp.float32),
        grid=(bsz,),
        in_specs=in_specs,
        out_specs=pl.BlockSpec((1, 1, n_out_pad), lambda b: (b, 0, 0)),
        scratch_shapes=scratch,
        compiler_params=pltpu.CompilerParams(
            dimension_semantics=("parallel",)),
    )(*in_arrays)

    out = out[:, 0, :]
    mu = out[:, :latent_dim]
    scale = out[:, latent_dim:2 * latent_dim]
    scale_tril = jnp.eye(latent_dim, dtype=scale.dtype)[None] * scale[:, :, None]
    return mu, scale, scale_tril


# ---------------------------------------------------------------------------
# Parameter init, stored directly in the kernel-ready layout.
# ---------------------------------------------------------------------------
def init_params(key, in_channels, latent_dim, network_capacity, image_size,
                nlayers=None):
    if nlayers is None:
        nlayers = int(math.log2(image_size))
    cfgs, chans = _build_configs(in_channels, network_capacity, image_size,
                                 nlayers)
    final = image_size // 2 ** nlayers
    assert cfgs[-1]["Ho"] == final

    conv = []
    for i, cfg in enumerate(cfgs):
        k, cin, cout = cfg["k"], cfg["cin"], cfg["cout"]
        key, k1, k2 = jax.random.split(key, 3)
        w = jax.random.normal(k1, (k, k, cin, cout), jnp.float32)
        w = w / math.sqrt(k * k * cin)
        b = jax.random.normal(k2, (cout,), jnp.float32) * 0.01
        # TODO(synk): real torch Conv2d weights are (Cout,Cin,kh,kw); permute to
        # (kh,kw,Cin,Cout) before the reshapes below when loading a checkpoint.
        if i == 0:
            w = w.reshape(k * k * cin, cout)        # layer-0 im2col weights
        else:
            w = w.reshape(k * k, cin, cout)         # per-tap weight matrices
        conv.append((w, b.reshape(1, cout)))

    feat = chans[-1] * final * final
    n_pad = _ru(2 * latent_dim, 128)
    key, k1, k2 = jax.random.split(key, 3)
    # w_lat rows kept in (spatial position, channel) order to match the
    # kernel's in-VMEM flatten; loading torch nn.Linear weights needs the
    # feat_idx = c*Hf*Wf + h*Wf + w  ->  (h*Wf + w, c) row permutation.
    w = jax.random.normal(k1, (final * final, chans[-1], 2 * latent_dim),
                          jnp.float32) / math.sqrt(feat)
    b = jax.random.normal(k2, (2 * latent_dim,), jnp.float32) * 0.01
    w_lat = jnp.zeros((final * final, chans[-1], n_pad), jnp.float32)
    w_lat = w_lat.at[:, :, :2 * latent_dim].set(w)
    b_lat = jnp.zeros((1, n_pad), jnp.float32).at[0, :2 * latent_dim].set(b)
    return dict(conv=conv, w_lat=w_lat, b_lat=b_lat), cfgs


# ---------------------------------------------------------------------------
# Pure-JAX reference (same weight layout) for a correctness check.
# ---------------------------------------------------------------------------
def reference_forward(params, x_nchw, cfgs, latent_dim):
    x = jnp.transpose(x_nchw, (0, 2, 3, 1)).astype(jnp.float32)
    for i, cfg in enumerate(cfgs):
        k, cin, cout = cfg["k"], cfg["cin"], cfg["cout"]
        w, b = params["conv"][i]
        w4 = w.reshape(k, k, cin, cout)
        y = jax.lax.conv_general_dilated(
            x, w4, window_strides=(1, 1), padding="SAME",
            dimension_numbers=("NHWC", "HWIO", "NHWC"))
        y = jax.nn.relu(y + b.reshape(1, 1, 1, cout))
        x = jax.lax.reduce_window(y, -jnp.inf, jax.lax.max,
                                  (1, 2, 2, 1), (1, 2, 2, 1), "VALID")
    bsz, hf, wf, cf = x.shape
    y = jnp.einsum("bpc,pcn->bn", x.reshape(bsz, hf * wf, cf),
                   params["w_lat"]) + params["b_lat"]
    mu = y[:, :latent_dim]
    scale = jax.nn.softplus(y[:, latent_dim:2 * latent_dim]) + 1e-8
    return mu, scale


if __name__ == "__main__":
    # Small config consistent with the module's __init__:
    #   in_channels=4, latent_dim=16, network_capacity=8, image_size=16, nlayers=3
    B, IN_CH, IMG, CAP, LATENT, NLAYERS = 2, 4, 16, 8, 16, 3

    key = jax.random.PRNGKey(0)
    key, pkey, xkey = jax.random.split(key, 3)
    params, cfgs = init_params(pkey, IN_CH, LATENT, CAP, IMG, NLAYERS)
    x = jax.random.normal(xkey, (B, IN_CH, IMG, IMG), jnp.float32)   # NCHW

    n_pad = params["w_lat"].shape[-1]
    fwd = jax.jit(functools.partial(encoder_with_pooling_forward,
                                    cfgs=cfgs, latent_dim=LATENT,
                                    n_out_pad=n_pad))
    mu, scale, scale_tril = fwd(params, x)
    jax.block_until_ready((mu, scale, scale_tril))

    assert mu.shape == (B, LATENT)
    assert scale.shape == (B, LATENT)
    assert scale_tril.shape == (B, LATENT, LATENT)
    assert bool(jnp.all(scale > 0))
    assert bool(jnp.all(jnp.isfinite(mu)))
    assert bool(jnp.all(jnp.isfinite(scale)))

    # Parity against the pure-JAX/XLA reference (f32 end-to-end).
    mu_ref, scale_ref = reference_forward(params, x, cfgs, LATENT)
    assert bool(jnp.allclose(mu, mu_ref, atol=1e-3, rtol=1e-3)), (
        "mu mismatch, max abs err = %e" % float(jnp.max(jnp.abs(mu - mu_ref))))
    assert bool(jnp.allclose(scale, scale_ref, atol=1e-3, rtol=1e-3)), (
        "scale mismatch, max abs err = %e"
        % float(jnp.max(jnp.abs(scale - scale_ref))))

    print("KERNEL_OK")
</pallas_src>

<mosaic_0001>
module attributes {stable_mosaic.version = 11 : i64} {
  func.func @_fused_encoder_kernel(%arg0: i32, %arg1: memref<1x4x64x36xf32, #tpu.memory_space<vmem>>, %arg2: memref<36x8xf32, #tpu.memory_space<vmem>>, %arg3: memref<1x8xf32, #tpu.memory_space<vmem>>, %arg4: memref<9x8x16xf32, #tpu.memory_space<vmem>>, %arg5: memref<1x16xf32, #tpu.memory_space<vmem>>, %arg6: memref<9x16x32xf32, #tpu.memory_space<vmem>>, %arg7: memref<1x32xf32, #tpu.memory_space<vmem>>, %arg8: memref<4x32x128xf32, #tpu.memory_space<vmem>>, %arg9: memref<1x128xf32, #tpu.memory_space<vmem>>, %arg10: memref<1x1x128xf32, #tpu.memory_space<vmem>>, %arg11: memref<64x8xf32, #tpu.memory_space<vmem>>, %arg12: memref<4x32x8xf32, #tpu.memory_space<vmem>>, %arg13: memref<24x16xf32, #tpu.memory_space<vmem>>, %arg14: memref<4x16x16xf32, #tpu.memory_space<vmem>>, %arg15: memref<8x32xf32, #tpu.memory_space<vmem>>) attributes {dimension_semantics = [#tpu.dimension_semantics<parallel>], iteration_bounds = array<i64: 2>, scalar_prefetch = 0 : i64, scratch_operands = 5 : i64, tpu.core_type = #tpu.core_type<tc>, window_params = [{transform_indices = @transform_0, window_bounds = array<i64: 1, 4, 64, 36>}, {pipeline_mode = #tpu.pipeline_mode<synchronous>, transform_indices = @transform_1, window_bounds = array<i64: 36, 8>}, {pipeline_mode = #tpu.pipeline_mode<synchronous>, transform_indices = @transform_2, window_bounds = array<i64: 1, 8>}, {pipeline_mode = #tpu.pipeline_mode<synchronous>, transform_indices = @transform_3, window_bounds = array<i64: 9, 8, 16>}, {pipeline_mode = #tpu.pipeline_mode<synchronous>, transform_indices = @transform_4, window_bounds = array<i64: 1, 16>}, {pipeline_mode = #tpu.pipeline_mode<synchronous>, transform_indices = @transform_5, window_bounds = array<i64: 9, 16, 32>}, {pipeline_mode = #tpu.pipeline_mode<synchronous>, transform_indices = @transform_6, window_bounds = array<i64: 1, 32>}, {pipeline_mode = #tpu.pipeline_mode<synchronous>, transform_indices = @transform_7, window_bounds = array<i64: 4, 32, 128>}, {pipeline_mode = #tpu.pipeline_mode<synchronous>, transform_indices = @transform_8, window_bounds = array<i64: 1, 128>}, {transform_indices = @transform_9, window_bounds = array<i64: 1, 1, 128>}]} {
    %c0 = arith.constant 0 : index
    %c0_0 = arith.constant 0 : index
    %c0_1 = arith.constant 0 : index
    %c0_2 = arith.constant 0 : index
    %0 = vector.load %arg1[%c0, %c0_0, %c0_1, %c0_2] : memref<1x4x64x36xf32, #tpu.memory_space<vmem>>, vector<1x1x64x36xf32>
    %1 = vector.shape_cast %0 : vector<1x1x64x36xf32> to vector<64x36xf32>
    %c0_3 = arith.constant 0 : index
    %c0_4 = arith.constant 0 : index
    %2 = vector.load %arg2[%c0_3, %c0_4] : memref<36x8xf32, #tpu.memory_space<vmem>>, vector<36x8xf32>
    %cst = arith.constant dense<0.000000e+00> : vector<64x8xf32>
    %3 = tpu.matmul %1, %2, %cst {dimension_numbers = #tpu.dot_dimension_numbers<[1], [0], [0], [1], [0, 0, 1, 1], [], []>} : vector<64x36xf32>, vector<36x8xf32>, vector<64x8xf32> -> vector<64x8xf32>
    %c0_5 = arith.constant 0 : index
    %c1 = arith.constant 1 : index
    %c0_6 = arith.constant 0 : index
    %c0_7 = arith.constant 0 : index
    %4 = vector.load %arg1[%c0_5, %c1, %c0_6, %c0_7] : memref<1x4x64x36xf32, #tpu.memory_space<vmem>>, vector<1x1x64x36xf32>
    %5 = vector.shape_cast %4 : vector<1x1x64x36xf32> to vector<64x36xf32>
    %c0_8 = arith.constant 0 : index
    %c0_9 = arith.constant 0 : index
    %6 = vector.load %arg2[%c0_8, %c0_9] : memref<36x8xf32, #tpu.memory_space<vmem>>, vector<36x8xf32>
    %cst_10 = arith.constant dense<0.000000e+00> : vector<64x8xf32>
    %7 = tpu.matmul %5, %6, %cst_10 {dimension_numbers = #tpu.dot_dimension_numbers<[1], [0], [0], [1], [0, 0, 1, 1], [], []>} : vector<64x36xf32>, vector<36x8xf32>, vector<64x8xf32> -> vector<64x8xf32>
    %8 = arith.maximumf %3, %7 : vector<64x8xf32>
    %c0_11 = arith.constant 0 : index
    %c2 = arith.constant 2 : index
    %c0_12 = arith.constant 0 : index
    %c0_13 = arith.constant 0 : index
    %9 = vector.load %arg1[%c0_11, %c2, %c0_12, %c0_13] : memref<1x4x64x36xf32, #tpu.memory_space<vmem>>, vector<1x1x64x36xf32>
    %10 = vector.shape_cast %9 : vector<1x1x64x36xf32> to vector<64x36xf32>
    %c0_14 = arith.constant 0 : index
    %c0_15 = arith.constant 0 : index
    %11 = vector.load %arg2[%c0_14, %c0_15] : memref<36x8xf32, #tpu.memory_space<vmem>>, vector<36x8xf32>
    %cst_16 = arith.constant dense<0.000000e+00> : vector<64x8xf32>
    %12 = tpu.matmul %10, %11, %cst_16 {dimension_numbers = #tpu.dot_dimension_numbers<[1], [0], [0], [1], [0, 0, 1, 1], [], []>} : vector<64x36xf32>, vector<36x8xf32>, vector<64x8xf32> -> vector<64x8xf32>
    %13 = arith.maximumf %8, %12 : vector<64x8xf32>
    %c0_17 = arith.constant 0 : index
    %c3 = arith.constant 3 : index
    %c0_18 = arith.constant 0 : index
    %c0_19 = arith.constant 0 : index
    %14 = vector.load %arg1[%c0_17, %c3, %c0_18, %c0_19] : memref<1x4x64x36xf32, #tpu.memory_space<vmem>>, vector<1x1x64x36xf32>
    %15 = vector.shape_cast %14 : vector<1x1x64x36xf32> to vector<64x36xf32>
    %c0_20 = arith.constant 0 : index
    %c0_21 = arith.constant 0 : index
    %16 = vector.load %arg2[%c0_20, %c0_21] : memref<36x8xf32, #tpu.memory_space<vmem>>, vector<36x8xf32>
    %cst_22 = arith.constant dense<0.000000e+00> : vector<64x8xf32>
    %17 = tpu.matmul %15, %16, %cst_22 {dimension_numbers = #tpu.dot_dimension_numbers<[1], [0], [0], [1], [0, 0, 1, 1], [], []>} : vector<64x36xf32>, vector<36x8xf32>, vector<64x8xf32> -> vector<64x8xf32>
    %18 = arith.maximumf %13, %17 : vector<64x8xf32>
    %c0_23 = arith.constant 0 : index
    %c0_24 = arith.constant 0 : index
    %19 = vector.load %arg3[%c0_23, %c0_24] : memref<1x8xf32, #tpu.memory_space<vmem>>, vector<1x8xf32>
    %20 = vector.broadcast %19 : vector<1x8xf32> to vector<64x8xf32>
    %21 = arith.addf %18, %20 : vector<64x8xf32>
    %cst_25 = arith.constant 0.000000e+00 : f32
    %22 = vector.broadcast %cst_25 : f32 to vector<64x8xf32>
    %23 = arith.maximumf %21, %22 : vector<64x8xf32>
    %c0_26 = arith.constant 0 : index
    %c0_27 = arith.constant 0 : index
    %24 = vector.load %arg11[%c0_26, %c0_27] : memref<64x8xf32, #tpu.memory_space<vmem>>, vector<64x8xf32>
    tpu.vector_store %arg11[%c0_26, %c0_27], %23 {strides = array<i32>} : memref<64x8xf32, #tpu.memory_space<vmem>>, vector<64x8xf32>,
    %cst_28 = arith.constant 0.000000e+00 : f32
    %25 = vector.broadcast %cst_28 : f32 to vector<4x32x8xf32>
    %c0_29 = arith.constant 0 : index
    %c0_30 = arith.constant 0 : index
    %c0_31 = arith.constant 0 : index
    %26 = vector.load %arg12[%c0_29, %c0_30, %c0_31] : memref<4x32x8xf32, #tpu.memory_space<vmem>>, vector<4x32x8xf32>
    tpu.vector_store %arg12[%c0_29, %c0_30, %c0_31], %25 {strides = array<i32>} : memref<4x32x8xf32, #tpu.memory_space<vmem>>, vector<4x32x8xf32>,
    %c9 = arith.constant 9 : index
    %c0_32 = arith.constant 0 : index
    %27 = tpu.strided_load %arg11[%c9, %c0_32] {strides = array<i32: 2, 1>} : memref<64x8xf32, #tpu.memory_space<vmem>>, vector<4x8xf32>
    %c0_33 = arith.constant 0 : index
    %c6 = arith.constant 6 : index
    %c0_34 = arith.constant 0 : index
    %28 = vector.load %arg12[%c0_33, %c6, %c0_34] : memref<4x32x8xf32, #tpu.memory_space<vmem>>, vector<1x4x8xf32>
    %29 = vector.shape_cast %28 : vector<1x4x8xf32> to vector<4x8xf32>
    %30 = vector.shape_cast %27 : vector<4x8xf32> to vector<1x4x8xf32>
    tpu.vector_store %arg12[%c0_33, %c6, %c0_34], %30 {strides = array<i32>} : memref<4x32x8xf32, #tpu.memory_space<vmem>>, vector<1x4x8xf32>,
    %c25 = arith.constant 25 : index
    %c0_35 = arith.constant 0 : index
    %31 = tpu.strided_load %arg11[%c25, %c0_35] {strides = array<i32: 2, 1>} : memref<64x8xf32, #tpu.memory_space<vmem>>, vector<4x8xf32>
    %c0_36 = arith.constant 0 : index
    %c11 = arith.constant 11 : index
    %c0_37 = arith.constant 0 : index
    %32 = vector.load %arg12[%c0_36, %c11, %c0_37] : memref<4x32x8xf32, #tpu.memory_space<vmem>>, vector<1x4x8xf32>
    %33 = vector.shape_cast %32 : vector<1x4x8xf32> to vector<4x8xf32>
    %34 = vector.shape_cast %31 : vector<4x8xf32> to vector<1x4x8xf32>
    tpu.vector_store %arg12[%c0_36, %c11, %c0_37], %34 {strides = array<i32>} : memref<4x32x8xf32, #tpu.memory_space<vmem>>, vector<1x4x8xf32>,
    %c41 = arith.constant 41 : index
    %c0_38 = arith.constant 0 : index
    %35 = tpu.strided_load %arg11[%c41, %c0_38] {strides = array<i32: 2, 1>} : memref<64x8xf32, #tpu.memory_space<vmem>>, vector<4x8xf32>
    %c0_39 = arith.constant 0 : index
    %c16 = arith.constant 16 : index
    %c0_40 = arith.constant 0 : index
    %36 = vector.load %arg12[%c0_39, %c16, %c0_40] : memref<4x32x8xf32, #tpu.memory_space<vmem>>, vector<1x4x8xf32>
    %37 = vector.shape_cast %36 : vector<1x4x8xf32> to vector<4x8xf32>
    %38 = vector.shape_cast %35 : vector<4x8xf32> to vector<1x4x8xf32>
    tpu.vector_store %arg12[%c0_39, %c16, %c0_40], %38 {strides = array<i32>} : memref<4x32x8xf32, #tpu.memory_space<vmem>>, vector<1x4x8xf32>,
    %c57 = arith.constant 57 : index
    %c0_41 = arith.constant 0 : index
    %39 = tpu.strided_load %arg11[%c57, %c0_41] {strides = array<i32: 2, 1>} : memref<64x8xf32, #tpu.memory_space<vmem>>, vector<4x8xf32>
    %c0_42 = arith.constant 0 : index
    %c21 = arith.constant 21 : index
    %c0_43 = arith.constant 0 : index
    %40 = vector.load %arg12[%c0_42, %c21, %c0_43] : memref<4x32x8xf32, #tpu.memory_space<vmem>>, vector<1x4x8xf32>
    %41 = vector.shape_cast %40 : vector<1x4x8xf32> to vector<4x8xf32>
    %42 = vector.shape_cast %39 : vector<4x8xf32> to vector<1x4x8xf32>
    tpu.vector_store %arg12[%c0_42, %c21, %c0_43], %42 {strides = array<i32>} : memref<4x32x8xf32, #tpu.memory_space<vmem>>, vector<1x4x8xf32>,
    %c8 = arith.constant 8 : index
    %c0_44 = arith.constant 0 : index
    %43 = tpu.strided_load %arg11[%c8, %c0_44] {strides = array<i32: 2, 1>} : memref<64x8xf32, #tpu.memory_space<vmem>>, vector<4x8xf32>
    %c1_45 = arith.constant 1 : index
    %c5 = arith.constant 5 : index
    %c0_46 = arith.constant 0 : index
    %44 = vector.load %arg12[%c1_45, %c5, %c0_46] : memref<4x32x8xf32, #tpu.memory_space<vmem>>, vector<1x4x8xf32>
    %45 = vector.shape_cast %44 : vector<1x4x8xf32> to vector<4x8xf32>
    %46 = vector.shape_cast %43 : vector<4x8xf32> to vector<1x4x8xf32>
    tpu.vector_store %arg12[%c1_45, %c5, %c0_46], %46 {strides = array<i32>} : memref<4x32x8xf32, #tpu.memory_space<vmem>>, vector<1x4x8xf32>,
    %c24 = arith.constant 24 : index
    %c0_47 = arith.constant 0 : index
    %47 = tpu.strided_load %arg11[%c24, %c0_47] {strides = array<i32: 2, 1>} : memref<64x8xf32, #tpu.memory_space<vmem>>, vector<4x8xf32>
    %c1_48 = arith.constant 1 : index
    %c10 = arith.constant 10 : index
    %c0_49 = arith.constant 0 : index
    %48 = vector.load %arg12[%c1_48, %c10, %c0_49] : memref<4x32x8xf32, #tpu.memory_space<vmem>>, vector<1x4x8xf32>
    %49 = vector.shape_cast %48 : vector<1x4x8xf32> to vector<4x8xf32>
    %50 = vector.shape_cast %47 : vector<4x8xf32> to vector<1x4x8xf32>
    tpu.vector_store %arg12[%c1_48, %c10, %c0_49], %50 {strides = array<i32>} : memref<4x32x8xf32, #tpu.memory_space<vmem>>, vector<1x4x8xf32>,
    %c40 = arith.constant 40 : index
    %c0_50 = arith.constant 0 : index
    %51 = tpu.strided_load %arg11[%c40, %c0_50] {strides = array<i32: 2, 1>} : memref<64x8xf32, #tpu.memory_space<vmem>>, vector<4x8xf32>
    %c1_51 = arith.constant 1 : index
    %c15 = arith.constant 15 : index
    %c0_52 = arith.constant 0 : index
    %52 = vector.load %arg12[%c1_51, %c15, %c0_52] : memref<4x32x8xf32, #tpu.memory_space<vmem>>, vector<1x4x8xf32>
    %53 = vector.shape_cast %52 : vector<1x4x8xf32> to vector<4x8xf32>
    %54 = vector.shape_cast %51 : vector<4x8xf32> to vector<1x4x8xf32>
    tpu.vector_store %arg12[%c1_51, %c15, %c0_52], %54 {strides = array<i32>} : memref<4x32x8xf32, #tpu.memory_space<vmem>>, vector<1x4x8xf32>,
    %c56 = arith.constant 56 : index
    %c0_53 = arith.constant 0 : index
    %55 = tpu.strided_load %arg11[%c56, %c0_53] {strides = array<i32: 2, 1>} : memref<64x8xf32, #tpu.memory_space<vmem>>, vector<4x8xf32>
    %c1_54 = arith.constant 1 : index
    %c20 = arith.constant 20 : index
    %c0_55 = arith.constant 0 : index
    %56 = vector.load %arg12[%c1_54, %c20, %c0_55] : memref<4x32x8xf32, #tpu.memory_space<vmem>>, vector<1x4x8xf32>
    %57 = vector.shape_cast %56 : vector<1x4x8xf32> to vector<4x8xf32>
    %58 = vector.shape_cast %55 : vector<4x8xf32> to vector<1x4x8xf32>
    tpu.vector_store %arg12[%c1_54, %c20, %c0_55], %58 {strides = array<i32>} : memref<4x32x8xf32, #tpu.memory_space<vmem>>, vector<1x4x8xf32>,
    %c1_56 = arith.constant 1 : index
    %c0_57 = arith.constant 0 : index
    %59 = tpu.strided_load %arg11[%c1_56, %c0_57] {strides = array<i32: 2, 1>} : memref<64x8xf32, #tpu.memory_space<vmem>>, vector<4x8xf32>
    %c2_58 = arith.constant 2 : index
    %c1_59 = arith.constant 1 : index
    %c0_60 = arith.constant 0 : index
    %60 = vector.load %arg12[%c2_58, %c1_59, %c0_60] : memref<4x32x8xf32, #tpu.memory_space<vmem>>, vector<1x4x8xf32>
    %61 = vector.shape_cast %60 : vector<1x4x8xf32> to vector<4x8xf32>
    %62 = vector.shape_cast %59 : vector<4x8xf32> to vector<1x4x8xf32>
    tpu.vector_store %arg12[%c2_58, %c1_59, %c0_60], %62 {strides = array<i32>} : memref<4x32x8xf32, #tpu.memory_space<vmem>>, vector<1x4x8xf32>,
    %c17 = arith.constant 17 : index
    %c0_61 = arith.constant 0 : index
    %63 = tpu.strided_load %arg11[%c17, %c0_61] {strides = array<i32: 2, 1>} : memref<64x8xf32, #tpu.memory_space<vmem>>, vector<4x8xf32>
    %c2_62 = arith.constant 2 : index
    %c6_63 = arith.constant 6 : index
    %c0_64 = arith.constant 0 : index
    %64 = vector.load %arg12[%c2_62, %c6_63, %c0_64] : memref<4x32x8xf32, #tpu.memory_space<vmem>>, vector<1x4x8xf32>
    %65 = vector.shape_cast %64 : vector<1x4x8xf32> to vector<4x8xf32>
    %66 = vector.shape_cast %63 : vector<4x8xf32> to vector<1x4x8xf32>
    tpu.vector_store %arg12[%c2_62, %c6_63, %c0_64], %66 {strides = array<i32>} : memref<4x32x8xf32, #tpu.memory_space<vmem>>, vector<1x4x8xf32>,
    %c33 = arith.constant 33 : index
    %c0_65 = arith.constant 0 : index
    %67 = tpu.strided_load %arg11[%c33, %c0_65] {strides = array<i32: 2, 1>} : memref<64x8xf32, #tpu.memory_space<vmem>>, vector<4x8xf32>
    %c2_66 = arith.constant 2 : index
    %c11_67 = arith.constant 11 : index
    %c0_68 = arith.constant 0 : index
    %68 = vector.load %arg12[%c2_66, %c11_67, %c0_68] : memref<4x32x8xf32, #tpu.memory_space<vmem>>, vector<1x4x8xf32>
    %69 = vector.shape_cast %68 : vector<1x4x8xf32> to vector<4x8xf32>
    %70 = vector.shape_cast %67 : vector<4x8xf32> to vector<1x4x8xf32>
    tpu.vector_store %arg12[%c2_66, %c11_67, %c0_68], %70 {strides = array<i32>} : memref<4x32x8xf32, #tpu.memory_space<vmem>>, vector<1x4x8xf32>,
    %c49 = arith.constant 49 : index
    %c0_69 = arith.constant 0 : index
    %71 = tpu.strided_load %arg11[%c49, %c0_69] {strides = array<i32: 2, 1>} : memref<64x8xf32, #tpu.memory_space<vmem>>, vector<4x8xf32>
    %c2_70 = arith.constant 2 : index
    %c16_71 = arith.constant 16 : index
    %c0_72 = arith.constant 0 : index
    %72 = vector.load %arg12[%c2_70, %c16_71, %c0_72] : memref<4x32x8xf32, #tpu.memory_space<vmem>>, vector<1x4x8xf32>
    %73 = vector.shape_cast %72 : vector<1x4x8xf32> to vector<4x8xf32>
    %74 = vector.shape_cast %71 : vector<4x8xf32> to vector<1x4x8xf32>
    tpu.vector_store %arg12[%c2_70, %c16_71, %c0_72], %74 {strides = array<i32>} : memref<4x32x8xf32, #tpu.memory_space<vmem>>, vector<1x4x8xf32>,
    %c0_73 = arith.constant 0 : index
    %c0_74 = arith.constant 0 : index
    %75 = tpu.strided_load %arg11[%c0_73, %c0_74] {strides = array<i32: 2, 1>} : memref<64x8xf32, #tpu.memory_space<vmem>>, vector<4x8xf32>
    %c3_75 = arith.constant 3 : index
    %c0_76 = arith.constant 0 : index
    %c0_77 = arith.constant 0 : index
    %76 = vector.load %arg12[%c3_75, %c0_76, %c0_77] : memref<4x32x8xf32, #tpu.memory_space<vmem>>, vector<1x4x8xf32>
    %77 = vector.shape_cast %76 : vector<1x4x8xf32> to vector<4x8xf32>
    %78 = vector.shape_cast %75 : vector<4x8xf32> to vector<1x4x8xf32>
    tpu.vector_store %arg12[%c3_75, %c0_76, %c0_77], %78 {strides = array<i32>} : memref<4x32x8xf32, #tpu.memory_space<vmem>>, vector<1x4x8xf32>,
    %c16_78 = arith.constant 16 : index
    %c0_79 = arith.constant 0 : index
    %79 = tpu.strided_load %arg11[%c16_78, %c0_79] {strides = array<i32: 2, 1>} : memref<64x8xf32, #tpu.memory_space<vmem>>, vector<4x8xf32>
    %c3_80 = arith.constant 3 : index
    %c5_81 = arith.constant 5 : index
    %c0_82 = arith.constant 0 : index
    %80 = vector.load %arg12[%c3_80, %c5_81, %c0_82] : memref<4x32x8xf32, #tpu.memory_space<vmem>>, vector<1x4x8xf32>
    %81 = vector.shape_cast %80 : vector<1x4x8xf32> to vector<4x8xf32>
    %82 = vector.shape_cast %79 : vector<4x8xf32> to vector<1x4x8xf32>
    tpu.vector_store %arg12[%c3_80, %c5_81, %c0_82], %82 {strides = array<i32>} : memref<4x32x8xf32, #tpu.memory_space<vmem>>, vector<1x4x8xf32>,
    %c32 = arith.constant 32 : index
    %c0_83 = arith.constant 0 : index
    %83 = tpu.strided_load %arg11[%c32, %c0_83] {strides = array<i32: 2, 1>} : memref<64x8xf32, #tpu.memory_space<vmem>>, vector<4x8xf32>
    %c3_84 = arith.constant 3 : index
    %c10_85 = arith.constant 10 : index
    %c0_86 = arith.constant 0 : index
    %84 = vector.load %arg12[%c3_84, %c10_85, %c0_86] : memref<4x32x8xf32, #tpu.memory_space<vmem>>, vector<1x4x8xf32>
    %85 = vector.shape_cast %84 : vector<1x4x8xf32> to vector<4x8xf32>
    %86 = vector.shape_cast %83 : vector<4x8xf32> to vector<1x4x8xf32>
    tpu.vector_store %arg12[%c3_84, %c10_85, %c0_86], %86 {strides = array<i32>} : memref<4x32x8xf32, #tpu.memory_space<vmem>>, vector<1x4x8xf32>,
    %c48 = arith.constant 48 : index
    %c0_87 = arith.constant 0 : index
    %87 = tpu.strided_load %arg11[%c48, %c0_87] {strides = array<i32: 2, 1>} : memref<64x8xf32, #tpu.memory_space<vmem>>, vector<4x8xf32>
    %c3_88 = arith.constant 3 : index
    %c15_89 = arith.constant 15 : index
    %c0_90 = arith.constant 0 : index
    %88 = vector.load %arg12[%c3_88, %c15_89, %c0_90] : memref<4x32x8xf32, #tpu.memory_space<vmem>>, vector<1x4x8xf32>
    %89 = vector.shape_cast %88 : vector<1x4x8xf32> to vector<4x8xf32>
    %90 = vector.shape_cast %87 : vector<4x8xf32> to vector<1x4x8xf32>
    tpu.vector_store %arg12[%c3_88, %c15_89, %c0_90], %90 {strides = array<i32>} : memref<4x32x8xf32, #tpu.memory_space<vmem>>, vector<1x4x8xf32>,
    %c0_91 = arith.constant 0 : index
    %c0_92 = arith.constant 0 : index
    %c0_93 = arith.constant 0 : index
    %91 = vector.load %arg4[%c0_91, %c0_92, %c0_93] : memref<9x8x16xf32, #tpu.memory_space<vmem>>, vector<1x8x16xf32>
    %92 = vector.shape_cast %91 : vector<1x8x16xf32> to vector<8x16xf32>
    %c0_94 = arith.constant 0 : index
    %c0_95 = arith.constant 0 : index
    %c0_96 = arith.constant 0 : index
    %93 = vector.load %arg12[%c0_94, %c0_95, %c0_96] : memref<4x32x8xf32, #tpu.memory_space<vmem>>, vector<1x24x8xf32>
    %94 = vector.shape_cast %93 : vector<1x24x8xf32> to vector<24x8xf32>
    %cst_97 = arith.constant dense<0.000000e+00> : vector<24x16xf32>
    %95 = tpu.matmul %94, %92, %cst_97 {dimension_numbers = #tpu.dot_dimension_numbers<[1], [0], [0], [1], [0, 0, 1, 1], [], []>} : vector<24x8xf32>, vector<8x16xf32>, vector<24x16xf32> -> vector<24x16xf32>
    %c1_98 = arith.constant 1 : index
    %c0_99 = arith.constant 0 : index
    %c0_100 = arith.constant 0 : index
    %96 = vector.load %arg12[%c1_98, %c0_99, %c0_100] : memref<4x32x8xf32, #tpu.memory_space<vmem>>, vector<1x24x8xf32>
    %97 = vector.shape_cast %96 : vector<1x24x8xf32> to vector<24x8xf32>
    %cst_101 = arith.constant dense<0.000000e+00> : vector<24x16xf32>
    %98 = tpu.matmul %97, %92, %cst_101 {dimension_numbers = #tpu.dot_dimension_numbers<[1], [0], [0], [1], [0, 0, 1, 1], [], []>} : vector<24x8xf32>, vector<8x16xf32>, vector<24x16xf32> -> vector<24x16xf32>
    %c2_102 = arith.constant 2 : index
    %c0_103 = arith.constant 0 : index
    %c0_104 = arith.constant 0 : index
    %99 = vector.load %arg12[%c2_102, %c0_103, %c0_104] : memref<4x32x8xf32, #tpu.memory_space<vmem>>, vector<1x24x8xf32>
    %100 = vector.shape_cast %99 : vector<1x24x8xf32> to vector<24x8xf32>
    %cst_105 = arith.constant dense<0.000000e+00> : vector<24x16xf32>
    %101 = tpu.matmul %100, %92, %cst_105 {dimension_numbers = #tpu.dot_dimension_numbers<[1], [0], [0], [1], [0, 0, 1, 1], [], []>} : vector<24x8xf32>, vector<8x16xf32>, vector<24x16xf32> -> vector<24x16xf32>
    %c3_106 = arith.constant 3 : index
    %c0_107 = arith.constant 0 : index
    %c0_108 = arith.constant 0 : index
    %102 = vector.load %arg12[%c3_106, %c0_107, %c0_108] : memref<4x32x8xf32, #tpu.memory_space<vmem>>, vector<1x24x8xf32>
    %103 = vector.shape_cast %102 : vector<1x24x8xf32> to vector<24x8xf32>
    %cst_109 = arith.constant dense<0.000000e+00> : vector<24x16xf32>
    %104 = tpu.matmul %103, %92, %cst_109 {dimension_numbers = #tpu.dot_dimension_numbers<[1], [0], [0], [1], [0, 0, 1, 1], [], []>} : vector<24x8xf32>, vector<8x16xf32>, vector<24x16xf32> -> vector<24x16xf32>
    %c1_110 = arith.constant 1 : index
    %c0_111 = arith.constant 0 : index
    %c0_112 = arith.constant 0 : index
    %105 = vector.load %arg4[%c1_110, %c0_111, %c0_112] : memref<9x8x16xf32, #tpu.memory_space<vmem>>, vector<1x8x16xf32>
    %106 = vector.shape_cast %105 : vector<1x8x16xf32> to vector<8x16xf32>
    %c1_113 = arith.constant 1 : index
    %c0_114 = arith.constant 0 : index
    %c0_115 = arith.constant 0 : index
    %107 = vector.load %arg12[%c1_113, %c0_114, %c0_115] : memref<4x32x8xf32, #tpu.memory_space<vmem>>, vector<1x24x8xf32>
    %108 = vector.shape_cast %107 : vector<1x24x8xf32> to vector<24x8xf32>
    %cst_116 = arith.constant dense<0.000000e+00> : vector<24x16xf32>
    %109 = tpu.matmul %108, %106, %cst_116 {dimension_numbers = #tpu.dot_dimension_numbers<[1], [0], [0], [1], [0, 0, 1, 1], [], []>} : vector<24x8xf32>, vector<8x16xf32>, vector<24x16xf32> -> vector<24x16xf32>
    %110 = arith.addf %95, %109 : vector<24x16xf32>
    %c0_117 = arith.constant 0 : index
    %c1_118 = arith.constant 1 : index
    %c0_119 = arith.constant 0 : index
    %111 = vector.load %arg12[%c0_117, %c1_118, %c0_119] : memref<4x32x8xf32, #tpu.memory_space<vmem>>, vector<1x24x8xf32>
    %112 = vector.shape_cast %111 : vector<1x24x8xf32> to vector<24x8xf32>
    %cst_120 = arith.constant dense<0.000000e+00> : vector<24x16xf32>
    %113 = tpu.matmul %112, %106, %cst_120 {dimension_numbers = #tpu.dot_dimension_numbers<[1], [0], [0], [1], [0, 0, 1, 1], [], []>} : vector<24x8xf32>, vector<8x16xf32>, vector<24x16xf32> -> vector<24x16xf32>
    %114 = arith.addf %98, %113 : vector<24x16xf32>
    %c3_121 = arith.constant 3 : index
    %c0_122 = arith.constant 0 : index
    %c0_123 = arith.constant 0 : index
    %115 = vector.load %arg12[%c3_121, %c0_122, %c0_123] : memref<4x32x8xf32, #tpu.memory_space<vmem>>, vector<1x24x8xf32>
    %116 = vector.shape_cast %115 : vector<1x24x8xf32> to vector<24x8xf32>
    %cst_124 = arith.constant dense<0.000000e+00> : vector<24x16xf32>
    %117 = tpu.matmul %116, %106, %cst_124 {dimension_numbers = #tpu.dot_dimension_numbers<[1], [0], [0], [1], [0, 0, 1, 1], [], []>} : vector<24x8xf32>, vector<8x16xf32>, vector<24x16xf32> -> vector<24x16xf32>
    %118 = arith.addf %101, %117 : vector<24x16xf32>
    %c2_125 = arith.constant 2 : index
    %c1_126 = arith.constant 1 : index
    %c0_127 = arith.constant 0 : index
    %119 = vector.load %arg12[%c2_125, %c1_126, %c0_127] : memref<4x32x8xf32, #tpu.memory_space<vmem>>, vector<1x24x8xf32>
    %120 = vector.shape_cast %119 : vector<1x24x8xf32> to vector<24x8xf32>
    %cst_128 = arith.constant dense<0.000000e+00> : vector<24x16xf32>
    %121 = tpu.matmul %120, %106, %cst_128 {dimension_numbers = #tpu.dot_dimension_numbers<[1], [0], [0], [1], [0, 0, 1, 1], [], []>} : vector<24x8xf32>, vector<8x16xf32>, vector<24x16xf32> -> vector<24x16xf32>
    %122 = arith.addf %104, %121 : vector<24x16xf32>
    %c2_129 = arith.constant 2 : index
    %c0_130 = arith.constant 0 : index
    %c0_131 = arith.constant 0 : index
    %123 = vector.load %arg4[%c2_129, %c0_130, %c0_131] : memref<9x8x16xf32, #tpu.memory_space<vmem>>, vector<1x8x16xf32>
    %124 = vector.shape_cast %123 : vector<1x8x16xf32> to vector<8x16xf32>
    %c0_132 = arith.constant 0 : index
    %c1_133 = arith.constant 1 : index
    %c0_134 = arith.constant 0 : index
    %125 = vector.load %arg12[%c0_132, %c1_133, %c0_134] : memref<4x32x8xf32, #tpu.memory_space<vmem>>, vector<1x24x8xf32>
    %126 = vector.shape_cast %125 : vector<1x24x8xf32> to vector<24x8xf32>
    %cst_135 = arith.constant dense<0.000000e+00> : vector<24x16xf32>
    %127 = tpu.matmul %126, %124, %cst_135 {dimension_numbers = #tpu.dot_dimension_numbers<[1], [0], [0], [1], [0, 0, 1, 1], [], []>} : vector<24x8xf32>, vector<8x16xf32>, vector<24x16xf32> -> vector<24x16xf32>
    %128 = arith.addf %110, %127 : vector<24x16xf32>
    %c1_136 = arith.constant 1 : index
    %c1_137 = arith.constant 1 : index
    %c0_138 = arith.constant 0 : index
    %129 = vector.load %arg12[%c1_136, %c1_137, %c0_138] : memref<4x32x8xf32, #tpu.memory_space<vmem>>, vector<1x24x8xf32>
    %130 = vector.shape_cast %129 : vector<1x24x8xf32> to vector<24x8xf32>
    %cst_139 = arith.constant dense<0.000000e+00> : vector<24x16xf32>
    %131 = tpu.matmul %130, %124, %cst_139 {dimension_numbers = #tpu.dot_dimension_numbers<[1], [0], [0], [1], [0, 0, 1, 1], [], []>} : vector<24x8xf32>, vector<8x16xf32>, vector<24x16xf32> -> vector<24x16xf32>
    %132 = arith.addf %114, %131 : vector<24x16xf32>
    %c2_140 = arith.constant 2 : index
    %c1_141 = arith.constant 1 : index
    %c0_142 = arith.constant 0 : index
    %133 = vector.load %arg12[%c2_140, %c1_141, %c0_142] : memref<4x32x8xf32, #tpu.memory_space<vmem>>, vector<1x24x8xf32>
    %134 = vector.shape_cast %133 : vector<1x24x8xf32> to vector<24x8xf32>
    %cst_143 = arith.constant dense<0.000000e+00> : vector<24x16xf32>
    %135 = tpu.matmul %134, %124, %cst_143 {dimension_numbers = #tpu.dot_dimension_numbers<[1], [0], [0], [1], [0, 0, 1, 1], [], []>} : vector<24x8xf32>, vector<8x16xf32>, vector<24x16xf32> -> vector<24x16xf32>
    %136 = arith.addf %118, %135 : vector<24x16xf32>
    %c3_144 = arith.constant 3 : index
    %c1_145 = arith.constant 1 : index
    %c0_146 = arith.constant 0 : index
    %137 = vector.load %arg12[%c3_144, %c1_145, %c0_146] : memref<4x32x8xf32, #tpu.memory_space<vmem>>, vector<1x24x8xf32>
    %138 = vector.shape_cast %137 : vector<1x24x8xf32> to vector<24x8xf32>
    %cst_147 = arith.constant dense<0.000000e+00> : vector<24x16xf32>
    %139 = tpu.matmul %138, %124, %cst_147 {dimension_numbers = #tpu.dot_dimension_numbers<[1], [0], [0], [1], [0, 0, 1, 1], [], []>} : vector<24x8xf32>, vector<8x16xf32>, vector<24x16xf32> -> vector<24x16xf32>
    %140 = arith.addf %122, %139 : vector<24x16xf32>
    %c3_148 = arith.constant 3 : index
    %c0_149 = arith.constant 0 : index
    %c0_150 = arith.constant 0 : index
    %141 = vector.load %arg4[%c3_148, %c0_149, %c0_150] : memref<9x8x16xf32, #tpu.memory_space<vmem>>, vector<1x8x16xf32>
    %142 = vector.shape_cast %141 : vector<1x8x16xf32> to vector<8x16xf32>
    %c2_151 = arith.constant 2 : index
    %c0_152 = arith.constant 0 : index
    %c0_153 = arith.constant 0 : index
    %143 = vector.load %arg12[%c2_151, %c0_152, %c0_153] : memref<4x32x8xf32, #tpu.memory_space<vmem>>, vector<1x24x8xf32>
    %144 = vector.shape_cast %143 : vector<1x24x8xf32> to vector<24x8xf32>
    %cst_154 = arith.constant dense<0.000000e+00> : vector<24x16xf32>
    %145 = tpu.matmul %144, %142, %cst_154 {dimension_numbers = #tpu.dot_dimension_numbers<[1], [0], [0], [1], [0, 0, 1, 1], [], []>} : vector<24x8xf32>, vector<8x16xf32>, vector<24x16xf32> -> vector<24x16xf32>
    %146 = arith.addf %128, %145 : vector<24x16xf32>
    %c3_155 = arith.constant 3 : index
    %c0_156 = arith.constant 0 : index
    %c0_157 = arith.constant 0 : index
    %147 = vector.load %arg12[%c3_155, %c0_156, %c0_157] : memref<4x32x8xf32, #tpu.memory_space<vmem>>, vector<1x24x8xf32>
    %148 = vector.shape_cast %147 : vector<1x24x8xf32> to vector<24x8xf32>
    %cst_158 = arith.constant dense<0.000000e+00> : vector<24x16xf32>
    %149 = tpu.matmul %148, %142, %cst_158 {dimension_numbers = #tpu.dot_dimension_numbers<[1], [0], [0], [1], [0, 0, 1, 1], [], []>} : vector<24x8xf32>, vector<8x16xf32>, vector<24x16xf32> -> vector<24x16xf32>
    %150 = arith.addf %132, %149 : vector<24x16xf32>
    %c0_159 = arith.constant 0 : index
    %c5_160 = arith.constant 5 : index
    %c0_161 = arith.constant 0 : index
    %151 = vector.load %arg12[%c0_159, %c5_160, %c0_161] : memref<4x32x8xf32, #tpu.memory_space<vmem>>, vector<1x24x8xf32>
    %152 = vector.shape_cast %151 : vector<1x24x8xf32> to vector<24x8xf32>
    %cst_162 = arith.constant dense<0.000000e+00> : vector<24x16xf32>
    %153 = tpu.matmul %152, %142, %cst_162 {dimension_numbers = #tpu.dot_dimension_numbers<[1], [0], [0], [1], [0, 0, 1, 1], [], []>} : vector<24x8xf32>, vector<8x16xf32>, vector<24x16xf32> -> vector<24x16xf32>
    %154 = arith.addf %136, %153 : vector<24x16xf32>
    %c1_163 = arith.constant 1 : index
    %c5_164 = arith.constant 5 : index
    %c0_165 = arith.constant 0 : index
    %155 = vector.load %arg12[%c1_163, %c5_164, %c0_165] : memref<4x32x8xf32, #tpu.memory_space<vmem>>, vector<1x24x8xf32>
    %156 = vector.shape_cast %155 : vector<1x24x8xf32> to vector<24x8xf32>
    %cst_166 = arith.constant dense<0.000000e+00> : vector<24x16xf32>
    %157 = tpu.matmul %156, %142, %cst_166 {dimension_numbers = #tpu.dot_dimension_numbers<[1], [0], [0], [1], [0, 0, 1, 1], [], []>} : vector<24x8xf32>, vector<8x16xf32>, vector<24x16xf32> -> vector<24x16xf32>
    %158 = arith.addf %140, %157 : vector<24x16xf32>
    %c4 = arith.constant 4 : index
    %c0_167 = arith.constant 0 : index
    %c0_168 = arith.constant 0 : index
    %159 = vector.load %arg4[%c4, %c0_167, %c0_168] : memref<9x8x16xf32, #tpu.memory_space<vmem>>, vector<1x8x16xf32>
    %160 = vector.shape_cast %159 : vector<1x8x16xf32> to vector<8x16xf32>
    %c3_169 = arith.constant 3 : index
    %c0_170 = arith.constant 0 : index
    %c0_171 = arith.constant 0 : index
    %161 = vector.load %arg12[%c3_169, %c0_170, %c0_171] : memref<4x32x8xf32, #tpu.memory_space<vmem>>, vector<1x24x8xf32>
    %162 = vector.shape_cast %161 : vector<1x24x8xf32> to vector<24x8xf32>
    %cst_172 = arith.constant dense<0.000000e+00> : vector<24x16xf32>
    %163 = tpu.matmul %162, %160, %cst_172 {dimension_numbers = #tpu.dot_dimension_numbers<[1], [0], [0], [1], [0, 0, 1, 1], [], []>} : vector<24x8xf32>, vector<8x16xf32>, vector<24x16xf32> -> vector<24x16xf32>
    %164 = arith.addf %146, %163 : vector<24x16xf32>
    %c2_173 = arith.constant 2 : index
    %c1_174 = arith.constant 1 : index
    %c0_175 = arith.constant 0 : index
    %165 = vector.load %arg12[%c2_173, %c1_174, %c0_175] : memref<4x32x8xf32, #tpu.memory_space<vmem>>, vector<1x24x8xf32>
    %166 = vector.shape_cast %165 : vector<1x24x8xf32> to vector<24x8xf32>
    %cst_176 = arith.constant dense<0.000000e+00> : vector<24x16xf32>
    %167 = tpu.matmul %166, %160, %cst_176 {dimension_numbers = #tpu.dot_dimension_numbers<[1], [0], [0], [1], [0, 0, 1, 1], [], []>} : vector<24x8xf32>, vector<8x16xf32>, vector<24x16xf32> -> vector<24x16xf32>
    %168 = arith.addf %150, %167 : vector<24x16xf32>
    %c1_177 = arith.constant 1 : index
    %c5_178 = arith.constant 5 : index
    %c0_179 = arith.constant 0 : index
    %169 = vector.load %arg12[%c1_177, %c5_178, %c0_179] : memref<4x32x8xf32, #tpu.memory_space<vmem>>, vector<1x24x8xf32>
    %170 = vector.shape_cast %169 : vector<1x24x8xf32> to vector<24x8xf32>
    %cst_180 = arith.constant dense<0.000000e+00> : vector<24x16xf32>
    %171 = tpu.matmul %170, %160, %cst_180 {dimension_numbers = #tpu.dot_dimension_numbers<[1], [0], [0], [1], [0, 0, 1, 1], [], []>} : vector<24x8xf32>, vector<8x16xf32>, vector<24x16xf32> -> vector<24x16xf32>
    %172 = arith.addf %154, %171 : vector<24x16xf32>
    %c0_181 = arith.constant 0 : index
    %c6_182 = arith.constant 6 : index
    %c0_183 = arith.constant 0 : index
    %173 = vector.load %arg12[%c0_181, %c6_182, %c0_183] : memref<4x32x8xf32, #tpu.memory_space<vmem>>, vector<1x24x8xf32>
    %174 = vector.shape_cast %173 : vector<1x24x8xf32> to vector<24x8xf32>
    %cst_184 = arith.constant dense<0.000000e+00> : vector<24x16xf32>
    %175 = tpu.matmul %174, %160, %cst_184 {dimension_numbers = #tpu.dot_dimension_numbers<[1], [0], [0], [1], [0, 0, 1, 1], [], []>} : vector<24x8xf32>, vector<8x16xf32>, vector<24x16xf32> -> vector<24x16xf32>
    %176 = arith.addf %158, %175 : vector<24x16xf32>
    %c5_185 = arith.constant 5 : index
    %c0_186 = arith.constant 0 : index
    %c0_187 = arith.constant 0 : index
    %177 = vector.load %arg4[%c5_185, %c0_186, %c0_187] : memref<9x8x16xf32, #tpu.memory_space<vmem>>, vector<1x8x16xf32>
    %178 = vector.shape_cast %177 : vector<1x8x16xf32> to vector<8x16xf32>
    %c2_188 = arith.constant 2 : index
    %c1_189 = arith.constant 1 : index
    %c0_190 = arith.constant 0 : index
    %179 = vector.load %arg12[%c2_188, %c1_189, %c0_190] : memref<4x32x8xf32, #tpu.memory_space<vmem>>, vector<1x24x8xf32>
    %180 = vector.shape_cast %179 : vector<1x24x8xf32> to vector<24x8xf32>
    %cst_191 = arith.constant dense<0.000000e+00> : vector<24x16xf32>
    %181 = tpu.matmul %180, %178, %cst_191 {dimension_numbers = #tpu.dot_dimension_numbers<[1], [0], [0], [1], [0, 0, 1, 1], [], []>} : vector<24x8xf32>, vector<8x16xf32>, vector<24x16xf32> -> vector<24x16xf32>
    %182 = arith.addf %164, %181 : vector<24x16xf32>
    %c3_192 = arith.constant 3 : index
    %c1_193 = arith.constant 1 : index
    %c0_194 = arith.constant 0 : index
    %183 = vector.load %arg12[%c3_192, %c1_193, %c0_194] : memref<4x32x8xf32, #tpu.memory_space<vmem>>, vector<1x24x8xf32>
    %184 = vector.shape_cast %183 : vector<1x24x8xf32> to vector<24x8xf32>
    %cst_195 = arith.constant dense<0.000000e+00> : vector<24x16xf32>
    %185 = tpu.matmul %184, %178, %cst_195 {dimension_numbers = #tpu.dot_dimension_numbers<[1], [0], [0], [1], [0, 0, 1, 1], [], []>} : vector<24x8xf32>, vector<8x16xf32>, vector<24x16xf32> -> vector<24x16xf32>
    %186 = arith.addf %168, %185 : vector<24x16xf32>
    %c0_196 = arith.constant 0 : index
    %c6_197 = arith.constant 6 : index
    %c0_198 = arith.constant 0 : index
    %187 = vector.load %arg12[%c0_196, %c6_197, %c0_198] : memref<4x32x8xf32, #tpu.memory_space<vmem>>, vector<1x24x8xf32>
    %188 = vector.shape_cast %187 : vector<1x24x8xf32> to vector<24x8xf32>
    %cst_199 = arith.constant dense<0.000000e+00> : vector<24x16xf32>
    %189 = tpu.matmul %188, %178, %cst_199 {dimension_numbers = #tpu.dot_dimension_numbers<[1], [0], [0], [1], [0, 0, 1, 1], [], []>} : vector<24x8xf32>, vector<8x16xf32>, vector<24x16xf32> -> vector<24x16xf32>
    %190 = arith.addf %172, %189 : vector<24x16xf32>
    %c1_200 = arith.constant 1 : index
    %c6_201 = arith.constant 6 : index
    %c0_202 = arith.constant 0 : index
    %191 = vector.load %arg12[%c1_200, %c6_201, %c0_202] : memref<4x32x8xf32, #tpu.memory_space<vmem>>, vector<1x24x8xf32>
    %192 = vector.shape_cast %191 : vector<1x24x8xf32> to vector<24x8xf32>
    %cst_203 = arith.constant dense<0.000000e+00> : vector<24x16xf32>
    %193 = tpu.matmul %192, %178, %cst_203 {dimension_numbers = #tpu.dot_dimension_numbers<[1], [0], [0], [1], [0, 0, 1, 1], [], []>} : vector<24x8xf32>, vector<8x16xf32>, vector<24x16xf32> -> vector<24x16xf32>
    %194 = arith.addf %176, %193 : vector<24x16xf32>
    %c6_204 = arith.constant 6 : index
    %c0_205 = arith.constant 0 : index
    %c0_206 = arith.constant 0 : index
    %195 = vector.load %arg4[%c6_204, %c0_205, %c0_206] : memref<9x8x16xf32, #tpu.memory_space<vmem>>, vector<1x8x16xf32>
    %196 = vector.shape_cast %195 : vector<1x8x16xf32> to vector<8x16xf32>
    %c0_207 = arith.constant 0 : index
    %c5_208 = arith.constant 5 : index
    %c0_209 = arith.constant 0 : index
    %197 = vector.load %arg12[%c0_207, %c5_208, %c0_209] : memref<4x32x8xf32, #tpu.memory_space<vmem>>, vector<1x24x8xf32>
    %198 = vector.shape_cast %197 : vector<1x24x8xf32> to vector<24x8xf32>
    %cst_210 = arith.constant dense<0.000000e+00> : vector<24x16xf32>
    %199 = tpu.matmul %198, %196, %cst_210 {dimension_numbers = #tpu.dot_dimension_numbers<[1], [0], [0], [1], [0, 0, 1, 1], [], []>} : vector<24x8xf32>, vector<8x16xf32>, vector<24x16xf32> -> vector<24x16xf32>
    %200 = arith.addf %182, %199 : vector<24x16xf32>
    %c1_211 = arith.constant 1 : index
    %c5_212 = arith.constant 5 : index
    %c0_213 = arith.constant 0 : index
    %201 = vector.load %arg12[%c1_211, %c5_212, %c0_213] : memref<4x32x8xf32, #tpu.memory_space<vmem>>, vector<1x24x8xf32>
    %202 = vector.shape_cast %201 : vector<1x24x8xf32> to vector<24x8xf32>
    %cst_214 = arith.constant dense<0.000000e+00> : vector<24x16xf32>
    %203 = tpu.matmul %202, %196, %cst_214 {dimension_numbers = #tpu.dot_dimension_numbers<[1], [0], [0], [1], [0, 0, 1, 1], [], []>} : vector<24x8xf32>, vector<8x16xf32>, vector<24x16xf32> -> vector<24x16xf32>
    %204 = arith.addf %186, %203 : vector<24x16xf32>
    %c2_215 = arith.constant 2 : index
    %c5_216 = arith.constant 5 : index
    %c0_217 = arith.constant 0 : index
    %205 = vector.load %arg12[%c2_215, %c5_216, %c0_217] : memref<4x32x8xf32, #tpu.memory_space<vmem>>, vector<1x24x8xf32>
    %206 = vector.shape_cast %205 : vector<1x24x8xf32> to vector<24x8xf32>
    %cst_218 = arith.constant dense<0.000000e+00> : vector<24x16xf32>
    %207 = tpu.matmul %206, %196, %cst_218 {dimension_numbers = #tpu.dot_dimension_numbers<[1], [0], [0], [1], [0, 0, 1, 1], [], []>} : vector<24x8xf32>, vector<8x16xf32>, vector<24x16xf32> -> vector<24x16xf32>
    %208 = arith.addf %190, %207 : vector<24x16xf32>
    %c3_219 = arith.constant 3 : index
    %c5_220 = arith.constant 5 : index
    %c0_221 = arith.constant 0 : index
    %209 = vector.load %arg12[%c3_219, %c5_220, %c0_221] : memref<4x32x8xf32, #tpu.memory_space<vmem>>, vector<1x24x8xf32>
    %210 = vector.shape_cast %209 : vector<1x24x8xf32> to vector<24x8xf32>
    %cst_222 = arith.constant dense<0.000000e+00> : vector<24x16xf32>
    %211 = tpu.matmul %210, %196, %cst_222 {dimension_numbers = #tpu.dot_dimension_numbers<[1], [0], [0], [1], [0, 0, 1, 1], [], []>} : vector<24x8xf32>, vector<8x16xf32>, vector<24x16xf32> -> vector<24x16xf32>
    %212 = arith.addf %194, %211 : vector<24x16xf32>
    %c7 = arith.constant 7 : index
    %c0_223 = arith.constant 0 : index
    %c0_224 = arith.constant 0 : index
    %213 = vector.load %arg4[%c7, %c0_223, %c0_224] : memref<9x8x16xf32, #tpu.memory_space<vmem>>, vector<1x8x16xf32>
    %214 = vector.shape_cast %213 : vector<1x8x16xf32> to vector<8x16xf32>
    %c1_225 = arith.constant 1 : index
    %c5_226 = arith.constant 5 : index
    %c0_227 = arith.constant 0 : index
    %215 = vector.load %arg12[%c1_225, %c5_226, %c0_227] : memref<4x32x8xf32, #tpu.memory_space<vmem>>, vector<1x24x8xf32>
    %216 = vector.shape_cast %215 : vector<1x24x8xf32> to vector<24x8xf32>
    %cst_228 = arith.constant dense<0.000000e+00> : vector<24x16xf32>
    %217 = tpu.matmul %216, %214, %cst_228 {dimension_numbers = #tpu.dot_dimension_numbers<[1], [0], [0], [1], [0, 0, 1, 1], [], []>} : vector<24x8xf32>, vector<8x16xf32>, vector<24x16xf32> -> vector<24x16xf32>
    %218 = arith.addf %200, %217 : vector<24x16xf32>
    %c0_229 = arith.constant 0 : index
    %c6_230 = arith.constant 6 : index
    %c0_231 = arith.constant 0 : index
    %219 = vector.load %arg12[%c0_229, %c6_230, %c0_231] : memref<4x32x8xf32, #tpu.memory_space<vmem>>, vector<1x24x8xf32>
    %220 = vector.shape_cast %219 : vector<1x24x8xf32> to vector<24x8xf32>
    %cst_232 = arith.constant dense<0.000000e+00> : vector<24x16xf32>
    %221 = tpu.matmul %220, %214, %cst_232 {dimension_numbers = #tpu.dot_dimension_numbers<[1], [0], [0], [1], [0, 0, 1, 1], [], []>} : vector<24x8xf32>, vector<8x16xf32>, vector<24x16xf32> -> vector<24x16xf32>
    %222 = arith.addf %204, %221 : vector<24x16xf32>
    %c3_233 = arith.constant 3 : index
    %c5_234 = arith.constant 5 : index
    %c0_235 = arith.constant 0 : index
    %223 = vector.load %arg12[%c3_233, %c5_234, %c0_235] : memref<4x32x8xf32, #tpu.memory_space<vmem>>, vector<1x24x8xf32>
    %224 = vector.shape_cast %223 : vector<1x24x8xf32> to vector<24x8xf32>
    %cst_236 = arith.constant dense<0.000000e+00> : vector<24x16xf32>
    %225 = tpu.matmul %224, %214, %cst_236 {dimension_numbers = #tpu.dot_dimension_numbers<[1], [0], [0], [1], [0, 0, 1, 1], [], []>} : vector<24x8xf32>, vector<8x16xf32>, vector<24x16xf32> -> vector<24x16xf32>
    %226 = arith.addf %208, %225 : vector<24x16xf32>
    %c2_237 = arith.constant 2 : index
    %c6_238 = arith.constant 6 : index
    %c0_239 = arith.constant 0 : index
    %227 = vector.load %arg12[%c2_237, %c6_238, %c0_239] : memref<4x32x8xf32, #tpu.memory_space<vmem>>, vector<1x24x8xf32>
    %228 = vector.shape_cast %227 : vector<1x24x8xf32> to vector<24x8xf32>
    %cst_240 = arith.constant dense<0.000000e+00> : vector<24x16xf32>
    %229 = tpu.matmul %228, %214, %cst_240 {dimension_numbers = #tpu.dot_dimension_numbers<[1], [0], [0], [1], [0, 0, 1, 1], [], []>} : vector<24x8xf32>, vector<8x16xf32>, vector<24x16xf32> -> vector<24x16xf32>
    %230 = arith.addf %212, %229 : vector<24x16xf32>
    %c8_241 = arith.constant 8 : index
    %c0_242 = arith.constant 0 : index
    %c0_243 = arith.constant 0 : index
    %231 = vector.load %arg4[%c8_241, %c0_242, %c0_243] : memref<9x8x16xf32, #tpu.memory_space<vmem>>, vector<1x8x16xf32>
    %232 = vector.shape_cast %231 : vector<1x8x16xf32> to vector<8x16xf32>
    %c0_244 = arith.constant 0 : index
    %c6_245 = arith.constant 6 : index
    %c0_246 = arith.constant 0 : index
    %233 = vector.load %arg12[%c0_244, %c6_245, %c0_246] : memref<4x32x8xf32, #tpu.memory_space<vmem>>, vector<1x24x8xf32>
    %234 = vector.shape_cast %233 : vector<1x24x8xf32> to vector<24x8xf32>
    %cst_247 = arith.constant dense<0.000000e+00> : vector<24x16xf32>
    %235 = tpu.matmul %234, %232, %cst_247 {dimension_numbers = #tpu.dot_dimension_numbers<[1], [0], [0], [1], [0, 0, 1, 1], [], []>} : vector<24x8xf32>, vector<8x16xf32>, vector<24x16xf32> -> vector<24x16xf32>
    %236 = arith.addf %218, %235 : vector<24x16xf32>
    %c1_248 = arith.constant 1 : index
    %c6_249 = arith.constant 6 : index
    %c0_250 = arith.constant 0 : index
    %237 = vector.load %arg12[%c1_248, %c6_249, %c0_250] : memref<4x32x8xf32, #tpu.memory_space<vmem>>, vector<1x24x8xf32>
    %238 = vector.shape_cast %237 : vector<1x24x8xf32> to vector<24x8xf32>
    %cst_251 = arith.constant dense<0.000000e+00> : vector<24x16xf32>
    %239 = tpu.matmul %238, %232, %cst_251 {dimension_numbers = #tpu.dot_dimension_numbers<[1], [0], [0], [1], [0, 0, 1, 1], [], []>} : vector<24x8xf32>, vector<8x16xf32>, vector<24x16xf32> -> vector<24x16xf32>
    %240 = arith.addf %222, %239 : vector<24x16xf32>
    %c2_252 = arith.constant 2 : index
    %c6_253 = arith.constant 6 : index
    %c0_254 = arith.constant 0 : index
    %241 = vector.load %arg12[%c2_252, %c6_253, %c0_254] : memref<4x32x8xf32, #tpu.memory_space<vmem>>, vector<1x24x8xf32>
    %242 = vector.shape_cast %241 : vector<1x24x8xf32> to vector<24x8xf32>
    %cst_255 = arith.constant dense<0.000000e+00> : vector<24x16xf32>
    %243 = tpu.matmul %242, %232, %cst_255 {dimension_numbers = #tpu.dot_dimension_numbers<[1], [0], [0], [1], [0, 0, 1, 1], [], []>} : vector<24x8xf32>, vector<8x16xf32>, vector<24x16xf32> -> vector<24x16xf32>
    %244 = arith.addf %226, %243 : vector<24x16xf32>
    %c3_256 = arith.constant 3 : index
    %c6_257 = arith.constant 6 : index
    %c0_258 = arith.constant 0 : index
    %245 = vector.load %arg12[%c3_256, %c6_257, %c0_258] : memref<4x32x8xf32, #tpu.memory_space<vmem>>, vector<1x24x8xf32>
    %246 = vector.shape_cast %245 : vector<1x24x8xf32> to vector<24x8xf32>
    %cst_259 = arith.constant dense<0.000000e+00> : vector<24x16xf32>
    %247 = tpu.matmul %246, %232, %cst_259 {dimension_numbers = #tpu.dot_dimension_numbers<[1], [0], [0], [1], [0, 0, 1, 1], [], []>} : vector<24x8xf32>, vector<8x16xf32>, vector<24x16xf32> -> vector<24x16xf32>
    %248 = arith.addf %230, %247 : vector<24x16xf32>
    %249 = arith.maximumf %236, %240 : vector<24x16xf32>
    %250 = arith.maximumf %244, %248 : vector<24x16xf32>
    %251 = arith.maximumf %249, %250 : vector<24x16xf32>
    %c0_260 = arith.constant 0 : index
    %c0_261 = arith.constant 0 : index
    %252 = vector.load %arg5[%c0_260, %c0_261] : memref<1x16xf32, #tpu.memory_space<vmem>>, vector<1x16xf32>
    %253 = vector.broadcast %252 : vector<1x16xf32> to vector<24x16xf32>
    %254 = arith.addf %251, %253 : vector<24x16xf32>
    %cst_262 = arith.constant 0.000000e+00 : f32
    %255 = vector.broadcast %cst_262 : f32 to vector<24x16xf32>
    %256 = arith.maximumf %254, %255 : vector<24x16xf32>
    %c0_263 = arith.constant 0 : index
    %c0_264 = arith.constant 0 : index
    %257 = vector.load %arg13[%c0_263, %c0_264] : memref<24x16xf32, #tpu.memory_space<vmem>>, vector<24x16xf32>
    tpu.vector_store %arg13[%c0_263, %c0_264], %256 {strides = array<i32>} : memref<24x16xf32, #tpu.memory_space<vmem>>, vector<24x16xf32>,
    %cst_265 = arith.constant 0.000000e+00 : f32
    %258 = vector.broadcast %cst_265 : f32 to vector<4x16x16xf32>
    %c0_266 = arith.constant 0 : index
    %c0_267 = arith.constant 0 : index
    %c0_268 = arith.constant 0 : index
    %259 = vector.load %arg14[%c0_266, %c0_267, %c0_268] : memref<4x16x16xf32, #tpu.memory_space<vmem>>, vector<4x16x16xf32>
    tpu.vector_store %arg14[%c0_266, %c0_267, %c0_268], %258 {strides = array<i32>} : memref<4x16x16xf32, #tpu.memory_space<vmem>>, vector<4x16x16xf32>,
    %c6_269 = arith.constant 6 : index
    %c0_270 = arith.constant 0 : index
    %260 = tpu.strided_load %arg13[%c6_269, %c0_270] {strides = array<i32: 2, 1>} : memref<24x16xf32, #tpu.memory_space<vmem>>, vector<2x16xf32>
    %c0_271 = arith.constant 0 : index
    %c4_272 = arith.constant 4 : index
    %c0_273 = arith.constant 0 : index
    %261 = vector.load %arg14[%c0_271, %c4_272, %c0_273] : memref<4x16x16xf32, #tpu.memory_space<vmem>>, vector<1x2x16xf32>
    %262 = vector.shape_cast %261 : vector<1x2x16xf32> to vector<2x16xf32>
    %263 = vector.shape_cast %260 : vector<2x16xf32> to vector<1x2x16xf32>
    tpu.vector_store %arg14[%c0_271, %c4_272, %c0_273], %263 {strides = array<i32>} : memref<4x16x16xf32, #tpu.memory_space<vmem>>, vector<1x2x16xf32>,
    %c16_274 = arith.constant 16 : index
    %c0_275 = arith.constant 0 : index
    %264 = tpu.strided_load %arg13[%c16_274, %c0_275] {strides = array<i32: 2, 1>} : memref<24x16xf32, #tpu.memory_space<vmem>>, vector<2x16xf32>
    %c0_276 = arith.constant 0 : index
    %c7_277 = arith.constant 7 : index
    %c0_278 = arith.constant 0 : index
    %265 = vector.load %arg14[%c0_276, %c7_277, %c0_278] : memref<4x16x16xf32, #tpu.memory_space<vmem>>, vector<1x2x16xf32>
    %266 = vector.shape_cast %265 : vector<1x2x16xf32> to vector<2x16xf32>
    %267 = vector.shape_cast %264 : vector<2x16xf32> to vector<1x2x16xf32>
    tpu.vector_store %arg14[%c0_276, %c7_277, %c0_278], %267 {strides = array<i32>} : memref<4x16x16xf32, #tpu.memory_space<vmem>>, vector<1x2x16xf32>,
    %c5_279 = arith.constant 5 : index
    %c0_280 = arith.constant 0 : index
    %268 = tpu.strided_load %arg13[%c5_279, %c0_280] {strides = array<i32: 2, 1>} : memref<24x16xf32, #tpu.memory_space<vmem>>, vector<2x16xf32>
    %c1_281 = arith.constant 1 : index
    %c3_282 = arith.constant 3 : index
    %c0_283 = arith.constant 0 : index
    %269 = vector.load %arg14[%c1_281, %c3_282, %c0_283] : memref<4x16x16xf32, #tpu.memory_space<vmem>>, vector<1x2x16xf32>
    %270 = vector.shape_cast %269 : vector<1x2x16xf32> to vector<2x16xf32>
    %271 = vector.shape_cast %268 : vector<2x16xf32> to vector<1x2x16xf32>
    tpu.vector_store %arg14[%c1_281, %c3_282, %c0_283], %271 {strides = array<i32>} : memref<4x16x16xf32, #tpu.memory_space<vmem>>, vector<1x2x16xf32>,
    %c15_284 = arith.constant 15 : index
    %c0_285 = arith.constant 0 : index
    %272 = tpu.strided_load %arg13[%c15_284, %c0_285] {strides = array<i32: 2, 1>} : memref<24x16xf32, #tpu.memory_space<vmem>>, vector<2x16xf32>
    %c1_286 = arith.constant 1 : index
    %c6_287 = arith.constant 6 : index
    %c0_288 = arith.constant 0 : index
    %273 = vector.load %arg14[%c1_286, %c6_287, %c0_288] : memref<4x16x16xf32, #tpu.memory_space<vmem>>, vector<1x2x16xf32>
    %274 = vector.shape_cast %273 : vector<1x2x16xf32> to vector<2x16xf32>
    %275 = vector.shape_cast %272 : vector<2x16xf32> to vector<1x2x16xf32>
    tpu.vector_store %arg14[%c1_286, %c6_287, %c0_288], %275 {strides = array<i32>} : memref<4x16x16xf32, #tpu.memory_space<vmem>>, vector<1x2x16xf32>,
    %c1_289 = arith.constant 1 : index
    %c0_290 = arith.constant 0 : index
    %276 = tpu.strided_load %arg13[%c1_289, %c0_290] {strides = array<i32: 2, 1>} : memref<24x16xf32, #tpu.memory_space<vmem>>, vector<2x16xf32>
    %c2_291 = arith.constant 2 : index
    %c1_292 = arith.constant 1 : index
    %c0_293 = arith.constant 0 : index
    %277 = vector.load %arg14[%c2_291, %c1_292, %c0_293] : memref<4x16x16xf32, #tpu.memory_space<vmem>>, vector<1x2x16xf32>
    %278 = vector.shape_cast %277 : vector<1x2x16xf32> to vector<2x16xf32>
    %279 = vector.shape_cast %276 : vector<2x16xf32> to vector<1x2x16xf32>
    tpu.vector_store %arg14[%c2_291, %c1_292, %c0_293], %279 {strides = array<i32>} : memref<4x16x16xf32, #tpu.memory_space<vmem>>, vector<1x2x16xf32>,
    %c11_294 = arith.constant 11 : index
    %c0_295 = arith.constant 0 : index
    %280 = tpu.strided_load %arg13[%c11_294, %c0_295] {strides = array<i32: 2, 1>} : memref<24x16xf32, #tpu.memory_space<vmem>>, vector<2x16xf32>
    %c2_296 = arith.constant 2 : index
    %c4_297 = arith.constant 4 : index
    %c0_298 = arith.constant 0 : index
    %281 = vector.load %arg14[%c2_296, %c4_297, %c0_298] : memref<4x16x16xf32, #tpu.memory_space<vmem>>, vector<1x2x16xf32>
    %282 = vector.shape_cast %281 : vector<1x2x16xf32> to vector<2x16xf32>
    %283 = vector.shape_cast %280 : vector<2x16xf32> to vector<1x2x16xf32>
    tpu.vector_store %arg14[%c2_296, %c4_297, %c0_298], %283 {strides = array<i32>} : memref<4x16x16xf32, #tpu.memory_space<vmem>>, vector<1x2x16xf32>,
    %c0_299 = arith.constant 0 : index
    %c0_300 = arith.constant 0 : index
    %284 = tpu.strided_load %arg13[%c0_299, %c0_300] {strides = array<i32: 2, 1>} : memref<24x16xf32, #tpu.memory_space<vmem>>, vector<2x16xf32>
    %c3_301 = arith.constant 3 : index
    %c0_302 = arith.constant 0 : index
    %c0_303 = arith.constant 0 : index
    %285 = vector.load %arg14[%c3_301, %c0_302, %c0_303] : memref<4x16x16xf32, #tpu.memory_space<vmem>>, vector<1x2x16xf32>
    %286 = vector.shape_cast %285 : vector<1x2x16xf32> to vector<2x16xf32>
    %287 = vector.shape_cast %284 : vector<2x16xf32> to vector<1x2x16xf32>
    tpu.vector_store %arg14[%c3_301, %c0_302, %c0_303], %287 {strides = array<i32>} : memref<4x16x16xf32, #tpu.memory_space<vmem>>, vector<1x2x16xf32>,
    %c10_304 = arith.constant 10 : index
    %c0_305 = arith.constant 0 : index
    %288 = tpu.strided_load %arg13[%c10_304, %c0_305] {strides = array<i32: 2, 1>} : memref<24x16xf32, #tpu.memory_space<vmem>>, vector<2x16xf32>
    %c3_306 = arith.constant 3 : index
    %c3_307 = arith.constant 3 : index
    %c0_308 = arith.constant 0 : index
    %289 = vector.load %arg14[%c3_306, %c3_307, %c0_308] : memref<4x16x16xf32, #tpu.memory_space<vmem>>, vector<1x2x16xf32>
    %290 = vector.shape_cast %289 : vector<1x2x16xf32> to vector<2x16xf32>
    %291 = vector.shape_cast %288 : vector<2x16xf32> to vector<1x2x16xf32>
    tpu.vector_store %arg14[%c3_306, %c3_307, %c0_308], %291 {strides = array<i32>} : memref<4x16x16xf32, #tpu.memory_space<vmem>>, vector<1x2x16xf32>,
    %c0_309 = arith.constant 0 : index
    %c0_310 = arith.constant 0 : index
    %c0_311 = arith.constant 0 : index
    %292 = vector.load %arg6[%c0_309, %c0_310, %c0_311] : memref<9x16x32xf32, #tpu.memory_space<vmem>>, vector<1x16x32xf32>
    %293 = vector.shape_cast %292 : vector<1x16x32xf32> to vector<16x32xf32>
    %c0_312 = arith.constant 0 : index
    %c0_313 = arith.constant 0 : index
    %c0_314 = arith.constant 0 : index
    %294 = vector.load %arg14[%c0_312, %c0_313, %c0_314] : memref<4x16x16xf32, #tpu.memory_space<vmem>>, vector<1x8x16xf32>
    %295 = vector.shape_cast %294 : vector<1x8x16xf32> to vector<8x16xf32>
    %cst_315 = arith.constant dense<0.000000e+00> : vector<8x32xf32>
    %296 = tpu.matmul %295, %293, %cst_315 {dimension_numbers = #tpu.dot_dimension_numbers<[1], [0], [0], [1], [0, 0, 1, 1], [], []>} : vector<8x16xf32>, vector<16x32xf32>, vector<8x32xf32> -> vector<8x32xf32>
    %c1_316 = arith.constant 1 : index
    %c0_317 = arith.constant 0 : index
    %c0_318 = arith.constant 0 : index
    %297 = vector.load %arg14[%c1_316, %c0_317, %c0_318] : memref<4x16x16xf32, #tpu.memory_space<vmem>>, vector<1x8x16xf32>
    %298 = vector.shape_cast %297 : vector<1x8x16xf32> to vector<8x16xf32>
    %cst_319 = arith.constant dense<0.000000e+00> : vector<8x32xf32>
    %299 = tpu.matmul %298, %293, %cst_319 {dimension_numbers = #tpu.dot_dimension_numbers<[1], [0], [0], [1], [0, 0, 1, 1], [], []>} : vector<8x16xf32>, vector<16x32xf32>, vector<8x32xf32> -> vector<8x32xf32>
    %c2_320 = arith.constant 2 : index
    %c0_321 = arith.constant 0 : index
    %c0_322 = arith.constant 0 : index
    %300 = vector.load %arg14[%c2_320, %c0_321, %c0_322] : memref<4x16x16xf32, #tpu.memory_space<vmem>>, vector<1x8x16xf32>
    %301 = vector.shape_cast %300 : vector<1x8x16xf32> to vector<8x16xf32>
    %cst_323 = arith.constant dense<0.000000e+00> : vector<8x32xf32>
    %302 = tpu.matmul %301, %293, %cst_323 {dimension_numbers = #tpu.dot_dimension_numbers<[1], [0], [0], [1], [0, 0, 1, 1], [], []>} : vector<8x16xf32>, vector<16x32xf32>, vector<8x32xf32> -> vector<8x32xf32>
    %c3_324 = arith.constant 3 : index
    %c0_325 = arith.constant 0 : index
    %c0_326 = arith.constant 0 : index
    %303 = vector.load %arg14[%c3_324, %c0_325, %c0_326] : memref<4x16x16xf32, #tpu.memory_space<vmem>>, vector<1x8x16xf32>
    %304 = vector.shape_cast %303 : vector<1x8x16xf32> to vector<8x16xf32>
    %cst_327 = arith.constant dense<0.000000e+00> : vector<8x32xf32>
    %305 = tpu.matmul %304, %293, %cst_327 {dimension_numbers = #tpu.dot_dimension_numbers<[1], [0], [0], [1], [0, 0, 1, 1], [], []>} : vector<8x16xf32>, vector<16x32xf32>, vector<8x32xf32> -> vector<8x32xf32>
    %c1_328 = arith.constant 1 : index
    %c0_329 = arith.constant 0 : index
    %c0_330 = arith.constant 0 : index
    %306 = vector.load %arg6[%c1_328, %c0_329, %c0_330] : memref<9x16x32xf32, #tpu.memory_space<vmem>>, vector<1x16x32xf32>
    %307 = vector.shape_cast %306 : vector<1x16x32xf32> to vector<16x32xf32>
    %c1_331 = arith.constant 1 : index
    %c0_332 = arith.constant 0 : index
    %c0_333 = arith.constant 0 : index
    %308 = vector.load %arg14[%c1_331, %c0_332, %c0_333] : memref<4x16x16xf32, #tpu.memory_space<vmem>>, vector<1x8x16xf32>
    %309 = vector.shape_cast %308 : vector<1x8x16xf32> to vector<8x16xf32>
    %cst_334 = arith.constant dense<0.000000e+00> : vector<8x32xf32>
    %310 = tpu.matmul %309, %307, %cst_334 {dimension_numbers = #tpu.dot_dimension_numbers<[1], [0], [0], [1], [0, 0, 1, 1], [], []>} : vector<8x16xf32>, vector<16x32xf32>, vector<8x32xf32> -> vector<8x32xf32>
    %311 = arith.addf %296, %310 : vector<8x32xf32>
    %c0_335 = arith.constant 0 : index
    %c1_336 = arith.constant 1 : index
    %c0_337 = arith.constant 0 : index
    %312 = vector.load %arg14[%c0_335, %c1_336, %c0_337] : memref<4x16x16xf32, #tpu.memory_space<vmem>>, vector<1x8x16xf32>
    %313 = vector.shape_cast %312 : vector<1x8x16xf32> to vector<8x16xf32>
    %cst_338 = arith.constant dense<0.000000e+00> : vector<8x32xf32>
    %314 = tpu.matmul %313, %307, %cst_338 {dimension_numbers = #tpu.dot_dimension_numbers<[1], [0], [0], [1], [0, 0, 1, 1], [], []>} : vector<8x16xf32>, vector<16x32xf32>, vector<8x32xf32> -> vector<8x32xf32>
    %315 = arith.addf %299, %314 : vector<8x32xf32>
    %c3_339 = arith.constant 3 : index
    %c0_340 = arith.constant 0 : index
    %c0_341 = arith.constant 0 : index
    %316 = vector.load %arg14[%c3_339, %c0_340, %c0_341] : memref<4x16x16xf32, #tpu.memory_space<vmem>>, vector<1x8x16xf32>
    %317 = vector.shape_cast %316 : vector<1x8x16xf32> to vector<8x16xf32>
    %cst_342 = arith.constant dense<0.000000e+00> : vector<8x32xf32>
    %318 = tpu.matmul %317, %307, %cst_342 {dimension_numbers = #tpu.dot_dimension_numbers<[1], [0], [0], [1], [0, 0, 1, 1], [], []>} : vector<8x16xf32>, vector<16x32xf32>, vector<8x32xf32> -> vector<8x32xf32>
    %319 = arith.addf %302, %318 : vector<8x32xf32>
    %c2_343 = arith.constant 2 : index
    %c1_344 = arith.constant 1 : index
    %c0_345 = arith.constant 0 : index
    %320 = vector.load %arg14[%c2_343, %c1_344, %c0_345] : memref<4x16x16xf32, #tpu.memory_space<vmem>>, vector<1x8x16xf32>
    %321 = vector.shape_cast %320 : vector<1x8x16xf32> to vector<8x16xf32>
    %cst_346 = arith.constant dense<0.000000e+00> : vector<8x32xf32>
    %322 = tpu.matmul %321, %307, %cst_346 {dimension_numbers = #tpu.dot_dimension_numbers<[1], [0], [0], [1], [0, 0, 1, 1], [], []>} : vector<8x16xf32>, vector<16x32xf32>, vector<8x32xf32> -> vector<8x32xf32>
    %323 = arith.addf %305, %322 : vector<8x32xf32>
    %c2_347 = arith.constant 2 : index
    %c0_348 = arith.constant 0 : index
    %c0_349 = arith.constant 0 : index
    %324 = vector.load %arg6[%c2_347, %c0_348, %c0_349] : memref<9x16x32xf32, #tpu.memory_space<vmem>>, vector<1x16x32xf32>
    %325 = vector.shape_cast %324 : vector<1x16x32xf32> to vector<16x32xf32>
    %c0_350 = arith.constant 0 : index
    %c1_351 = arith.constant 1 : index
    %c0_352 = arith.constant 0 : index
    %326 = vector.load %arg14[%c0_350, %c1_351, %c0_352] : memref<4x16x16xf32, #tpu.memory_space<vmem>>, vector<1x8x16xf32>
    %327 = vector.shape_cast %326 : vector<1x8x16xf32> to vector<8x16xf32>
    %cst_353 = arith.constant dense<0.000000e+00> : vector<8x32xf32>
    %328 = tpu.matmul %327, %325, %cst_353 {dimension_numbers = #tpu.dot_dimension_numbers<[1], [0], [0], [1], [0, 0, 1, 1], [], []>} : vector<8x16xf32>, vector<16x32xf32>, vector<8x32xf32> -> vector<8x32xf32>
    %329 = arith.addf %311, %328 : vector<8x32xf32>
    %c1_354 = arith.constant 1 : index
    %c1_355 = arith.constant 1 : index
    %c0_356 = arith.constant 0 : index
    %330 = vector.load %arg14[%c1_354, %c1_355, %c0_356] : memref<4x16x16xf32, #tpu.memory_space<vmem>>, vector<1x8x16xf32>
    %331 = vector.shape_cast %330 : vector<1x8x16xf32> to vector<8x16xf32>
    %cst_357 = arith.constant dense<0.000000e+00> : vector<8x32xf32>
    %332 = tpu.matmul %331, %325, %cst_357 {dimension_numbers = #tpu.dot_dimension_numbers<[1], [0], [0], [1], [0, 0, 1, 1], [], []>} : vector<8x16xf32>, vector<16x32xf32>, vector<8x32xf32> -> vector<8x32xf32>
    %333 = arith.addf %315, %332 : vector<8x32xf32>
    %c2_358 = arith.constant 2 : index
    %c1_359 = arith.constant 1 : index
    %c0_360 = arith.constant 0 : index
    %334 = vector.load %arg14[%c2_358, %c1_359, %c0_360] : memref<4x16x16xf32, #tpu.memory_space<vmem>>, vector<1x8x16xf32>
    %335 = vector.shape_cast %334 : vector<1x8x16xf32> to vector<8x16xf32>
    %cst_361 = arith.constant dense<0.000000e+00> : vector<8x32xf32>
    %336 = tpu.matmul %335, %325, %cst_361 {dimension_numbers = #tpu.dot_dimension_numbers<[1], [0], [0], [1], [0, 0, 1, 1], [], []>} : vector<8x16xf32>, vector<16x32xf32>, vector<8x32xf32> -> vector<8x32xf32>
    %337 = arith.addf %319, %336 : vector<8x32xf32>
    %c3_362 = arith.constant 3 : index
    %c1_363 = arith.constant 1 : index
    %c0_364 = arith.constant 0 : index
    %338 = vector.load %arg14[%c3_362, %c1_363, %c0_364] : memref<4x16x16xf32, #tpu.memory_space<vmem>>, vector<1x8x16xf32>
    %339 = vector.shape_cast %338 : vector<1x8x16xf32> to vector<8x16xf32>
    %cst_365 = arith.constant dense<0.000000e+00> : vector<8x32xf32>
    %340 = tpu.matmul %339, %325, %cst_365 {dimension_numbers = #tpu.dot_dimension_numbers<[1], [0], [0], [1], [0, 0, 1, 1], [], []>} : vector<8x16xf32>, vector<16x32xf32>, vector<8x32xf32> -> vector<8x32xf32>
    %341 = arith.addf %323, %340 : vector<8x32xf32>
    %c3_366 = arith.constant 3 : index
    %c0_367 = arith.constant 0 : index
    %c0_368 = arith.constant 0 : index
    %342 = vector.load %arg6[%c3_366, %c0_367, %c0_368] : memref<9x16x32xf32, #tpu.memory_space<vmem>>, vector<1x16x32xf32>
    %343 = vector.shape_cast %342 : vector<1x16x32xf32> to vector<16x32xf32>
    %c2_369 = arith.constant 2 : index
    %c0_370 = arith.constant 0 : index
    %c0_371 = arith.constant 0 : index
    %344 = vector.load %arg14[%c2_369, %c0_370, %c0_371] : memref<4x16x16xf32, #tpu.memory_space<vmem>>, vector<1x8x16xf32>
    %345 = vector.shape_cast %344 : vector<1x8x16xf32> to vector<8x16xf32>
    %cst_372 = arith.constant dense<0.000000e+00> : vector<8x32xf32>
    %346 = tpu.matmul %345, %343, %cst_372 {dimension_numbers = #tpu.dot_dimension_numbers<[1], [0], [0], [1], [0, 0, 1, 1], [], []>} : vector<8x16xf32>, vector<16x32xf32>, vector<8x32xf32> -> vector<8x32xf32>
    %347 = arith.addf %329, %346 : vector<8x32xf32>
    %c3_373 = arith.constant 3 : index
    %c0_374 = arith.constant 0 : index
    %c0_375 = arith.constant 0 : index
    %348 = vector.load %arg14[%c3_373, %c0_374, %c0_375] : memref<4x16x16xf32, #tpu.memory_space<vmem>>, vector<1x8x16xf32>
    %349 = vector.shape_cast %348 : vector<1x8x16xf32> to vector<8x16xf32>
    %cst_376 = arith.constant dense<0.000000e+00> : vector<8x32xf32>
    %350 = tpu.matmul %349, %343, %cst_376 {dimension_numbers = #tpu.dot_dimension_numbers<[1], [0], [0], [1], [0, 0, 1, 1], [], []>} : vector<8x16xf32>, vector<16x32xf32>, vector<8x32xf32> -> vector<8x32xf32>
    %351 = arith.addf %333, %350 : vector<8x32xf32>
    %c0_377 = arith.constant 0 : index
    %c3_378 = arith.constant 3 : index
    %c0_379 = arith.constant 0 : index
    %352 = vector.load %arg14[%c0_377, %c3_378, %c0_379] : memref<4x16x16xf32, #tpu.memory_space<vmem>>, vector<1x8x16xf32>
    %353 = vector.shape_cast %352 : vector<1x8x16xf32> to vector<8x16xf32>
    %cst_380 = arith.constant dense<0.000000e+00> : vector<8x32xf32>
    %354 = tpu.matmul %353, %343, %cst_380 {dimension_numbers = #tpu.dot_dimension_numbers<[1], [0], [0], [1], [0, 0, 1, 1], [], []>} : vector<8x16xf32>, vector<16x32xf32>, vector<8x32xf32> -> vector<8x32xf32>
    %355 = arith.addf %337, %354 : vector<8x32xf32>
    %c1_381 = arith.constant 1 : index
    %c3_382 = arith.constant 3 : index
    %c0_383 = arith.constant 0 : index
    %356 = vector.load %arg14[%c1_381, %c3_382, %c0_383] : memref<4x16x16xf32, #tpu.memory_space<vmem>>, vector<1x8x16xf32>
    %357 = vector.shape_cast %356 : vector<1x8x16xf32> to vector<8x16xf32>
    %cst_384 = arith.constant dense<0.000000e+00> : vector<8x32xf32>
    %358 = tpu.matmul %357, %343, %cst_384 {dimension_numbers = #tpu.dot_dimension_numbers<[1], [0], [0], [1], [0, 0, 1, 1], [], []>} : vector<8x16xf32>, vector<16x32xf32>, vector<8x32xf32> -> vector<8x32xf32>
    %359 = arith.addf %341, %358 : vector<8x32xf32>
    %c4_385 = arith.constant 4 : index
    %c0_386 = arith.constant 0 : index
    %c0_387 = arith.constant 0 : index
    %360 = vector.load %arg6[%c4_385, %c0_386, %c0_387] : memref<9x16x32xf32, #tpu.memory_space<vmem>>, vector<1x16x32xf32>
    %361 = vector.shape_cast %360 : vector<1x16x32xf32> to vector<16x32xf32>
    %c3_388 = arith.constant 3 : index
    %c0_389 = arith.constant 0 : index
    %c0_390 = arith.constant 0 : index
    %362 = vector.load %arg14[%c3_388, %c0_389, %c0_390] : memref<4x16x16xf32, #tpu.memory_space<vmem>>, vector<1x8x16xf32>
    %363 = vector.shape_cast %362 : vector<1x8x16xf32> to vector<8x16xf32>
    %cst_391 = arith.constant dense<0.000000e+00> : vector<8x32xf32>
    %364 = tpu.matmul %363, %361, %cst_391 {dimension_numbers = #tpu.dot_dimension_numbers<[1], [0], [0], [1], [0, 0, 1, 1], [], []>} : vector<8x16xf32>, vector<16x32xf32>, vector<8x32xf32> -> vector<8x32xf32>
    %365 = arith.addf %347, %364 : vector<8x32xf32>
    %c2_392 = arith.constant 2 : index
    %c1_393 = arith.constant 1 : index
    %c0_394 = arith.constant 0 : index
    %366 = vector.load %arg14[%c2_392, %c1_393, %c0_394] : memref<4x16x16xf32, #tpu.memory_space<vmem>>, vector<1x8x16xf32>
    %367 = vector.shape_cast %366 : vector<1x8x16xf32> to vector<8x16xf32>
    %cst_395 = arith.constant dense<0.000000e+00> : vector<8x32xf32>
    %368 = tpu.matmul %367, %361, %cst_395 {dimension_numbers = #tpu.dot_dimension_numbers<[1], [0], [0], [1], [0, 0, 1, 1], [], []>} : vector<8x16xf32>, vector<16x32xf32>, vector<8x32xf32> -> vector<8x32xf32>
    %369 = arith.addf %351, %368 : vector<8x32xf32>
    %c1_396 = arith.constant 1 : index
    %c3_397 = arith.constant 3 : index
    %c0_398 = arith.constant 0 : index
    %370 = vector.load %arg14[%c1_396, %c3_397, %c0_398] : memref<4x16x16xf32, #tpu.memory_space<vmem>>, vector<1x8x16xf32>
    %371 = vector.shape_cast %370 : vector<1x8x16xf32> to vector<8x16xf32>
    %cst_399 = arith.constant dense<0.000000e+00> : vector<8x32xf32>
    %372 = tpu.matmul %371, %361, %cst_399 {dimension_numbers = #tpu.dot_dimension_numbers<[1], [0], [0], [1], [0, 0, 1, 1], [], []>} : vector<8x16xf32>, vector<16x32xf32>, vector<8x32xf32> -> vector<8x32xf32>
    %373 = arith.addf %355, %372 : vector<8x32xf32>
    %c0_400 = arith.constant 0 : index
    %c4_401 = arith.constant 4 : index
    %c0_402 = arith.constant 0 : index
    %374 = vector.load %arg14[%c0_400, %c4_401, %c0_402] : memref<4x16x16xf32, #tpu.memory_space<vmem>>, vector<1x8x16xf32>
    %375 = vector.shape_cast %374 : vector<1x8x16xf32> to vector<8x16xf32>
    %cst_403 = arith.constant dense<0.000000e+00> : vector<8x32xf32>
    %376 = tpu.matmul %375, %361, %cst_403 {dimension_numbers = #tpu.dot_dimension_numbers<[1], [0], [0], [1], [0, 0, 1, 1], [], []>} : vector<8x16xf32>, vector<16x32xf32>, vector<8x32xf32> -> vector<8x32xf32>
    %377 = arith.addf %359, %376 : vector<8x32xf32>
    %c5_404 = arith.constant 5 : index
    %c0_405 = arith.constant 0 : index
    %c0_406 = arith.constant 0 : index
    %378 = vector.load %arg6[%c5_404, %c0_405, %c0_406] : memref<9x16x32xf32, #tpu.memory_space<vmem>>, vector<1x16x32xf32>
    %379 = vector.shape_cast %378 : vector<1x16x32xf32> to vector<16x32xf32>
    %c2_407 = arith.constant 2 : index
    %c1_408 = arith.constant 1 : index
    %c0_409 = arith.constant 0 : index
    %380 = vector.load %arg14[%c2_407, %c1_408, %c0_409] : memref<4x16x16xf32, #tpu.memory_space<vmem>>, vector<1x8x16xf32>
    %381 = vector.shape_cast %380 : vector<1x8x16xf32> to vector<8x16xf32>
    %cst_410 = arith.constant dense<0.000000e+00> : vector<8x32xf32>
    %382 = tpu.matmul %381, %379, %cst_410 {dimension_numbers = #tpu.dot_dimension_numbers<[1], [0], [0], [1], [0, 0, 1, 1], [], []>} : vector<8x16xf32>, vector<16x32xf32>, vector<8x32xf32> -> vector<8x32xf32>
    %383 = arith.addf %365, %382 : vector<8x32xf32>
    %c3_411 = arith.constant 3 : index
    %c1_412 = arith.constant 1 : index
    %c0_413 = arith.constant 0 : index
    %384 = vector.load %arg14[%c3_411, %c1_412, %c0_413] : memref<4x16x16xf32, #tpu.memory_space<vmem>>, vector<1x8x16xf32>
    %385 = vector.shape_cast %384 : vector<1x8x16xf32> to vector<8x16xf32>
    %cst_414 = arith.constant dense<0.000000e+00> : vector<8x32xf32>
    %386 = tpu.matmul %385, %379, %cst_414 {dimension_numbers = #tpu.dot_dimension_numbers<[1], [0], [0], [1], [0, 0, 1, 1], [], []>} : vector<8x16xf32>, vector<16x32xf32>, vector<8x32xf32> -> vector<8x32xf32>
    %387 = arith.addf %369, %386 : vector<8x32xf32>
    %c0_415 = arith.constant 0 : index
    %c4_416 = arith.constant 4 : index
    %c0_417 = arith.constant 0 : index
    %388 = vector.load %arg14[%c0_415, %c4_416, %c0_417] : memref<4x16x16xf32, #tpu.memory_space<vmem>>, vector<1x8x16xf32>
    %389 = vector.shape_cast %388 : vector<1x8x16xf32> to vector<8x16xf32>
    %cst_418 = arith.constant dense<0.000000e+00> : vector<8x32xf32>
    %390 = tpu.matmul %389, %379, %cst_418 {dimension_numbers = #tpu.dot_dimension_numbers<[1], [0], [0], [1], [0, 0, 1, 1], [], []>} : vector<8x16xf32>, vector<16x32xf32>, vector<8x32xf32> -> vector<8x32xf32>
    %391 = arith.addf %373, %390 : vector<8x32xf32>
    %c1_419 = arith.constant 1 : index
    %c4_420 = arith.constant 4 : index
    %c0_421 = arith.constant 0 : index
    %392 = vector.load %arg14[%c1_419, %c4_420, %c0_421] : memref<4x16x16xf32, #tpu.memory_space<vmem>>, vector<1x8x16xf32>
    %393 = vector.shape_cast %392 : vector<1x8x16xf32> to vector<8x16xf32>
    %cst_422 = arith.constant dense<0.000000e+00> : vector<8x32xf32>
    %394 = tpu.matmul %393, %379, %cst_422 {dimension_numbers = #tpu.dot_dimension_numbers<[1], [0], [0], [1], [0, 0, 1, 1], [], []>} : vector<8x16xf32>, vector<16x32xf32>, vector<8x32xf32> -> vector<8x32xf32>
    %395 = arith.addf %377, %394 : vector<8x32xf32>
    %c6_423 = arith.constant 6 : index
    %c0_424 = arith.constant 0 : index
    %c0_425 = arith.constant 0 : index
    %396 = vector.load %arg6[%c6_423, %c0_424, %c0_425] : memref<9x16x32xf32, #tpu.memory_space<vmem>>, vector<1x16x32xf32>
    %397 = vector.shape_cast %396 : vector<1x16x32xf32> to vector<16x32xf32>
    %c0_426 = arith.constant 0 : index
    %c3_427 = arith.constant 3 : index
    %c0_428 = arith.constant 0 : index
    %398 = vector.load %arg14[%c0_426, %c3_427, %c0_428] : memref<4x16x16xf32, #tpu.memory_space<vmem>>, vector<1x8x16xf32>
    %399 = vector.shape_cast %398 : vector<1x8x16xf32> to vector<8x16xf32>
    %cst_429 = arith.constant dense<0.000000e+00> : vector<8x32xf32>
    %400 = tpu.matmul %399, %397, %cst_429 {dimension_numbers = #tpu.dot_dimension_numbers<[1], [0], [0], [1], [0, 0, 1, 1], [], []>} : vector<8x16xf32>, vector<16x32xf32>, vector<8x32xf32> -> vector<8x32xf32>
    %401 = arith.addf %383, %400 : vector<8x32xf32>
    %c1_430 = arith.constant 1 : index
    %c3_431 = arith.constant 3 : index
    %c0_432 = arith.constant 0 : index
    %402 = vector.load %arg14[%c1_430, %c3_431, %c0_432] : memref<4x16x16xf32, #tpu.memory_space<vmem>>, vector<1x8x16xf32>
    %403 = vector.shape_cast %402 : vector<1x8x16xf32> to vector<8x16xf32>
    %cst_433 = arith.constant dense<0.000000e+00> : vector<8x32xf32>
    %404 = tpu.matmul %403, %397, %cst_433 {dimension_numbers = #tpu.dot_dimension_numbers<[1], [0], [0], [1], [0, 0, 1, 1], [], []>} : vector<8x16xf32>, vector<16x32xf32>, vector<8x32xf32> -> vector<8x32xf32>
    %405 = arith.addf %387, %404 : vector<8x32xf32>
    %c2_434 = arith.constant 2 : index
    %c3_435 = arith.constant 3 : index
    %c0_436 = arith.constant 0 : index
    %406 = vector.load %arg14[%c2_434, %c3_435, %c0_436] : memref<4x16x16xf32, #tpu.memory_space<vmem>>, vector<1x8x16xf32>
    %407 = vector.shape_cast %406 : vector<1x8x16xf32> to vector<8x16xf32>
    %cst_437 = arith.constant dense<0.000000e+00> : vector<8x32xf32>
    %408 = tpu.matmul %407, %397, %cst_437 {dimension_numbers = #tpu.dot_dimension_numbers<[1], [0], [0], [1], [0, 0, 1, 1], [], []>} : vector<8x16xf32>, vector<16x32xf32>, vector<8x32xf32> -> vector<8x32xf32>
    %409 = arith.addf %391, %408 : vector<8x32xf32>
    %c3_438 = arith.constant 3 : index
    %c3_439 = arith.constant 3 : index
    %c0_440 = arith.constant 0 : index
    %410 = vector.load %arg14[%c3_438, %c3_439, %c0_440] : memref<4x16x16xf32, #tpu.memory_space<vmem>>, vector<1x8x16xf32>
    %411 = vector.shape_cast %410 : vector<1x8x16xf32> to vector<8x16xf32>
    %cst_441 = arith.constant dense<0.000000e+00> : vector<8x32xf32>
    %412 = tpu.matmul %411, %397, %cst_441 {dimension_numbers = #tpu.dot_dimension_numbers<[1], [0], [0], [1], [0, 0, 1, 1], [], []>} : vector<8x16xf32>, vector<16x32xf32>, vector<8x32xf32> -> vector<8x32xf32>
    %413 = arith.addf %395, %412 : vector<8x32xf32>
    %c7_442 = arith.constant 7 : index
    %c0_443 = arith.constant 0 : index
    %c0_444 = arith.constant 0 : index
    %414 = vector.load %arg6[%c7_442, %c0_443, %c0_444] : memref<9x16x32xf32, #tpu.memory_space<vmem>>, vector<1x16x32xf32>
    %415 = vector.shape_cast %414 : vector<1x16x32xf32> to vector<16x32xf32>
    %c1_445 = arith.constant 1 : index
    %c3_446 = arith.constant 3 : index
    %c0_447 = arith.constant 0 : index
    %416 = vector.load %arg14[%c1_445, %c3_446, %c0_447] : memref<4x16x16xf32, #tpu.memory_space<vmem>>, vector<1x8x16xf32>
    %417 = vector.shape_cast %416 : vector<1x8x16xf32> to vector<8x16xf32>
    %cst_448 = arith.constant dense<0.000000e+00> : vector<8x32xf32>
    %418 = tpu.matmul %417, %415, %cst_448 {dimension_numbers = #tpu.dot_dimension_numbers<[1], [0], [0], [1], [0, 0, 1, 1], [], []>} : vector<8x16xf32>, vector<16x32xf32>, vector<8x32xf32> -> vector<8x32xf32>
    %419 = arith.addf %401, %418 : vector<8x32xf32>
    %c0_449 = arith.constant 0 : index
    %c4_450 = arith.constant 4 : index
    %c0_451 = arith.constant 0 : index
    %420 = vector.load %arg14[%c0_449, %c4_450, %c0_451] : memref<4x16x16xf32, #tpu.memory_space<vmem>>, vector<1x8x16xf32>
    %421 = vector.shape_cast %420 : vector<1x8x16xf32> to vector<8x16xf32>
    %cst_452 = arith.constant dense<0.000000e+00> : vector<8x32xf32>
    %422 = tpu.matmul %421, %415, %cst_452 {dimension_numbers = #tpu.dot_dimension_numbers<[1], [0], [0], [1], [0, 0, 1, 1], [], []>} : vector<8x16xf32>, vector<16x32xf32>, vector<8x32xf32> -> vector<8x32xf32>
    %423 = arith.addf %405, %422 : vector<8x32xf32>
    %c3_453 = arith.constant 3 : index
    %c3_454 = arith.constant 3 : index
    %c0_455 = arith.constant 0 : index
    %424 = vector.load %arg14[%c3_453, %c3_454, %c0_455] : memref<4x16x16xf32, #tpu.memory_space<vmem>>, vector<1x8x16xf32>
    %425 = vector.shape_cast %424 : vector<1x8x16xf32> to vector<8x16xf32>
    %cst_456 = arith.constant dense<0.000000e+00> : vector<8x32xf32>
    %426 = tpu.matmul %425, %415, %cst_456 {dimension_numbers = #tpu.dot_dimension_numbers<[1], [0], [0], [1], [0, 0, 1, 1], [], []>} : vector<8x16xf32>, vector<16x32xf32>, vector<8x32xf32> -> vector<8x32xf32>
    %427 = arith.addf %409, %426 : vector<8x32xf32>
    %c2_457 = arith.constant 2 : index
    %c4_458 = arith.constant 4 : index
    %c0_459 = arith.constant 0 : index
    %428 = vector.load %arg14[%c2_457, %c4_458, %c0_459] : memref<4x16x16xf32, #tpu.memory_space<vmem>>, vector<1x8x16xf32>
    %429 = vector.shape_cast %428 : vector<1x8x16xf32> to vector<8x16xf32>
    %cst_460 = arith.constant dense<0.000000e+00> : vector<8x32xf32>
    %430 = tpu.matmul %429, %415, %cst_460 {dimension_numbers = #tpu.dot_dimension_numbers<[1], [0], [0], [1], [0, 0, 1, 1], [], []>} : vector<8x16xf32>, vector<16x32xf32>, vector<8x32xf32> -> vector<8x32xf32>
    %431 = arith.addf %413, %430 : vector<8x32xf32>
    %c8_461 = arith.constant 8 : index
    %c0_462 = arith.constant 0 : index
    %c0_463 = arith.constant 0 : index
    %432 = vector.load %arg6[%c8_461, %c0_462, %c0_463] : memref<9x16x32xf32, #tpu.memory_space<vmem>>, vector<1x16x32xf32>
    %433 = vector.shape_cast %432 : vector<1x16x32xf32> to vector<16x32xf32>
    %c0_464 = arith.constant 0 : index
    %c4_465 = arith.constant 4 : index
    %c0_466 = arith.constant 0 : index
    %434 = vector.load %arg14[%c0_464, %c4_465, %c0_466] : memref<4x16x16xf32, #tpu.memory_space<vmem>>, vector<1x8x16xf32>
    %435 = vector.shape_cast %434 : vector<1x8x16xf32> to vector<8x16xf32>
    %cst_467 = arith.constant dense<0.000000e+00> : vector<8x32xf32>
    %436 = tpu.matmul %435, %433, %cst_467 {dimension_numbers = #tpu.dot_dimension_numbers<[1], [0], [0], [1], [0, 0, 1, 1], [], []>} : vector<8x16xf32>, vector<16x32xf32>, vector<8x32xf32> -> vector<8x32xf32>
    %437 = arith.addf %419, %436 : vector<8x32xf32>
    %c1_468 = arith.constant 1 : index
    %c4_469 = arith.constant 4 : index
    %c0_470 = arith.constant 0 : index
    %438 = vector.load %arg14[%c1_468, %c4_469, %c0_470] : memref<4x16x16xf32, #tpu.memory_space<vmem>>, vector<1x8x16xf32>
    %439 = vector.shape_cast %438 : vector<1x8x16xf32> to vector<8x16xf32>
    %cst_471 = arith.constant dense<0.000000e+00> : vector<8x32xf32>
    %440 = tpu.matmul %439, %433, %cst_471 {dimension_numbers = #tpu.dot_dimension_numbers<[1], [0], [0], [1], [0, 0, 1, 1], [], []>} : vector<8x16xf32>, vector<16x32xf32>, vector<8x32xf32> -> vector<8x32xf32>
    %441 = arith.addf %423, %440 : vector<8x32xf32>
    %c2_472 = arith.constant 2 : index
    %c4_473 = arith.constant 4 : index
    %c0_474 = arith.constant 0 : index
    %442 = vector.load %arg14[%c2_472, %c4_473, %c0_474] : memref<4x16x16xf32, #tpu.memory_space<vmem>>, vector<1x8x16xf32>
    %443 = vector.shape_cast %442 : vector<1x8x16xf32> to vector<8x16xf32>
    %cst_475 = arith.constant dense<0.000000e+00> : vector<8x32xf32>
    %444 = tpu.matmul %443, %433, %cst_475 {dimension_numbers = #tpu.dot_dimension_numbers<[1], [0], [0], [1], [0, 0, 1, 1], [], []>} : vector<8x16xf32>, vector<16x32xf32>, vector<8x32xf32> -> vector<8x32xf32>
    %445 = arith.addf %427, %444 : vector<8x32xf32>
    %c3_476 = arith.constant 3 : index
    %c4_477 = arith.constant 4 : index
    %c0_478 = arith.constant 0 : index
    %446 = vector.load %arg14[%c3_476, %c4_477, %c0_478] : memref<4x16x16xf32, #tpu.memory_space<vmem>>, vector<1x8x16xf32>
    %447 = vector.shape_cast %446 : vector<1x8x16xf32> to vector<8x16xf32>
    %cst_479 = arith.constant dense<0.000000e+00> : vector<8x32xf32>
    %448 = tpu.matmul %447, %433, %cst_479 {dimension_numbers = #tpu.dot_dimension_numbers<[1], [0], [0], [1], [0, 0, 1, 1], [], []>} : vector<8x16xf32>, vector<16x32xf32>, vector<8x32xf32> -> vector<8x32xf32>
    %449 = arith.addf %431, %448 : vector<8x32xf32>
    %450 = arith.maximumf %437, %441 : vector<8x32xf32>
    %451 = arith.maximumf %445, %449 : vector<8x32xf32>
    %452 = arith.maximumf %450, %451 : vector<8x32xf32>
    %c0_480 = arith.constant 0 : index
    %c0_481 = arith.constant 0 : index
    %453 = vector.load %arg7[%c0_480, %c0_481] : memref<1x32xf32, #tpu.memory_space<vmem>>, vector<1x32xf32>
    %454 = vector.broadcast %453 : vector<1x32xf32> to vector<8x32xf32>
    %455 = arith.addf %452, %454 : vector<8x32xf32>
    %cst_482 = arith.constant 0.000000e+00 : f32
    %456 = vector.broadcast %cst_482 : f32 to vector<8x32xf32>
    %457 = arith.maximumf %455, %456 : vector<8x32xf32>
    %c0_483 = arith.constant 0 : index
    %c0_484 = arith.constant 0 : index
    %458 = vector.load %arg15[%c0_483, %c0_484] : memref<8x32xf32, #tpu.memory_space<vmem>>, vector<8x32xf32>
    tpu.vector_store %arg15[%c0_483, %c0_484], %457 {strides = array<i32>} : memref<8x32xf32, #tpu.memory_space<vmem>>, vector<8x32xf32>,
    %c0_485 = arith.constant 0 : index
    %c0_486 = arith.constant 0 : index
    %459 = vector.load %arg9[%c0_485, %c0_486] : memref<1x128xf32, #tpu.memory_space<vmem>>, vector<1x128xf32>
    %c0_487 = arith.constant 0 : index
    %c0_488 = arith.constant 0 : index
    %460 = vector.load %arg15[%c0_487, %c0_488] : memref<8x32xf32, #tpu.memory_space<vmem>>, vector<1x32xf32>
    %c0_489 = arith.constant 0 : index
    %c0_490 = arith.constant 0 : index
    %c0_491 = arith.constant 0 : index
    %461 = vector.load %arg8[%c0_489, %c0_490, %c0_491] : memref<4x32x128xf32, #tpu.memory_space<vmem>>, vector<1x32x128xf32>
    %462 = vector.shape_cast %461 : vector<1x32x128xf32> to vector<32x128xf32>
    %cst_492 = arith.constant dense<0.000000e+00> : vector<1x128xf32>
    %463 = tpu.matmul %460, %462, %cst_492 {dimension_numbers = #tpu.dot_dimension_numbers<[1], [0], [0], [1], [0, 0, 1, 1], [], []>} : vector<1x32xf32>, vector<32x128xf32>, vector<1x128xf32> -> vector<1x128xf32>
    %464 = arith.addf %459, %463 : vector<1x128xf32>
    %c1_493 = arith.constant 1 : index
    %c0_494 = arith.constant 0 : index
    %465 = vector.load %arg15[%c1_493, %c0_494] : memref<8x32xf32, #tpu.memory_space<vmem>>, vector<1x32xf32>
    %c1_495 = arith.constant 1 : index
    %c0_496 = arith.constant 0 : index
    %c0_497 = arith.constant 0 : index
    %466 = vector.load %arg8[%c1_495, %c0_496, %c0_497] : memref<4x32x128xf32, #tpu.memory_space<vmem>>, vector<1x32x128xf32>
    %467 = vector.shape_cast %466 : vector<1x32x128xf32> to vector<32x128xf32>
    %cst_498 = arith.constant dense<0.000000e+00> : vector<1x128xf32>
    %468 = tpu.matmul %465, %467, %cst_498 {dimension_numbers = #tpu.dot_dimension_numbers<[1], [0], [0], [1], [0, 0, 1, 1], [], []>} : vector<1x32xf32>, vector<32x128xf32>, vector<1x128xf32> -> vector<1x128xf32>
    %469 = arith.addf %464, %468 : vector<1x128xf32>
    %c3_499 = arith.constant 3 : index
    %c0_500 = arith.constant 0 : index
    %470 = vector.load %arg15[%c3_499, %c0_500] : memref<8x32xf32, #tpu.memory_space<vmem>>, vector<1x32xf32>
    %c2_501 = arith.constant 2 : index
    %c0_502 = arith.constant 0 : index
    %c0_503 = arith.constant 0 : index
    %471 = vector.load %arg8[%c2_501, %c0_502, %c0_503] : memref<4x32x128xf32, #tpu.memory_space<vmem>>, vector<1x32x128xf32>
    %472 = vector.shape_cast %471 : vector<1x32x128xf32> to vector<32x128xf32>
    %cst_504 = arith.constant dense<0.000000e+00> : vector<1x128xf32>
    %473 = tpu.matmul %470, %472, %cst_504 {dimension_numbers = #tpu.dot_dimension_numbers<[1], [0], [0], [1], [0, 0, 1, 1], [], []>} : vector<1x32xf32>, vector<32x128xf32>, vector<1x128xf32> -> vector<1x128xf32>
    %474 = arith.addf %469, %473 : vector<1x128xf32>
    %c4_505 = arith.constant 4 : index
    %c0_506 = arith.constant 0 : index
    %475 = vector.load %arg15[%c4_505, %c0_506] : memref<8x32xf32, #tpu.memory_space<vmem>>, vector<1x32xf32>
    %c3_507 = arith.constant 3 : index
    %c0_508 = arith.constant 0 : index
    %c0_509 = arith.constant 0 : index
    %476 = vector.load %arg8[%c3_507, %c0_508, %c0_509] : memref<4x32x128xf32, #tpu.memory_space<vmem>>, vector<1x32x128xf32>
    %477 = vector.shape_cast %476 : vector<1x32x128xf32> to vector<32x128xf32>
    %cst_510 = arith.constant dense<0.000000e+00> : vector<1x128xf32>
    %478 = tpu.matmul %475, %477, %cst_510 {dimension_numbers = #tpu.dot_dimension_numbers<[1], [0], [0], [1], [0, 0, 1, 1], [], []>} : vector<1x32xf32>, vector<32x128xf32>, vector<1x128xf32> -> vector<1x128xf32>
    %479 = arith.addf %474, %478 : vector<1x128xf32>
    %480 = tpu.iota {dimensions = array<i32: 1>} : vector<1x128xi32>
    %cst_511 = arith.constant 2.000000e+01 : f32
    %481 = vector.broadcast %cst_511 : f32 to vector<1x128xf32>
    %482 = arith.cmpf ogt, %479, %481 : vector<1x128xf32>
    %cst_512 = arith.constant 2.000000e+01 : f32
    %483 = vector.broadcast %cst_512 : f32 to vector<1x128xf32>
    %484 = arith.minimumf %479, %483 : vector<1x128xf32>
    %485 = math.exp %484 : vector<1x128xf32>
    %486 = math.log1p %485 : vector<1x128xf32>
    %487 = arith.select %482, %479, %486 : vector<1x128xi1>, vector<1x128xf32>
    %cst_513 = arith.constant 9.99999993E-9 : f32
    %488 = vector.broadcast %cst_513 : f32 to vector<1x128xf32>
    %489 = arith.addf %487, %488 : vector<1x128xf32>
    %c16_i32 = arith.constant 16 : i32
    %490 = vector.broadcast %c16_i32 : i32 to vector<1x128xi32>
    %491 = arith.cmpi slt, %480, %490 : vector<1x128xi32>
    %492 = arith.select %491, %479, %489 : vector<1x128xi1>, vector<1x128xf32>
    %c0_514 = arith.constant 0 : index
    %c0_515 = arith.constant 0 : index
    %c0_516 = arith.constant 0 : index
    %493 = vector.load %arg10[%c0_514, %c0_515, %c0_516] : memref<1x1x128xf32, #tpu.memory_space<vmem>>, vector<1x1x128xf32>
    %494 = vector.shape_cast %493 : vector<1x1x128xf32> to vector<1x128xf32>
    %495 = vector.shape_cast %492 : vector<1x128xf32> to vector<1x1x128xf32>
    tpu.vector_store %arg10[%c0_514, %c0_515, %c0_516], %495 {strides = array<i32>} : memref<1x1x128xf32, #tpu.memory_space<vmem>>, vector<1x1x128xf32>,
    return
  }
  func.func @transform_0(%arg0: i32) -> (i32, i32, i32, i32) {
    %c0_i32 = arith.constant 0 : i32
    %c0_i32_0 = arith.constant 0 : i32
    %c0_i32_1 = arith.constant 0 : i32
    %c0_i32_2 = arith.constant 0 : i32
    return %arg0, %c0_i32, %c0_i32_0, %c0_i32_1 : i32, i32, i32, i32
  }
  func.func @transform_1(%arg0: i32) -> (i32, i32) {
    %c0_i32 = arith.constant 0 : i32
    %c0_i32_0 = arith.constant 0 : i32
    %c0_i32_1 = arith.constant 0 : i32
    return %c0_i32, %c0_i32_0 : i32, i32
  }
  func.func @transform_2(%arg0: i32) -> (i32, i32) {
    %c0_i32 = arith.constant 0 : i32
    %c0_i32_0 = arith.constant 0 : i32
    %c0_i32_1 = arith.constant 0 : i32
    return %c0_i32, %c0_i32_0 : i32, i32
  }
  func.func @transform_3(%arg0: i32) -> (i32, i32, i32) {
    %c0_i32 = arith.constant 0 : i32
    %c0_i32_0 = arith.constant 0 : i32
    %c0_i32_1 = arith.constant 0 : i32
    %c0_i32_2 = arith.constant 0 : i32
    return %c0_i32, %c0_i32_0, %c0_i32_1 : i32, i32, i32
  }
  func.func @transform_4(%arg0: i32) -> (i32, i32) {
    %c0_i32 = arith.constant 0 : i32
    %c0_i32_0 = arith.constant 0 : i32
    %c0_i32_1 = arith.constant 0 : i32
    return %c0_i32, %c0_i32_0 : i32, i32
  }
  func.func @transform_5(%arg0: i32) -> (i32, i32, i32) {
    %c0_i32 = arith.constant 0 : i32
    %c0_i32_0 = arith.constant 0 : i32
    %c0_i32_1 = arith.constant 0 : i32
    %c0_i32_2 = arith.constant 0 : i32
    return %c0_i32, %c0_i32_0, %c0_i32_1 : i32, i32, i32
  }
  func.func @transform_6(%arg0: i32) -> (i32, i32) {
    %c0_i32 = arith.constant 0 : i32
    %c0_i32_0 = arith.constant 0 : i32
    %c0_i32_1 = arith.constant 0 : i32
    return %c0_i32, %c0_i32_0 : i32, i32
  }
  func.func @transform_7(%arg0: i32) -> (i32, i32, i32) {
    %c0_i32 = arith.constant 0 : i32
    %c0_i32_0 = arith.constant 0 : i32
    %c0_i32_1 = arith.constant 0 : i32
    %c0_i32_2 = arith.constant 0 : i32
    return %c0_i32, %c0_i32_0, %c0_i32_1 : i32, i32, i32
  }
  func.func @transform_8(%arg0: i32) -> (i32, i32) {
    %c0_i32 = arith.constant 0 : i32
    %c0_i32_0 = arith.constant 0 : i32
    %c0_i32_1 = arith.constant 0 : i32
    return %c0_i32, %c0_i32_0 : i32, i32
  }
  func.func @transform_9(%arg0: i32) -> (i32, i32, i32) {
    %c0_i32 = arith.constant 0 : i32
    %c0_i32_0 = arith.constant 0 : i32
    %c0_i32_1 = arith.constant 0 : i32
    return %arg0, %c0_i32, %c0_i32_0 : i32, i32, i32
  }
}

</mosaic_0001>

<bundles_post_ra>
// kernel: encoder_with_pooling_forward.1
= control target key start
LH: loop header
LB: loop body
LE: loop exit
PB: predicated region body
PF: predicated region fallthrough
CT: control target
= control target key end

     0   :  { %s9150_s30 = smov 0   ;;  %s10201_s0 = inlined_call_operand.vmem [shape: f32[2,4,64,36], index: 0, kind: input, shape index: {}]   ;;  %s10202_s1 = inlined_call_operand.vmem [shape: f32[36,8], index: 1, kind: input, shape index: {}]   ;;  %s10203_s2 = inlined_call_operand.vmem [shape: f32[1,8], index: 2, kind: input, shape index: {}]   ;;  %s10204_s3 = inlined_call_operand.vmem [shape: f32[9,8,16], index: 3, kind: input, shape index: {}]   ;;  %s10205_s4 = inlined_call_operand.vmem [shape: f32[1,16], index: 4, kind: input, shape index: {}]   ;;  %s10206_s5 = inlined_call_operand.vmem [shape: f32[9,16,32], index: 5, kind: input, shape index: {}]   ;;  %s10207_s6 = inlined_call_operand.vmem [shape: f32[1,32], index: 6, kind: input, shape index: {}]   ;;  %s10208_s7 = inlined_call_operand.vmem [shape: f32[4,32,128], index: 7, kind: input, shape index: {}]   ;;  %s10209_s8 = inlined_call_operand.vmem [shape: f32[1,128], index: 8, kind: input, shape index: {}]   ;;  %s10210_s9 = inlined_call_operand.vmem [shape: f32[2,1,128], index: 9, kind: output, shape index: {}]  }
   0x1 LB: > { %s7286_s10 = sadd.s32 4294967295, %s9095_s30   ;;  %p7290_p0 = scmp.ge.s32.totalorder %s9095_s30, 1  ;;  %s9095_s30 = sphi %s9150_s30, %s19_s30  }
   0x2   : > { %p287_p1 = scmp.lt.s32.totalorder %s9095_s30, 3 }
   0x4   : > { %p288_p2 = pnand %p7290_p0, %p287_p1 }
   0x5   : > { %v337_v0 = vld [vmem:[%s10202_s1] sm:$0xff] (!%p288_p2)  ;;  %v338_v1 = vld [vmem:[%s10202_s1 + $0x8] sm:$0xff] (!%p288_p2)  ;;  %v339_v2 = vld [vmem:[%s10202_s1 + $0x10] sm:$0xff] (!%p288_p2)  ;;  %p321_p3 = scmp.lt.s32.totalorder (!%p288_p2), %s7286_s10, 1  ;;  %vm342_vm0 = vcmask (!%p288_p2), 293888   ;;  %vm367_vm1 = vcmask (!%p288_p2), 1043456  }
   0x6   : > { %291 = sbr.rel (%p288_p2) target bundleno = 1319 (0x527), region = 56  ;;  %v9167_v3 = vpack.c.bf16 (!%p288_p2), %v338_v1, %v337_v0  ;;  %v340_v4 = vld [vmem:[%s10202_s1 + $0x18] sm:$0xff] (!%p288_p2)  ;;  %v9191_v6 = vld [vmem:[%s10202_s1 + $0x20] sm:$0xf] (!%p288_p2)  ;;  %vm937_vm2 = vcmask (!%p288_p2), 64512   ;;  %v9097_v39 = vmov (!%p288_p2), 0.0  }
   0x7   : > { %v9172_v5 = vpack.c.bf16 (!%p288_p2), %v340_v4, %v339_v2  ;;  %954 = vst.msk [vmem:[#allocation3 + $0x40] sm:$0xff] (!%p288_p2), %vm937_vm2, %v9097_v39  ;;  %958 = vst.msk [vmem:[#allocation3 + $0x60] sm:$0xff] (!%p288_p2), %vm937_vm2, %v9097_v39  ;;  %v9320_v40 = vld [vmem:[%s10204_s3 + $0x8] sm:$0xff] (!%p288_p2)  ;;  %vm9098_vm3 = vmmov (!%p288_p2), 0   ;;  %vm964_vm4 = vcmask (!%p288_p2), 60416   ;;  %vm4208_vm5 = vcmask (!%p288_p2), 130048  }
   0x8   : > { %8648 = vmatprep.subr.bf16.mxu1 (!%p288_p2), %v9167_v3  ;;  %8664 = vmatprep.subr.bf16.mxu0 (!%p288_p2), %v9167_v3  ;;  %946 = vst.msk [vmem:[#allocation3] sm:$0xff] (!%p288_p2), %vm937_vm2, %v9097_v39  ;;  %947 = vst.msk [vmem:[#allocation3 + $0x8] sm:$0xff] (!%p288_p2), %vm937_vm2, %v9097_v39  ;;  %vm4222_vm6 = vcmask (!%p288_p2), 123904   ;;  %vm6897_vm7 = vcmask (!%p288_p2), 261120  }
   0x9   : > { %8650 = vmatpush3.bf16.msra.mxu1 (!%p288_p2), %v9167_v3  ;;  %8666 = vmatpush3.bf16.msra.mxu0 (!%p288_p2), %v9167_v3  ;;  %948 = vst.msk [vmem:[#allocation3 + $0x10] sm:$0xff] (!%p288_p2), %vm937_vm2, %v9097_v39  ;;  %949 = vst.msk [vmem:[#allocation3 + $0x18] sm:$0xff] (!%p288_p2), %vm937_vm2, %v9097_v39 }
   0xa   : > { %8652 = vmatprep.subr.bf16.mxu1 (!%p288_p2), %v9172_v5  ;;  %8668 = vmatprep.subr.bf16.mxu0 (!%p288_p2), %v9172_v5  ;;  %950 = vst.msk [vmem:[#allocation3 + $0x20] sm:$0xff] (!%p288_p2), %vm937_vm2, %v9097_v39  ;;  %951 = vst.msk [vmem:[#allocation3 + $0x28] sm:$0xff] (!%p288_p2), %vm937_vm2, %v9097_v39 }
   0xb   : > { %952 = vst.msk [vmem:[#allocation3 + $0x30] sm:$0xff] (!%p288_p2), %vm937_vm2, %v9097_v39  ;;  %953 = vst.msk [vmem:[#allocation3 + $0x38] sm:$0xff] (!%p288_p2), %vm937_vm2, %v9097_v39 }
   0xc   : > { %955 = vst.msk [vmem:[#allocation3 + $0x48] sm:$0xff] (!%p288_p2), %vm937_vm2, %v9097_v39  ;;  %956 = vst.msk [vmem:[#allocation3 + $0x50] sm:$0xff] (!%p288_p2), %vm937_vm2, %v9097_v39 }
   0xd   : > { %s10212_s10 = smov (!%p321_p3, %s7286_s10), 1  ;;  %8654 = vmatpush3.bf16.msra.mxu1 %v9172_v5  ;;  %8670 = vmatpush3.bf16.msra.mxu0 %v9172_v5  ;;  %957 = vst.msk [vmem:[#allocation3 + $0x58] sm:$0xff] %vm937_vm2, %v9097_v39  ;;  %959 = vst.msk [vmem:[#allocation3 + $0x68] sm:$0xff] %vm937_vm2, %v9097_v39 }
   0xe   : > { %s7542_s19 = sshll.u32 %s10212_s10, 8  ;;  %7875 = vmatprep.subr.msk.mxu1 %vm367_vm1, %v9191_v6  ;;  %7919 = vmatprep.subr.msk.mxu0 %vm367_vm1, %v9191_v6  ;;  %960 = vst.msk [vmem:[#allocation3 + $0x70] sm:$0xff] %vm937_vm2, %v9097_v39  ;;  %961 = vst.msk [vmem:[#allocation3 + $0x78] sm:$0xff] %vm937_vm2, %v9097_v39  ;;  %s328_s26 = scalar_lea.vmem %s10210_s9, %s10212_s10 }
   0xf   : > { %s9185_s22 = scalar_lea.vmem %s10201_s0, %s7542_s19  ;;  %4212 = vst.msk [vmem:[#allocation5] sm:$0xff] %vm4208_vm5, %v9097_v39  ;;  %4213 = vst.msk [vmem:[#allocation5 + $0x8] sm:$0xff] %vm4208_vm5, %v9097_v39 }
  0x10   : > { %v329_v7 = vld [vmem:[%s9185_s22] sm:$0xff]  ;;  %v330_v9 = vld [vmem:[%s9185_s22 + $0x8] sm:$0xff]  ;;  %v331_v10 = vld [vmem:[%s9185_s22 + $0x10] sm:$0xff]  ;;  %4214 = vst.msk [vmem:[#allocation5 + $0x10] sm:$0xff] %vm4208_vm5, %v9097_v39 }
  0x11   : > { %7877 = vmatprep.mubr.msk.f32.mxu1 %vm342_vm0, %v329_v7  ;;  %v7319_v8 = vld [vmem:[%s9185_s22 + $0x80] sm:$0xff]  ;;  %7876 = vmatpush3.msk.msra.mxu1 %vm367_vm1, %v9191_v6  ;;  %v7320_v11 = vld [vmem:[%s9185_s22 + $0x88] sm:$0xff]  ;;  %v7321_v12 = vld [vmem:[%s9185_s22 + $0x90] sm:$0xff]  ;;  %4215 = vst.msk [vmem:[#allocation5 + $0x18] sm:$0xff] %vm4208_vm5, %v9097_v39 }
  0x12   : > { %7921 = vmatprep.mubr.msk.f32.mxu0 %vm342_vm0, %v7319_v8  ;;  %7920 = vmatpush3.msk.msra.mxu0 %vm367_vm1, %v9191_v6  ;;  %v332_v13 = vld [vmem:[%s9185_s22 + $0x18] sm:$0xff]  ;;  %v333_v14 = vld [vmem:[%s9185_s22 + $0x20] sm:$0xff]  ;;  %v334_v17 = vld [vmem:[%s9185_s22 + $0x28] sm:$0xff]  ;;  %4216 = vst.msk [vmem:[#allocation5 + $0x20] sm:$0xff] %vm4208_vm5, %v9097_v39 }
  0x13   : > { %7878 = vmatmul.mubr.msk.f32.vlgmr.msra.gmra.mrb[0].mxu1 %vm342_vm0, %v330_v9  ;;  %8656 = vmatprep.subr.bf16.mxu1 %v9167_v3  ;;  %v7322_v15 = vld [vmem:[%s9185_s22 + $0x98] sm:$0xff]  ;;  %v7323_v16 = vld [vmem:[%s9185_s22 + $0xa0] sm:$0xff]  ;;  %v335_v18 = vld [vmem:[%s9185_s22 + $0x30] sm:$0xff]  ;;  %4217 = vst.msk [vmem:[#allocation5 + $0x28] sm:$0xff] %vm4208_vm5, %v9097_v39 }
  0x14   : > { %8658 = vmatpush3.bf16.msra.mxu1 %v9167_v3  ;;  %7880 = vmatprep.mubr.msk.f32.mxu1 %vm342_vm0, %v331_v10  ;;  %v7324_v19 = vld [vmem:[%s9185_s22 + $0xa8] sm:$0xff]  ;;  %v7325_v20 = vld [vmem:[%s9185_s22 + $0xb0] sm:$0xff]  ;;  %v336_v21 = vld [vmem:[%s9185_s22 + $0x38] sm:$0xff]  ;;  %4218 = vst.msk [vmem:[#allocation5 + $0x30] sm:$0xff] %vm4208_vm5, %v9097_v39 }
  0x15   : > { %8660 = vmatprep.subr.bf16.mxu1 %v9172_v5  ;;  %7922 = vmatmul.mubr.msk.f32.vlgmr.msra.gmra.mrb[0].mxu0 %vm342_vm0, %v7320_v11  ;;  %v7302_v22 = vld [vmem:[%s9185_s22 + $0x40] sm:$0xff]  ;;  %v7326_v23 = vld [vmem:[%s9185_s22 + $0xb8] sm:$0xff]  ;;  %v7303_v24 = vld [vmem:[%s9185_s22 + $0x48] sm:$0xff]  ;;  %4219 = vst.msk [vmem:[#allocation5 + $0x38] sm:$0xff] %vm4208_vm5, %v9097_v39 }
  0x16   : > { %7924 = vmatprep.mubr.msk.f32.mxu0 %vm342_vm0, %v7321_v12  ;;  %v7304_v25 = vld [vmem:[%s9185_s22 + $0x50] sm:$0xff]  ;;  %v7305_v26 = vld [vmem:[%s9185_s22 + $0x58] sm:$0xff]  ;;  %v7306_v27 = vld [vmem:[%s9185_s22 + $0x60] sm:$0xff]  ;;  %7955 = vmatprep.subr.mxu0 %v9097_v39 }
  0x17   : > { %7881 = vmatmul.mubr.msk.f32.gmra.mrb[2].mxu1 %vm342_vm0, %v332_v13  ;;  %v7307_v28 = vld [vmem:[%s9185_s22 + $0x68] sm:$0xff]  ;;  %v7308_v29 = vld [vmem:[%s9185_s22 + $0x70] sm:$0xff]  ;;  %v7309_v30 = vld [vmem:[%s9185_s22 + $0x78] sm:$0xff]  ;;  %7956 = vmatpush3.msra.mxu0 %v9320_v40 }
  0x18   : > { %7883 = vmatprep.mubr.msk.f32.mxu1 %vm342_vm0, %v333_v14  ;;  %8662 = vmatpush3.bf16.msra.mxu1 %v9172_v5  ;;  %v7336_v31 = vld [vmem:[%s9185_s22 + $0xc0] sm:$0xff]  ;;  %v7337_v32 = vld [vmem:[%s9185_s22 + $0xc8] sm:$0xff]  ;;  %v7338_v33 = vld [vmem:[%s9185_s22 + $0xd0] sm:$0xff] }
  0x19   : > { %7897 = vmatprep.subr.msk.mxu1 %vm367_vm1, %v9191_v6  ;;  %7925 = vmatmul.mubr.msk.f32.gmra.mrb[2].mxu0 %vm342_vm0, %v7322_v15  ;;  %v7339_v34 = vld [vmem:[%s9185_s22 + $0xd8] sm:$0xff]  ;;  %v7340_v35 = vld [vmem:[%s9185_s22 + $0xe0] sm:$0xff]  ;;  %v7341_v36 = vld [vmem:[%s9185_s22 + $0xe8] sm:$0xff] }
  0x1a   : > { %7927 = vmatprep.mubr.msk.f32.mxu0 %vm342_vm0, %v7323_v16  ;;  %v7342_v37 = vld [vmem:[%s9185_s22 + $0xf0] sm:$0xff]  ;;  %v7343_v38 = vld [vmem:[%s9185_s22 + $0xf8] sm:$0xff]  ;;  %7966 = vmatprep.subr.mxu0 %v9097_v39 }
  0x1b   : > { %7884 = vmatmul.mubr.msk.f32.gmra.mrb[4].mxu1 %vm342_vm0, %v334_v17 }
  0x1c   : > { %7886 = vmatprep.mubr.msk.f32.mxu1 %vm342_vm0, %v335_v18  ;;  %7898 = vmatpush3.msk.msra.mxu1 %vm367_vm1, %v9191_v6  ;;  %v7353_v18 = vld [vmem:[%s10203_s2] ss:$0 sm:$0xff] }
  0x1d   : > { %8672 = vmatprep.subr.bf16.mxu1 %v9167_v3  ;;  %7928 = vmatmul.mubr.msk.f32.gmra.mrb[4].mxu0 %vm342_vm0, %v7324_v19 }
  0x1e   : > { %7930 = vmatprep.mubr.msk.f32.mxu0 %vm342_vm0, %v7325_v20 }
  0x1f   : > { %7887 = vmatmul.mubr.msk.f32.gmra.mrb[6].mxu1 %vm342_vm0, %v336_v21 }
  0x20   : > { %7899 = vmatprep.mubr.msk.f32.mxu1 %vm342_vm0, %v7302_v22 }
  0x21   : > { %7931 = vmatmul.mubr.msk.f32.gmra.mrb[6].mxu0 %vm342_vm0, %v7326_v23 }
  0x22   : > { %7957 = vmatprep.mubr.msk.f32.mxu0 %vm9098_vm3, %v9097_v39 }
  0x23   : > { %7900 = vmatmul.mubr.msk.f32.vlgmr.msra.gmra.mrb[8].mxu1 %vm342_vm0, %v7303_v24 }
  0x24   : > { %8674 = vmatpush3.bf16.msra.mxu1 %v9167_v3  ;;  %7902 = vmatprep.mubr.msk.f32.mxu1 %vm342_vm0, %v7304_v25 }
  0x25   : > { %8676 = vmatprep.subr.bf16.mxu1 %v9172_v5 }
  0x27   : > { %7903 = vmatmul.mubr.msk.f32.gmra.mrb[10].mxu1 %vm342_vm0, %v7305_v26 }
  0x28   : > { %7905 = vmatprep.mubr.msk.f32.mxu1 %vm342_vm0, %v7306_v27  ;;  %8678 = vmatpush3.bf16.msra.mxu1 %v9172_v5 }
  0x29   : > { %7941 = vmatprep.subr.msk.mxu1 %vm367_vm1, %v9191_v6 }
  0x2b   : > { %7906 = vmatmul.mubr.msk.f32.gmra.mrb[12].mxu1 %vm342_vm0, %v7307_v28 }
  0x2c   : > { %7908 = vmatprep.mubr.msk.f32.mxu1 %vm342_vm0, %v7308_v29  ;;  %7942 = vmatpush3.msk.msra.mxu1 %vm367_vm1, %v9191_v6 }
  0x2d   : > { %7977 = vmatprep.subr.mxu1 %v9097_v39 }
  0x2f   : > { %7909 = vmatmul.mubr.msk.f32.gmra.mrb[14].mxu1 %vm342_vm0, %v7309_v30 }
  0x30   : > { %7943 = vmatprep.mubr.msk.f32.mxu1 %vm342_vm0, %v7336_v31 }
  0x33   : > { %7944 = vmatmul.mubr.msk.f32.vlgmr.msra.gmra.mrb[16].mxu1 %vm342_vm0, %v7337_v32 }
  0x34   : > { %7946 = vmatprep.mubr.msk.f32.mxu1 %vm342_vm0, %v7338_v33  ;;  %7978 = vmatpush3.msra.mxu1 %v9320_v40 }
  0x35   : > { %7988 = vmatprep.subr.mxu1 %v9097_v39 }
  0x37   : > { %7947 = vmatmul.mubr.msk.f32.gmra.mrb[18].mxu1 %vm342_vm0, %v7339_v34 }
  0x38   : > { %7949 = vmatprep.mubr.msk.f32.mxu1 %vm342_vm0, %v7340_v35 }
  0x3b   : > { %7950 = vmatmul.mubr.msk.f32.gmra.mrb[20].mxu1 %vm342_vm0, %v7341_v36 }
  0x3c   : > { %7952 = vmatprep.mubr.msk.f32.mxu1 %vm342_vm0, %v7342_v37 }
  0x3f   : > { %7953 = vmatmul.mubr.msk.f32.gmra.mrb[22].mxu1 %vm342_vm0, %v7343_v38 }
  0x40   : > { %7979 = vmatprep.mubr.msk.f32.mxu1 %vm9098_vm3, %v9097_v39 }
  0xe6   : > { %v7879_v41 = vpop.f32.mrb[0].mxu1 }
  0xe7   : > { %v437_v42 = vpop.f32.mrb[1].mxu1 }
  0xe8   : > { %v7923_v43 = vpop.f32.mrb[0].mxu0 }
  0xe9   : > { %v721_v44 = vpop.f32.mrb[1].mxu0 }
  0xea   : > { %v7882_v45 = vpop.f32.mrb[2].mxu1 }
  0xeb   : > { %v447_v46 = vpop.f32.mrb[3].mxu1 }
  0xec   : > { %v7926_v47 = vpop.f32.mrb[2].mxu0 }
  0xed   : > { %v731_v48 = vpop.f32.mrb[3].mxu0 }
  0xee   : > { %v7885_v49 = vpop.f32.mrb[4].mxu1 }
  0xef   : > { %v457_v50 = vpop.f32.mrb[5].mxu1 }
  0xf0   : > { %v7929_v51 = vpop.f32.mrb[4].mxu0 }
  0xf1   : > { %v741_v52 = vpop.f32.mrb[5].mxu0 }
  0xf2   : > { %v7888_v53 = vpop.f32.mrb[6].mxu1 }
  0xf3   : > { %v467_v54 = vpop.f32.mrb[7].mxu1 }
  0xf4   : > { %v7932_v55 = vpop.f32.mrb[6].mxu0 }
  0xf5   : > { %v751_v56 = vpop.f32.mrb[7].mxu0 }
  0xf6   : > { %v7901_v57 = vpop.f32.mrb[8].mxu1 }
  0xf7   : > { %v615_v58 = vmax.f32 %v7879_v41, %v7901_v57  ;;  %v575_v59 = vpop.f32.mrb[9].mxu1 }
  0xf8   : > { %v614_v60 = vmax.f32 %v437_v42, %v575_v59 }
  0xf9   : > { %v761_v61 = vmax.f32 %v615_v58, %v7923_v43 }
  0xfa   : > { %v760_v62 = vmax.f32 %v614_v60, %v721_v44  ;;  %v7904_v63 = vpop.f32.mrb[10].mxu1  ;;  %v9351_v60 = vld [vmem:[%s10204_s3] sm:$0xff] }
  0xfb   : > { %v617_v0 = vmax.f32 %v7882_v45, %v7904_v63  ;;  %v585_v1 = vpop.f32.mrb[11].mxu1 }
  0xfc   : > { %v616_v2 = vmax.f32 %v447_v46, %v585_v1 }
  0xfd   : > { %v763_v3 = vmax.f32 %v617_v0, %v7926_v47 }
  0xfe   : > { %v762_v4 = vmax.f32 %v616_v2, %v731_v48  ;;  %v7907_v5 = vpop.f32.mrb[12].mxu1 }
  0xff   : > { %v619_v6 = vmax.f32 %v7885_v49, %v7907_v5  ;;  %v595_v7 = vpop.f32.mrb[13].mxu1 }
 0x100   : > { %v618_v8 = vmax.f32 %v457_v50, %v595_v7 }
 0x101   : > { %v765_v9 = vmax.f32 %v619_v6, %v7929_v51 }
 0x102   : > { %v764_v10 = vmax.f32 %v618_v8, %v741_v52  ;;  %v7910_v11 = vpop.f32.mrb[14].mxu1 }
 0x103   : > { %v621_v12 = vmax.f32 %v7888_v53, %v7910_v11  ;;  %v605_v13 = vpop.f32.mrb[15].mxu1 }
 0x104   : > { %v620_v14 = vmax.f32 %v467_v54, %v605_v13 }
 0x105   : > { %v767_v15 = vmax.f32 %v621_v12, %v7932_v55 }
 0x106   : > { %v766_v16 = vmax.f32 %v620_v14, %v751_v56  ;;  %v7945_v17 = vpop.f32.mrb[16].mxu1 }
 0x107   : > { %v907_v19 = vmax.f32 %v761_v61, %v7945_v17  ;;  %v867_v20 = vpop.f32.mrb[17].mxu1 }
 0x108   : > { %v906_v21 = vmax.f32 %v760_v62, %v867_v20 }
 0x109   : > { %v922_v22 = vadd.f32 %v7353_v18, %v907_v19  ;;  %v7379_v19 = vld [vmem:[%s10204_s3 + $0x10] sm:$0xff] }
 0x10a   : > { %v921_v23 = vadd.f32 %v7353_v18, %v906_v21  ;;  %v7948_v24 = vpop.f32.mrb[18].mxu1 }
 0x10b   : > { %v930_v25 = vmax.f32 %v922_v22, 0.0  ;;  %v909_v26 = vmax.f32 %v763_v3, %v7948_v24  ;;  %v877_v27 = vpop.f32.mrb[19].mxu1 }
 0x10c   : > { %v929_v28 = vmax.f32 %v921_v23, 0.0  ;;  %v908_v29 = vmax.f32 %v762_v4, %v877_v27 }
 0x10d   : > { %939 = vst.msk [vmem:[#allocation2 + $0x8] sm:$0xff] %vm937_vm2, %v930_v25  ;;  %v924_v30 = vadd.f32 %v7353_v18, %v909_v26  ;;  %v7392_v26 = vld [vmem:[%s10204_s3 + $0x18] sm:$0xff] }
 0x10e   : > { %938 = vst.msk [vmem:[#allocation2] sm:$0xff] %vm937_vm2, %v929_v28  ;;  %v923_v31 = vadd.f32 %v7353_v18, %v908_v29  ;;  %v7951_v32 = vpop.f32.mrb[20].mxu1 }
 0x10f   : > { %v932_v33 = vmax.f32 %v924_v30, 0.0  ;;  %v911_v34 = vmax.f32 %v765_v9, %v7951_v32  ;;  %v887_v35 = vpop.f32.mrb[21].mxu1  ;;  %v7405_v30 = vld [vmem:[%s10204_s3 + $0x20] sm:$0xff] }
 0x110   : > { %v931_v36 = vmax.f32 %v923_v31, 0.0  ;;  %v910_v37 = vmax.f32 %v764_v10, %v887_v35 }
 0x111   : > { %941 = vst.msk [vmem:[#allocation2 + $0x18] sm:$0xff] %vm937_vm2, %v932_v33  ;;  %v926_v38 = vadd.f32 %v7353_v18, %v911_v34 }
 0x112   : > { %940 = vst.msk [vmem:[#allocation2 + $0x10] sm:$0xff] %vm937_vm2, %v931_v36  ;;  %v925_v41 = vadd.f32 %v7353_v18, %v910_v37  ;;  %v7954_v42 = vpop.f32.mrb[22].mxu1  ;;  %v7418_v37 = vld [vmem:[%s10204_s3 + $0x28] sm:$0xff] }
 0x113   : > { %v934_v43 = vmax.f32 %v926_v38, 0.0  ;;  %v913_v44 = vmax.f32 %v767_v15, %v7954_v42  ;;  %v897_v45 = vpop.f32.mrb[23].mxu1 }
 0x114   : > { %v963_v46 = vld [vmem:[#allocation2 + $0x9] ss:$2 sm:$0xf]  ;;  %v976_v47 = vld [vmem:[#allocation2 + $0x8] ss:$2 sm:$0xf]  ;;  %v912_v48 = vmax.f32 %v766_v16, %v897_v45 }
 0x115   : > { %v989_v49 = vld [vmem:[#allocation2 + $0x1] ss:$2 sm:$0xf]  ;;  %v1001_v50 = vld [vmem:[#allocation2] ss:$2 sm:$0xf]  ;;  %v928_v51 = vadd.f32 %v7353_v18, %v913_v44 }
 0x116   : > { %965 = vst.msk [vmem:[#allocation3 + $0x6] sm:$0xf] %vm964_vm4, %v963_v46  ;;  %978 = vst.msk [vmem:[#allocation3 + $0x25] sm:$0xf] %vm964_vm4, %v976_v47  ;;  %v933_v52 = vmax.f32 %v925_v41, 0.0  ;;  %v927_v53 = vadd.f32 %v7353_v18, %v912_v48  ;;  %v7444_v47 = vld [vmem:[%s10204_s3 + $0x38] sm:$0xff] }
 0x117   : > { %943 = vst.msk [vmem:[#allocation2 + $0x28] sm:$0xff] %vm937_vm2, %v934_v43  ;;  %v936_v54 = vmax.f32 %v928_v51, 0.0  ;;  %v7431_v43 = vld [vmem:[%s10204_s3 + $0x30] sm:$0xff] }
 0x118   : > { %991 = vst.msk [vmem:[#allocation3 + $0x41] sm:$0xf] %vm964_vm4, %v989_v49  ;;  %1003 = vst.msk [vmem:[#allocation3 + $0x60] sm:$0xf] %vm964_vm4, %v1001_v50  ;;  %v935_v59 = vmax.f32 %v927_v53, 0.0  ;;  %v3401_v53 = vld [vmem:[#allocation3 + $0x75] sm:$0xff] }
 0x119   : > { %v967_v55 = vld [vmem:[#allocation2 + $0x19] ss:$2 sm:$0xf]  ;;  %v980_v56 = vld [vmem:[#allocation2 + $0x18] ss:$2 sm:$0xf] }
 0x11a   : > { %942 = vst.msk [vmem:[#allocation2 + $0x20] sm:$0xff] %vm937_vm2, %v933_v52  ;;  %v993_v57 = vld [vmem:[#allocation2 + $0x11] ss:$2 sm:$0xf]  ;;  %945 = vst.msk [vmem:[#allocation2 + $0x38] sm:$0xff] %vm937_vm2, %v936_v54  ;;  %v7457_v54 = vld [vmem:[%s10204_s3 + $0x40] sm:$0xff] }
 0x11b   : > { %968 = vst.msk [vmem:[#allocation3 + $0xb] sm:$0xf] %vm964_vm4, %v967_v55  ;;  %981 = vst.msk [vmem:[#allocation3 + $0x2a] sm:$0xf] %vm964_vm4, %v980_v56  ;;  %v3306_v52 = vld [vmem:[#allocation3 + $0x55] sm:$0xff] }
 0x11c   : > { %v1005_v58 = vld [vmem:[#allocation2 + $0x10] ss:$2 sm:$0xf]  ;;  %994 = vst.msk [vmem:[#allocation3 + $0x46] sm:$0xf] %vm964_vm4, %v993_v57 }
 0x11d   : > { %1006 = vst.msk [vmem:[#allocation3 + $0x65] sm:$0xf] %vm964_vm4, %v1005_v58  ;;  %v1017_v63 = vld [vmem:[#allocation3 + $0x20] sm:$0xff]  ;;  %v3747_v57 = vld [vmem:[#allocation3 + $0x56] sm:$0xff] }
 0x11e   : > { %v970_v61 = vld [vmem:[#allocation2 + $0x29] ss:$2 sm:$0xf]  ;;  %v983_v62 = vld [vmem:[#allocation2 + $0x28] ss:$2 sm:$0xf]  ;;  %7958 = vmatmul.mubr.msk.f32.vlgmr.msra.gmra.mrb[8].mxu0 %vm937_vm2, %v1017_v63 }
 0x11f   : > { %944 = vst.msk [vmem:[#allocation2 + $0x30] sm:$0xff] %vm937_vm2, %v935_v59  ;;  %v9356_v0 = vld [vmem:[#allocation3 + $0x1] sm:$0xff]  ;;  %7967 = vmatpush3.msra.mxu0 %v9351_v60  ;;  %7960 = vmatprep.mubr.msk.f32.mxu0 %vm9098_vm3, %v9097_v39 }
 0x120   : > { %971 = vst.msk [vmem:[#allocation3 + $0x10] sm:$0xf] %vm964_vm4, %v970_v61  ;;  %984 = vst.msk [vmem:[#allocation3 + $0x2f] sm:$0xf] %vm964_vm4, %v983_v62  ;;  %7980 = vmatmul.mubr.msk.f32.vlgmr.msra.gmra.mrb[24].mxu1 %vm937_vm2, %v9356_v0  ;;  %7999 = vmatprep.subr.mxu0 %v9097_v39  ;;  %v1014_v11 = vld [vmem:[#allocation3] sm:$0xff]  ;;  %v7471_v61 = vld [vmem:[%s10206_s5 + $0x10] sm:$0xff] }
 0x121   : > { %v996_v1 = vld [vmem:[#allocation2 + $0x21] ss:$2 sm:$0xf]  ;;  %v1008_v2 = vld [vmem:[#allocation2 + $0x20] ss:$2 sm:$0xf]  ;;  %7989 = vmatpush3.msra.mxu1 %v9351_v60  ;;  %7982 = vmatprep.mubr.msk.f32.mxu1 %vm9098_vm3, %v9097_v39 }
 0x122   : > { %997 = vst.msk [vmem:[#allocation3 + $0x4b] sm:$0xf] %vm964_vm4, %v996_v1  ;;  %1009 = vst.msk [vmem:[#allocation3 + $0x6a] sm:$0xf] %vm964_vm4, %v1008_v2  ;;  %8021 = vmatprep.subr.mxu1 %v9097_v39  ;;  %v1015_v12 = vld [vmem:[#allocation3 + $0x8] sm:$0xff]  ;;  %v7472_v62 = vld [vmem:[%s10206_s5 + $0x18] sm:$0xff] }
 0x123   : > { %v973_v3 = vld [vmem:[#allocation2 + $0x39] ss:$2 sm:$0xf]  ;;  %v986_v4 = vld [vmem:[#allocation2 + $0x38] ss:$2 sm:$0xf] }
 0x124   : > { %974 = vst.msk [vmem:[#allocation3 + $0x15] sm:$0xf] %vm964_vm4, %v973_v3  ;;  %987 = vst.msk [vmem:[#allocation3 + $0x34] sm:$0xf] %vm964_vm4, %v986_v4  ;;  %v9415_v13 = vld [vmem:[#allocation3 + $0x60] sm:$0xff] }
 0x125   : > { %v9417_v14 = vld [vmem:[#allocation3 + $0x41] sm:$0xff] }
 0x126   : > { %v999_v5 = vld [vmem:[#allocation2 + $0x31] ss:$2 sm:$0xf]  ;;  %v1011_v6 = vld [vmem:[#allocation2 + $0x30] ss:$2 sm:$0xf] }
 0x127   : > { %1000 = vst.msk [vmem:[#allocation3 + $0x50] sm:$0xf] %vm964_vm4, %v999_v5  ;;  %1012 = vst.msk [vmem:[#allocation3 + $0x6f] sm:$0xf] %vm964_vm4, %v1011_v6  ;;  %v1018_v7 = vld [vmem:[#allocation3 + $0x28] sm:$0xff]  ;;  %v1020_v20 = vld [vmem:[#allocation3 + $0x40] sm:$0xff] }
 0x128   : > { %v9375_v8 = vld [vmem:[#allocation3 + $0x9] sm:$0xff]  ;;  %7961 = vmatmul.mubr.msk.f32.gmra.mrb[10].mxu0 %vm937_vm2, %v1018_v7  ;;  %v1813_v23 = vld [vmem:[#allocation3 + $0x21] sm:$0xff] }
 0x129   : > { %7983 = vmatmul.mubr.msk.f32.gmra.mrb[26].mxu1 %vm937_vm2, %v9375_v8  ;;  %7963 = vmatprep.mubr.msk.f32.mxu0 %vm9098_vm3, %v9097_v39  ;;  %v1021_v21 = vld [vmem:[#allocation3 + $0x48] sm:$0xff] }
 0x12a   : > { %7985 = vmatprep.mubr.msk.f32.mxu1 %vm9098_vm3, %v9097_v39  ;;  %v1814_v24 = vld [vmem:[#allocation3 + $0x29] sm:$0xff]  ;;  %v9507_v27 = vld [vmem:[#allocation3 + $0x61] sm:$0xff] }
 0x12b   : > { %v1019_v9 = vld [vmem:[#allocation3 + $0x30] sm:$0xff]  ;;  %v9565_v31 = vld [vmem:[#allocation3 + $0x5] sm:$0xff] }
 0x12c   : > { %v9384_v10 = vld [vmem:[#allocation3 + $0x11] sm:$0xff]  ;;  %7964 = vmatmul.mubr.msk.f32.gmra.mrb[12].mxu0 %vm937_vm2, %v1019_v9  ;;  %v9567_v32 = vld [vmem:[#allocation3 + $0x25] sm:$0xff] }
 0x12d   : > { %7986 = vmatmul.mubr.msk.f32.gmra.mrb[28].mxu1 %vm937_vm2, %v9384_v10  ;;  %7968 = vmatprep.mubr.msk.f32.mxu0 %vm9098_vm3, %v9097_v39  ;;  %v1815_v25 = vld [vmem:[#allocation3 + $0x31] sm:$0xff]  ;;  %v9632_v38 = vld [vmem:[#allocation3 + $0x6] sm:$0xff] }
 0x12e   : > { %7990 = vmatprep.mubr.msk.f32.mxu1 %vm9098_vm3, %v9097_v39  ;;  %v9429_v15 = vld [vmem:[#allocation3 + $0x68] sm:$0xff]  ;;  %v9443_v17 = vld [vmem:[#allocation3 + $0x70] sm:$0xff] }
 0x12f   : > { %v9431_v16 = vld [vmem:[#allocation3 + $0x49] sm:$0xff]  ;;  %v9445_v18 = vld [vmem:[#allocation3 + $0x51] sm:$0xff] }
 0x130   : > { %7969 = vmatmul.mubr.msk.f32.vlgmr.msra.gmra.mrb[8].mxu0 %vm937_vm2, %v1014_v11  ;;  %v1022_v22 = vld [vmem:[#allocation3 + $0x50] sm:$0xff]  ;;  %v9693_v44 = vld [vmem:[#allocation3 + $0x26] sm:$0xff] }
 0x131   : > { %7991 = vmatmul.mubr.msk.f32.vlgmr.msra.gmra.mrb[24].mxu1 %vm937_vm2, %v1017_v63  ;;  %8000 = vmatpush3.msra.mxu0 %v9320_v40  ;;  %v9517_v28 = vld [vmem:[#allocation3 + $0x69] sm:$0xff]  ;;  %v9529_v29 = vld [vmem:[#allocation3 + $0x71] sm:$0xff]  ;;  %v9099_v63 = vmov 0.0|0.0  }
 0x132   : > { %8022 = vmatpush3.msra.mxu1 %v9320_v40  ;;  %7971 = vmatprep.mubr.msk.f32.mxu0 %vm9098_vm3, %v9097_v39  ;;  %v1016_v40 = vld [vmem:[#allocation3 + $0x10] sm:$0xff]  ;;  %v3304_v48 = vld [vmem:[#allocation3 + $0x45] sm:$0xff] }
 0x133   : > { %7993 = vmatprep.mubr.msk.f32.mxu1 %vm9098_vm3, %v9097_v39  ;;  %8010 = vmatprep.subr.mxu0 %v9097_v39  ;;  %v9577_v33 = vld [vmem:[#allocation3 + $0xd] sm:$0xff]  ;;  %v9591_v35 = vld [vmem:[#allocation3 + $0x15] sm:$0xff]  ;;  %v3399_v49 = vld [vmem:[#allocation3 + $0x65] sm:$0xff] }
 0x134   : > { %8032 = vmatprep.subr.mxu1 %v9097_v39  ;;  %7972 = vmatmul.mubr.msk.f32.gmra.mrb[10].mxu0 %vm937_vm2, %v1015_v12  ;;  %v9579_v34 = vld [vmem:[#allocation3 + $0x2d] sm:$0xff]  ;;  %v9593_v36 = vld [vmem:[#allocation3 + $0x35] sm:$0xff] }
 0x135   : > { %7994 = vmatmul.mubr.msk.f32.gmra.mrb[26].mxu1 %vm937_vm2, %v1018_v7  ;;  %7974 = vmatprep.mubr.msk.f32.mxu0 %vm9098_vm3, %v9097_v39  ;;  %v9642_v41 = vld [vmem:[#allocation3 + $0xe] sm:$0xff]  ;;  %v9654_v42 = vld [vmem:[#allocation3 + $0x16] sm:$0xff]  ;;  %v3745_v55 = vld [vmem:[#allocation3 + $0x46] sm:$0xff] }
 0x136   : > { %7996 = vmatprep.mubr.msk.f32.mxu1 %vm9098_vm3, %v9097_v39  ;;  %v9703_v45 = vld [vmem:[#allocation3 + $0x2e] sm:$0xff]  ;;  %v9715_v46 = vld [vmem:[#allocation3 + $0x36] sm:$0xff]  ;;  %v4091_v58 = vld [vmem:[#allocation3 + $0x66] sm:$0xff] }
 0x137   : > { %v3305_v50 = vld [vmem:[#allocation3 + $0x4d] sm:$0xff] }
 0x138   : > { %7975 = vmatmul.mubr.msk.f32.gmra.mrb[12].mxu0 %vm937_vm2, %v1016_v40  ;;  %v3400_v51 = vld [vmem:[#allocation3 + $0x6d] sm:$0xff] }
 0x139   : > { %7997 = vmatmul.mubr.msk.f32.gmra.mrb[28].mxu1 %vm937_vm2, %v1019_v9  ;;  %8001 = vmatprep.mubr.msk.f32.mxu0 %vm9098_vm3, %v9097_v39  ;;  %v3746_v56 = vld [vmem:[#allocation3 + $0x4e] sm:$0xff] }
 0x13a   : > { %8023 = vmatprep.mubr.msk.f32.mxu1 %vm9098_vm3, %v9097_v39  ;;  %v4092_v59 = vld [vmem:[#allocation3 + $0x6e] sm:$0xff] }
 0x13c   : > { %8002 = vmatmul.mubr.msk.f32.vlgmr.msra.gmra.mrb[14].mxu0 %vm937_vm2, %v9415_v13 }
 0x13d   : > { %8024 = vmatmul.mubr.msk.f32.vlgmr.msra.gmra.mrb[30].mxu1 %vm937_vm2, %v9417_v14  ;;  %8011 = vmatpush3.msra.mxu0 %v9351_v60 }
 0x13e   : > { %8033 = vmatpush3.msra.mxu1 %v9351_v60  ;;  %8004 = vmatprep.mubr.msk.f32.mxu0 %vm9098_vm3, %v9097_v39  ;;  %v4093_v60 = vld [vmem:[#allocation3 + $0x76] sm:$0xff] }
 0x13f   : > { %8026 = vmatprep.mubr.msk.f32.mxu1 %vm9098_vm3, %v9097_v39  ;;  %8043 = vmatprep.subr.mxu0 %v9097_v39 }
 0x140   : > { %8054 = vmatprep.subr.mxu1 %v9097_v39  ;;  %8005 = vmatmul.mubr.msk.f32.gmra.mrb[16].mxu0 %vm937_vm2, %v9429_v15 }
 0x141   : > { %8027 = vmatmul.mubr.msk.f32.gmra.mrb[32].mxu1 %vm937_vm2, %v9431_v16  ;;  %8007 = vmatprep.mubr.msk.f32.mxu0 %vm9098_vm3, %v9097_v39 }
 0x142   : > { %8029 = vmatprep.mubr.msk.f32.mxu1 %vm9098_vm3, %v9097_v39 }
 0x144   : > { %8008 = vmatmul.mubr.msk.f32.gmra.mrb[18].mxu0 %vm937_vm2, %v9443_v17 }
 0x145   : > { %8030 = vmatmul.mubr.msk.f32.gmra.mrb[34].mxu1 %vm937_vm2, %v9445_v18  ;;  %8012 = vmatprep.mubr.msk.f32.mxu0 %vm9098_vm3, %v9097_v39 }
 0x146   : > { %8034 = vmatprep.mubr.msk.f32.mxu1 %vm9098_vm3, %v9097_v39 }
 0x148   : > { %8013 = vmatmul.mubr.msk.f32.vlgmr.msra.gmra.mrb[14].mxu0 %vm937_vm2, %v1020_v20 }
 0x149   : > { %8035 = vmatmul.mubr.msk.f32.vlgmr.msra.gmra.mrb[30].mxu1 %vm937_vm2, %v9415_v13  ;;  %8044 = vmatpush3.msra.mxu0 %v7379_v19 }
 0x14a   : > { %8055 = vmatpush3.msra.mxu1 %v7379_v19  ;;  %8015 = vmatprep.mubr.msk.f32.mxu0 %vm9098_vm3, %v9097_v39 }
 0x14b   : > { %8037 = vmatprep.mubr.msk.f32.mxu1 %vm9098_vm3, %v9097_v39  ;;  %8065 = vmatprep.subr.mxu0 %v9097_v39 }
 0x14c   : > { %8076 = vmatprep.subr.mxu1 %v9097_v39  ;;  %8016 = vmatmul.mubr.msk.f32.gmra.mrb[16].mxu0 %vm937_vm2, %v1021_v21 }
 0x14d   : > { %8038 = vmatmul.mubr.msk.f32.gmra.mrb[32].mxu1 %vm937_vm2, %v9429_v15  ;;  %8018 = vmatprep.mubr.msk.f32.mxu0 %vm9098_vm3, %v9097_v39 }
 0x14e   : > { %8040 = vmatprep.mubr.msk.f32.mxu1 %vm9098_vm3, %v9097_v39 }
 0x150   : > { %8019 = vmatmul.mubr.msk.f32.gmra.mrb[18].mxu0 %vm937_vm2, %v1022_v22 }
 0x151   : > { %8041 = vmatmul.mubr.msk.f32.gmra.mrb[34].mxu1 %vm937_vm2, %v9443_v17  ;;  %8045 = vmatprep.mubr.msk.f32.mxu0 %vm9098_vm3, %v9097_v39 }
 0x152   : > { %8056 = vmatprep.mubr.msk.f32.mxu1 %vm9098_vm3, %v9097_v39 }
 0x154   : > { %8046 = vmatmul.mubr.msk.f32.vlgmr.msra.gmra.mrb[8].mxu0 %vm937_vm2, %v9356_v0  ;;  %v9889_v0 = vpack.c.bf16 %v7472_v62, %v7471_v61  ;;  %v7487_v62 = vld [vmem:[%s10206_s5 + $0x30] sm:$0xff] }
 0x155   : > { %8057 = vmatmul.mubr.msk.f32.vlgmr.msra.gmra.mrb[24].mxu1 %vm937_vm2, %v1813_v23  ;;  %8066 = vmatpush3.msra.mxu0 %v7379_v19 }
 0x156   : > { %8077 = vmatpush3.msra.mxu1 %v7379_v19  ;;  %8048 = vmatprep.mubr.msk.f32.mxu0 %vm9098_vm3, %v9097_v39 }
 0x157   : > { %8059 = vmatprep.mubr.msk.f32.mxu1 %vm9098_vm3, %v9097_v39  ;;  %8087 = vmatprep.subr.mxu0 %v9097_v39 }
 0x158   : > { %8098 = vmatprep.subr.mxu1 %v9097_v39  ;;  %8049 = vmatmul.mubr.msk.f32.gmra.mrb[10].mxu0 %vm937_vm2, %v9375_v8 }
 0x159   : > { %8060 = vmatmul.mubr.msk.f32.gmra.mrb[26].mxu1 %vm937_vm2, %v1814_v24  ;;  %8051 = vmatprep.mubr.msk.f32.mxu0 %vm9098_vm3, %v9097_v39 }
 0x15a   : > { %8062 = vmatprep.mubr.msk.f32.mxu1 %vm9098_vm3, %v9097_v39 }
 0x15c   : > { %8052 = vmatmul.mubr.msk.f32.gmra.mrb[12].mxu0 %vm937_vm2, %v9384_v10 }
 0x15d   : > { %8063 = vmatmul.mubr.msk.f32.gmra.mrb[28].mxu1 %vm937_vm2, %v1815_v25  ;;  %8067 = vmatprep.mubr.msk.f32.mxu0 %vm9098_vm3, %v9097_v39 }
 0x15e   : > { %8078 = vmatprep.mubr.msk.f32.mxu1 %vm9098_vm3, %v9097_v39 }
 0x160   : > { %8068 = vmatmul.mubr.msk.f32.vlgmr.msra.gmra.mrb[14].mxu0 %vm937_vm2, %v9417_v14 }
 0x161   : > { %8079 = vmatmul.mubr.msk.f32.vlgmr.msra.gmra.mrb[30].mxu1 %vm937_vm2, %v9507_v27  ;;  %8088 = vmatpush3.msra.mxu0 %v7392_v26 }
 0x162   : > { %8099 = vmatpush3.msra.mxu1 %v7392_v26  ;;  %8070 = vmatprep.mubr.msk.f32.mxu0 %vm9098_vm3, %v9097_v39 }
 0x163   : > { %8081 = vmatprep.mubr.msk.f32.mxu1 %vm9098_vm3, %v9097_v39  ;;  %8109 = vmatprep.subr.mxu0 %v9097_v39 }
 0x164   : > { %8120 = vmatprep.subr.mxu1 %v9097_v39  ;;  %8071 = vmatmul.mubr.msk.f32.gmra.mrb[16].mxu0 %vm937_vm2, %v9431_v16 }
 0x165   : > { %8082 = vmatmul.mubr.msk.f32.gmra.mrb[32].mxu1 %vm937_vm2, %v9517_v28  ;;  %8073 = vmatprep.mubr.msk.f32.mxu0 %vm9098_vm3, %v9097_v39 }
 0x166   : > { %8084 = vmatprep.mubr.msk.f32.mxu1 %vm9098_vm3, %v9097_v39 }
 0x168   : > { %8074 = vmatmul.mubr.msk.f32.gmra.mrb[18].mxu0 %vm937_vm2, %v9445_v18 }
 0x169   : > { %8085 = vmatmul.mubr.msk.f32.gmra.mrb[34].mxu1 %vm937_vm2, %v9529_v29  ;;  %8089 = vmatprep.mubr.msk.f32.mxu0 %vm9098_vm3, %v9097_v39 }
 0x16a   : > { %8100 = vmatprep.mubr.msk.f32.mxu1 %vm9098_vm3, %v9097_v39 }
 0x16c   : > { %8090 = vmatmul.mubr.msk.f32.vlgmr.msra.gmra.mrb[8].mxu0 %vm937_vm2, %v1020_v20  ;;  %v7470_v20 = vld [vmem:[%s10205_s4] ss:$0 sm:$0xff] }
 0x16d   : > { %8101 = vmatmul.mubr.msk.f32.vlgmr.msra.gmra.mrb[24].mxu1 %vm937_vm2, %v9415_v13  ;;  %8110 = vmatpush3.msra.mxu0 %v7392_v26 }
 0x16e   : > { %8121 = vmatpush3.msra.mxu1 %v7392_v26  ;;  %8092 = vmatprep.mubr.msk.f32.mxu0 %vm9098_vm3, %v9097_v39 }
 0x16f   : > { %8103 = vmatprep.mubr.msk.f32.mxu1 %vm9098_vm3, %v9097_v39  ;;  %8131 = vmatprep.subr.mxu0 %v9097_v39 }
 0x170   : > { %8142 = vmatprep.subr.mxu1 %v9097_v39  ;;  %8093 = vmatmul.mubr.msk.f32.gmra.mrb[10].mxu0 %vm937_vm2, %v1021_v21 }
 0x171   : > { %8104 = vmatmul.mubr.msk.f32.gmra.mrb[26].mxu1 %vm937_vm2, %v9429_v15  ;;  %8095 = vmatprep.mubr.msk.f32.mxu0 %vm9098_vm3, %v9097_v39 }
 0x172   : > { %8106 = vmatprep.mubr.msk.f32.mxu1 %vm9098_vm3, %v9097_v39 }
 0x174   : > { %8096 = vmatmul.mubr.msk.f32.gmra.mrb[12].mxu0 %vm937_vm2, %v1022_v22 }
 0x175   : > { %8107 = vmatmul.mubr.msk.f32.gmra.mrb[28].mxu1 %vm937_vm2, %v9443_v17  ;;  %8111 = vmatprep.mubr.msk.f32.mxu0 %vm9098_vm3, %v9097_v39 }
 0x176   : > { %8122 = vmatprep.mubr.msk.f32.mxu1 %vm9098_vm3, %v9097_v39 }
 0x178   : > { %8112 = vmatmul.mubr.msk.f32.vlgmr.msra.gmra.mrb[14].mxu0 %vm937_vm2, %v9565_v31 }
 0x179   : > { %8123 = vmatmul.mubr.msk.f32.vlgmr.msra.gmra.mrb[30].mxu1 %vm937_vm2, %v9567_v32  ;;  %8132 = vmatpush3.msra.mxu0 %v7405_v30 }
 0x17a   : > { %8143 = vmatpush3.msra.mxu1 %v7405_v30  ;;  %8114 = vmatprep.mubr.msk.f32.mxu0 %vm9098_vm3, %v9097_v39 }
 0x17b   : > { %8125 = vmatprep.mubr.msk.f32.mxu1 %vm9098_vm3, %v9097_v39  ;;  %8153 = vmatprep.subr.mxu0 %v9097_v39 }
 0x17c   : > { %8164 = vmatprep.subr.mxu1 %v9097_v39  ;;  %8115 = vmatmul.mubr.msk.f32.gmra.mrb[16].mxu0 %vm937_vm2, %v9577_v33 }
 0x17d   : > { %8126 = vmatmul.mubr.msk.f32.gmra.mrb[32].mxu1 %vm937_vm2, %v9579_v34  ;;  %8117 = vmatprep.mubr.msk.f32.mxu0 %vm9098_vm3, %v9097_v39 }
 0x17e   : > { %8128 = vmatprep.mubr.msk.f32.mxu1 %vm9098_vm3, %v9097_v39 }
 0x180   : > { %8118 = vmatmul.mubr.msk.f32.gmra.mrb[18].mxu0 %vm937_vm2, %v9591_v35 }
 0x181   : > { %8129 = vmatmul.mubr.msk.f32.gmra.mrb[34].mxu1 %vm937_vm2, %v9593_v36  ;;  %8133 = vmatprep.mubr.msk.f32.mxu0 %vm9098_vm3, %v9097_v39 }
 0x182   : > { %8144 = vmatprep.mubr.msk.f32.mxu1 %vm9098_vm3, %v9097_v39 }
 0x184   : > { %8134 = vmatmul.mubr.msk.f32.vlgmr.msra.gmra.mrb[8].mxu0 %vm937_vm2, %v9415_v13 }
 0x185   : > { %8145 = vmatmul.mubr.msk.f32.vlgmr.msra.gmra.mrb[24].mxu1 %vm937_vm2, %v9417_v14  ;;  %8154 = vmatpush3.msra.mxu0 %v7405_v30 }
 0x186   : > { %8165 = vmatpush3.msra.mxu1 %v7405_v30  ;;  %8136 = vmatprep.mubr.msk.f32.mxu0 %vm9098_vm3, %v9097_v39 }
 0x187   : > { %8147 = vmatprep.mubr.msk.f32.mxu1 %vm9098_vm3, %v9097_v39  ;;  %8175 = vmatprep.subr.mxu0 %v9097_v39 }
 0x188   : > { %8186 = vmatprep.subr.mxu1 %v9097_v39  ;;  %8137 = vmatmul.mubr.msk.f32.gmra.mrb[10].mxu0 %vm937_vm2, %v9429_v15 }
 0x189   : > { %8148 = vmatmul.mubr.msk.f32.gmra.mrb[26].mxu1 %vm937_vm2, %v9431_v16  ;;  %8139 = vmatprep.mubr.msk.f32.mxu0 %vm9098_vm3, %v9097_v39 }
 0x18a   : > { %8150 = vmatprep.mubr.msk.f32.mxu1 %vm9098_vm3, %v9097_v39 }
 0x18c   : > { %8140 = vmatmul.mubr.msk.f32.gmra.mrb[12].mxu0 %vm937_vm2, %v9443_v17 }
 0x18d   : > { %8151 = vmatmul.mubr.msk.f32.gmra.mrb[28].mxu1 %vm937_vm2, %v9445_v18  ;;  %8155 = vmatprep.mubr.msk.f32.mxu0 %vm9098_vm3, %v9097_v39 }
 0x18e   : > { %8166 = vmatprep.mubr.msk.f32.mxu1 %vm9098_vm3, %v9097_v39 }
 0x190   : > { %8156 = vmatmul.mubr.msk.f32.vlgmr.msra.gmra.mrb[14].mxu0 %vm937_vm2, %v9567_v32 }
 0x191   : > { %8167 = vmatmul.mubr.msk.f32.vlgmr.msra.gmra.mrb[30].mxu1 %vm937_vm2, %v9632_v38  ;;  %8176 = vmatpush3.msra.mxu0 %v7418_v37 }
 0x192   : > { %8187 = vmatpush3.msra.mxu1 %v7418_v37  ;;  %8158 = vmatprep.mubr.msk.f32.mxu0 %vm9098_vm3, %v9097_v39 }
 0x193   : > { %8169 = vmatprep.mubr.msk.f32.mxu1 %vm9098_vm3, %v9097_v39  ;;  %8197 = vmatprep.subr.mxu0 %v9097_v39 }
 0x194   : > { %8208 = vmatprep.subr.mxu1 %v9097_v39  ;;  %8159 = vmatmul.mubr.msk.f32.gmra.mrb[16].mxu0 %vm937_vm2, %v9579_v34 }
 0x195   : > { %8170 = vmatmul.mubr.msk.f32.gmra.mrb[32].mxu1 %vm937_vm2, %v9642_v41  ;;  %8161 = vmatprep.mubr.msk.f32.mxu0 %vm9098_vm3, %v9097_v39 }
 0x196   : > { %8172 = vmatprep.mubr.msk.f32.mxu1 %vm9098_vm3, %v9097_v39 }
 0x198   : > { %8162 = vmatmul.mubr.msk.f32.gmra.mrb[18].mxu0 %vm937_vm2, %v9593_v36 }
 0x199   : > { %8173 = vmatmul.mubr.msk.f32.gmra.mrb[34].mxu1 %vm937_vm2, %v9654_v42  ;;  %8177 = vmatprep.mubr.msk.f32.mxu0 %vm9098_vm3, %v9097_v39 }
 0x19a   : > { %8188 = vmatprep.mubr.msk.f32.mxu1 %vm9098_vm3, %v9097_v39 }
 0x19c   : > { %8178 = vmatmul.mubr.msk.f32.vlgmr.msra.gmra.mrb[8].mxu0 %vm937_vm2, %v9417_v14 }
 0x19d   : > { %8189 = vmatmul.mubr.msk.f32.vlgmr.msra.gmra.mrb[24].mxu1 %vm937_vm2, %v9507_v27  ;;  %8198 = vmatpush3.msra.mxu0 %v7418_v37 }
 0x19e   : > { %8209 = vmatpush3.msra.mxu1 %v7418_v37  ;;  %8180 = vmatprep.mubr.msk.f32.mxu0 %vm9098_vm3, %v9097_v39 }
 0x19f   : > { %8191 = vmatprep.mubr.msk.f32.mxu1 %vm9098_vm3, %v9097_v39  ;;  %8219 = vmatprep.subr.mxu0 %v9097_v39 }
 0x1a0   : > { %8230 = vmatprep.subr.mxu1 %v9097_v39  ;;  %8181 = vmatmul.mubr.msk.f32.gmra.mrb[10].mxu0 %vm937_vm2, %v9431_v16 }
 0x1a1   : > { %8192 = vmatmul.mubr.msk.f32.gmra.mrb[26].mxu1 %vm937_vm2, %v9517_v28  ;;  %8183 = vmatprep.mubr.msk.f32.mxu0 %vm9098_vm3, %v9097_v39 }
 0x1a2   : > { %8194 = vmatprep.mubr.msk.f32.mxu1 %vm9098_vm3, %v9097_v39 }
 0x1a4   : > { %8184 = vmatmul.mubr.msk.f32.gmra.mrb[12].mxu0 %vm937_vm2, %v9445_v18 }
 0x1a5   : > { %8195 = vmatmul.mubr.msk.f32.gmra.mrb[28].mxu1 %vm937_vm2, %v9529_v29  ;;  %8199 = vmatprep.mubr.msk.f32.mxu0 %vm9098_vm3, %v9097_v39 }
 0x1a6   : > { %8210 = vmatprep.mubr.msk.f32.mxu1 %vm9098_vm3, %v9097_v39 }
 0x1a8   : > { %8200 = vmatmul.mubr.msk.f32.vlgmr.msra.gmra.mrb[14].mxu0 %vm937_vm2, %v9632_v38 }
 0x1a9   : > { %8211 = vmatmul.mubr.msk.f32.vlgmr.msra.gmra.mrb[30].mxu1 %vm937_vm2, %v9693_v44  ;;  %8220 = vmatpush3.msra.mxu0 %v7431_v43 }
 0x1aa   : > { %8231 = vmatpush3.msra.mxu1 %v7431_v43  ;;  %8202 = vmatprep.mubr.msk.f32.mxu0 %vm9098_vm3, %v9097_v39 }
 0x1ab   : > { %8213 = vmatprep.mubr.msk.f32.mxu1 %vm9098_vm3, %v9097_v39  ;;  %8241 = vmatprep.subr.mxu0 %v9097_v39 }
 0x1ac   : > { %8252 = vmatprep.subr.mxu1 %v9097_v39  ;;  %8203 = vmatmul.mubr.msk.f32.gmra.mrb[16].mxu0 %vm937_vm2, %v9642_v41 }
 0x1ad   : > { %8214 = vmatmul.mubr.msk.f32.gmra.mrb[32].mxu1 %vm937_vm2, %v9703_v45  ;;  %8205 = vmatprep.mubr.msk.f32.mxu0 %vm9098_vm3, %v9097_v39 }
 0x1ae   : > { %8216 = vmatprep.mubr.msk.f32.mxu1 %vm9098_vm3, %v9097_v39 }
 0x1b0   : > { %8206 = vmatmul.mubr.msk.f32.gmra.mrb[18].mxu0 %vm937_vm2, %v9654_v42 }
 0x1b1   : > { %8217 = vmatmul.mubr.msk.f32.gmra.mrb[34].mxu1 %vm937_vm2, %v9715_v46  ;;  %8221 = vmatprep.mubr.msk.f32.mxu0 %vm9098_vm3, %v9097_v39 }
 0x1b2   : > { %8232 = vmatprep.mubr.msk.f32.mxu1 %vm9098_vm3, %v9097_v39 }
 0x1b4   : > { %8222 = vmatmul.mubr.msk.f32.vlgmr.msra.gmra.mrb[8].mxu0 %vm937_vm2, %v9565_v31 }
 0x1b5   : > { %8233 = vmatmul.mubr.msk.f32.vlgmr.msra.gmra.mrb[24].mxu1 %vm937_vm2, %v9567_v32  ;;  %8242 = vmatpush3.msra.mxu0 %v7431_v43 }
 0x1b6   : > { %8253 = vmatpush3.msra.mxu1 %v7431_v43  ;;  %8224 = vmatprep.mubr.msk.f32.mxu0 %vm9098_vm3, %v9097_v39 }
 0x1b7   : > { %8235 = vmatprep.mubr.msk.f32.mxu1 %vm9098_vm3, %v9097_v39  ;;  %8263 = vmatprep.subr.mxu0 %v9097_v39 }
 0x1b8   : > { %8274 = vmatprep.subr.mxu1 %v9097_v39  ;;  %8225 = vmatmul.mubr.msk.f32.gmra.mrb[10].mxu0 %vm937_vm2, %v9577_v33 }
 0x1b9   : > { %8236 = vmatmul.mubr.msk.f32.gmra.mrb[26].mxu1 %vm937_vm2, %v9579_v34  ;;  %8227 = vmatprep.mubr.msk.f32.mxu0 %vm9098_vm3, %v9097_v39 }
 0x1ba   : > { %8238 = vmatprep.mubr.msk.f32.mxu1 %vm9098_vm3, %v9097_v39 }
 0x1bc   : > { %8228 = vmatmul.mubr.msk.f32.gmra.mrb[12].mxu0 %vm937_vm2, %v9591_v35 }
 0x1bd   : > { %8239 = vmatmul.mubr.msk.f32.gmra.mrb[28].mxu1 %vm937_vm2, %v9593_v36  ;;  %8243 = vmatprep.mubr.msk.f32.mxu0 %vm9098_vm3, %v9097_v39 }
 0x1be   : > { %8254 = vmatprep.mubr.msk.f32.mxu1 %vm9098_vm3, %v9097_v39 }
 0x1c0   : > { %8244 = vmatmul.mubr.msk.f32.vlgmr.msra.gmra.mrb[14].mxu0 %vm937_vm2, %v3304_v48 }
 0x1c1   : > { %8255 = vmatmul.mubr.msk.f32.vlgmr.msra.gmra.mrb[30].mxu1 %vm937_vm2, %v3399_v49  ;;  %8264 = vmatpush3.msra.mxu0 %v7444_v47 }
 0x1c2   : > { %8275 = vmatpush3.msra.mxu1 %v7444_v47  ;;  %8246 = vmatprep.mubr.msk.f32.mxu0 %vm9098_vm3, %v9097_v39 }
 0x1c3   : > { %8257 = vmatprep.mubr.msk.f32.mxu1 %vm9098_vm3, %v9097_v39  ;;  %8285 = vmatprep.subr.mxu0 %v9097_v39 }
 0x1c4   : > { %8296 = vmatprep.subr.mxu1 %v9097_v39  ;;  %8247 = vmatmul.mubr.msk.f32.gmra.mrb[16].mxu0 %vm937_vm2, %v3305_v50  ;;  %v4247_v50 = vld [vmem:[%s10206_s5] sm:$0xff] }
 0x1c5   : > { %8258 = vmatmul.mubr.msk.f32.gmra.mrb[32].mxu1 %vm937_vm2, %v3400_v51  ;;  %8249 = vmatprep.mubr.msk.f32.mxu0 %vm9098_vm3, %v9097_v39 }
 0x1c6   : > { %8260 = vmatprep.mubr.msk.f32.mxu1 %vm9098_vm3, %v9097_v39 }
 0x1c8   : > { %8250 = vmatmul.mubr.msk.f32.gmra.mrb[18].mxu0 %vm937_vm2, %v3306_v52 }
 0x1c9   : > { %8261 = vmatmul.mubr.msk.f32.gmra.mrb[34].mxu1 %vm937_vm2, %v3401_v53  ;;  %8265 = vmatprep.mubr.msk.f32.mxu0 %vm9098_vm3, %v9097_v39 }
 0x1ca   : > { %8276 = vmatprep.mubr.msk.f32.mxu1 %vm9098_vm3, %v9097_v39 }
 0x1cc   : > { %8266 = vmatmul.mubr.msk.f32.vlgmr.msra.gmra.mrb[8].mxu0 %vm937_vm2, %v9567_v32 }
 0x1cd   : > { %8277 = vmatmul.mubr.msk.f32.vlgmr.msra.gmra.mrb[24].mxu1 %vm937_vm2, %v9632_v38  ;;  %8286 = vmatpush3.msra.mxu0 %v7444_v47 }
 0x1ce   : > { %8297 = vmatpush3.msra.mxu1 %v7444_v47  ;;  %8268 = vmatprep.mubr.msk.f32.mxu0 %vm9098_vm3, %v9097_v39 }
 0x1cf   : > { %8279 = vmatprep.mubr.msk.f32.mxu1 %vm9098_vm3, %v9097_v39  ;;  %8307 = vmatprep.subr.mxu0 %v9097_v39 }
 0x1d0   : > { %8318 = vmatprep.subr.mxu1 %v9097_v39  ;;  %8269 = vmatmul.mubr.msk.f32.gmra.mrb[10].mxu0 %vm937_vm2, %v9579_v34 }
 0x1d1   : > { %8280 = vmatmul.mubr.msk.f32.gmra.mrb[26].mxu1 %vm937_vm2, %v9642_v41  ;;  %8271 = vmatprep.mubr.msk.f32.mxu0 %vm9098_vm3, %v9097_v39 }
 0x1d2   : > { %8282 = vmatprep.mubr.msk.f32.mxu1 %vm9098_vm3, %v9097_v39 }
 0x1d4   : > { %8272 = vmatmul.mubr.msk.f32.gmra.mrb[12].mxu0 %vm937_vm2, %v9593_v36 }
 0x1d5   : > { %8283 = vmatmul.mubr.msk.f32.gmra.mrb[28].mxu1 %vm937_vm2, %v9654_v42  ;;  %8287 = vmatprep.mubr.msk.f32.mxu0 %vm9098_vm3, %v9097_v39 }
 0x1d6   : > { %8298 = vmatprep.mubr.msk.f32.mxu1 %vm9098_vm3, %v9097_v39 }
 0x1d8   : > { %8288 = vmatmul.mubr.msk.f32.vlgmr.msra.gmra.mrb[14].mxu0 %vm937_vm2, %v3399_v49 }
 0x1d9   : > { %8299 = vmatmul.mubr.msk.f32.vlgmr.msra.gmra.mrb[30].mxu1 %vm937_vm2, %v3745_v55  ;;  %8308 = vmatpush3.msra.mxu0 %v7457_v54 }
 0x1da   : > { %8319 = vmatpush3.msra.mxu1 %v7457_v54  ;;  %8290 = vmatprep.mubr.msk.f32.mxu0 %vm9098_vm3, %v9097_v39 }
 0x1db   : > { %8301 = vmatprep.mubr.msk.f32.mxu1 %vm9098_vm3, %v9097_v39  ;;  %8329 = vmatprep.subr.mxu0 %v9097_v39 }
 0x1dc   : > { %8340 = vmatprep.subr.mxu1 %v9097_v39  ;;  %8291 = vmatmul.mubr.msk.f32.gmra.mrb[16].mxu0 %vm937_vm2, %v3400_v51  ;;  %v4248_v51 = vld [vmem:[%s10206_s5 + $0x8] sm:$0xff] }
 0x1dd   : > { %8302 = vmatmul.mubr.msk.f32.gmra.mrb[32].mxu1 %vm937_vm2, %v3746_v56  ;;  %8293 = vmatprep.mubr.msk.f32.mxu0 %vm9098_vm3, %v9097_v39  ;;  %v8683_v52 = vpack.c.bf16 %v4248_v51, %v4247_v50  ;;  %v7527_v51 = vld [vmem:[%s10208_s7 + $0x30] sm:$0xff] }
 0x1de   : > { %8304 = vmatprep.mubr.msk.f32.mxu1 %vm9098_vm3, %v9097_v39 }
 0x1e0   : > { %8294 = vmatmul.mubr.msk.f32.gmra.mrb[18].mxu0 %vm937_vm2, %v3401_v53 }
 0x1e1   : > { %8305 = vmatmul.mubr.msk.f32.gmra.mrb[34].mxu1 %vm937_vm2, %v3747_v57  ;;  %8309 = vmatprep.mubr.msk.f32.mxu0 %vm9098_vm3, %v9097_v39 }
 0x1e2   : > { %8320 = vmatprep.mubr.msk.f32.mxu1 %vm9098_vm3, %v9097_v39 }
 0x1e4   : > { %8310 = vmatmul.mubr.msk.f32.vlgmr.msra.gmra.mrb[8].mxu0 %vm937_vm2, %v9632_v38 }
 0x1e5   : > { %8321 = vmatmul.mubr.msk.f32.vlgmr.msra.gmra.mrb[24].mxu1 %vm937_vm2, %v9693_v44  ;;  %8330 = vmatpush3.msra.mxu0 %v7457_v54 }
 0x1e6   : > { %8341 = vmatpush3.msra.mxu1 %v7457_v54  ;;  %8312 = vmatprep.mubr.msk.f32.mxu0 %vm9098_vm3, %v9097_v39 }
 0x1e7   : > { %8323 = vmatprep.mubr.msk.f32.mxu1 %vm9098_vm3, %v9097_v39  ;;  %8679 = vmatprep.subr.bf16.mxu0 %v9099_v63 }
 0x1e8   : > { %8313 = vmatmul.mubr.msk.f32.gmra.mrb[10].mxu0 %vm937_vm2, %v9642_v41  ;;  %8685 = vmatprep.subr.bf16.mxu1 %v9099_v63 }
 0x1e9   : > { %8324 = vmatmul.mubr.msk.f32.gmra.mrb[26].mxu1 %vm937_vm2, %v9703_v45  ;;  %8315 = vmatprep.mubr.msk.f32.mxu0 %vm9098_vm3, %v9097_v39 }
 0x1ea   : > { %8326 = vmatprep.mubr.msk.f32.mxu1 %vm9098_vm3, %v9097_v39 }
 0x1ec   : > { %8316 = vmatmul.mubr.msk.f32.gmra.mrb[12].mxu0 %vm937_vm2, %v9654_v42 }
 0x1ed   : > { %8327 = vmatmul.mubr.msk.f32.gmra.mrb[28].mxu1 %vm937_vm2, %v9715_v46  ;;  %8331 = vmatprep.mubr.msk.f32.mxu0 %vm9098_vm3, %v9097_v39 }
 0x1ee   : > { %8342 = vmatprep.mubr.msk.f32.mxu1 %vm9098_vm3, %v9097_v39 }
 0x1f0   : > { %8332 = vmatmul.mubr.msk.f32.vlgmr.msra.gmra.mrb[14].mxu0 %vm937_vm2, %v3745_v55 }
 0x1f1   : > { %8343 = vmatmul.mubr.msk.f32.vlgmr.msra.gmra.mrb[30].mxu1 %vm937_vm2, %v4091_v58  ;;  %8334 = vmatprep.mubr.msk.f32.mxu0 %vm9098_vm3, %v9097_v39  ;;  %v7481_v58 = vld [vmem:[%s10206_s5 + $0x20] sm:$0xff] }
 0x1f2   : > { %8345 = vmatprep.mubr.msk.f32.mxu1 %vm9098_vm3, %v9097_v39  ;;  %8681 = vmatpush3.bf16.msra.mxu0 %v9889_v0 }
 0x1f3   : > { %8687 = vmatpush3.bf16.msra.mxu1 %v9889_v0  ;;  %8682 = vmatprep.subr.bf16.mxu0 %v9099_v63 }
 0x1f4   : > { %8335 = vmatmul.mubr.msk.f32.gmra.mrb[16].mxu0 %vm937_vm2, %v3746_v56  ;;  %8688 = vmatprep.subr.bf16.mxu1 %v9099_v63 }
 0x1f5   : > { %8346 = vmatmul.mubr.msk.f32.gmra.mrb[32].mxu1 %vm937_vm2, %v4092_v59  ;;  %8337 = vmatprep.mubr.msk.f32.mxu0 %vm9098_vm3, %v9097_v39  ;;  %v7482_v59 = vld [vmem:[%s10206_s5 + $0x28] sm:$0xff] }
 0x1f6   : > { %8348 = vmatprep.mubr.msk.f32.mxu1 %vm9098_vm3, %v9097_v39 }
 0x1f8   : > { %8338 = vmatmul.mubr.msk.f32.gmra.mrb[18].mxu0 %vm937_vm2, %v3747_v57 }
 0x1f9   : > { %8349 = vmatmul.mubr.msk.f32.gmra.mrb[34].mxu1 %vm937_vm2, %v4093_v60  ;;  %8355 = vmatprep.mubr.msk.f32.mxu0 %vm9098_vm3, %v9097_v39  ;;  %v8704_v60 = vpack.c.bf16 %v7482_v59, %v7481_v58  ;;  %v7532_v58 = vld [vmem:[%s10208_s7 + $0x50] sm:$0xff]  ;;  %v7533_v59 = vld [vmem:[%s10208_s7 + $0x58] sm:$0xff] }
 0x1fa   : > { %8369 = vmatprep.mubr.msk.f32.mxu1 %vm9098_vm3, %v9097_v39 }
 0x2b7   : > { %v3908_v1 = vpop.f32.mrb[8].mxu0 }
 0x2b8   : > { %v3991_v2 = vpop.f32.mrb[24].mxu1  ;;  %v8311_v4 = vpop.f32.mrb[9].mxu0 }
 0x2b9   : > { %v4186_v3 = vmax.f32 %v3908_v1, %v3991_v2  ;;  %v8322_v5 = vpop.f32.mrb[25].mxu1  ;;  %v7493_v4 = vld [vmem:[%s10206_s5 + $0x40] sm:$0xff] }
 0x2ba   : > { %v7494_v5 = vld [vmem:[%s10206_s5 + $0x48] sm:$0xff] }
 0x2bb   : > { %v3913_v6 = vpop.f32.mrb[10].mxu0 }
 0x2bc   : > { %v3996_v7 = vpop.f32.mrb[26].mxu1  ;;  %v8314_v9 = vpop.f32.mrb[11].mxu0 }
 0x2bd   : > { %v4187_v8 = vmax.f32 %v3913_v6, %v3996_v7  ;;  %v8325_v10 = vpop.f32.mrb[27].mxu1  ;;  %v8728_v6 = vpack.c.bf16 %v7494_v5, %v7493_v4  ;;  %v7499_v9 = vld [vmem:[%s10206_s5 + $0x50] sm:$0xff] }
 0x2be   : > { %v7500_v10 = vld [vmem:[%s10206_s5 + $0x58] sm:$0xff] }
 0x2bf   : > { %v3918_v11 = vpop.f32.mrb[12].mxu0 }
 0x2c0   : > { %v4001_v12 = vpop.f32.mrb[28].mxu1  ;;  %v8317_v13 = vpop.f32.mrb[13].mxu0 }
 0x2c1   : > { %v4188_v40 = vmax.f32 %v3918_v11, %v4001_v12  ;;  %v8328_v14 = vpop.f32.mrb[29].mxu1  ;;  %v8740_v11 = vpack.c.bf16 %v7500_v10, %v7499_v9  ;;  %v7506_v13 = vld [vmem:[%s10206_s5 + $0x68] sm:$0xff] }
 0x2c3   : > { %v4074_v15 = vpop.f32.mrb[14].mxu0 }
 0x2c4   : > { %v4169_v16 = vpop.f32.mrb[30].mxu1  ;;  %v8333_v18 = vpop.f32.mrb[15].mxu0 }
 0x2c5   : > { %v4189_v17 = vmax.f32 %v4074_v15, %v4169_v16  ;;  %v8344_v19 = vpop.f32.mrb[31].mxu1  ;;  %v7511_v16 = vld [vmem:[%s10206_s5 + $0x70] sm:$0xff] }
 0x2c7   : > { %v4192_v21 = vmax.f32 %v4186_v3, %v4189_v17  ;;  %v4079_v22 = vpop.f32.mrb[16].mxu0  ;;  %v7512_v17 = vld [vmem:[%s10206_s5 + $0x78] sm:$0xff] }
 0x2c8   : > { %v4174_v23 = vpop.f32.mrb[32].mxu1  ;;  %v8336_v26 = vpop.f32.mrb[17].mxu0  ;;  %v8764_v18 = vpack.c.bf16 %v7512_v17, %v7511_v16 }
 0x2c9   : > { %v4202_v24 = vadd.f32 %v7470_v20, %v4192_v21  ;;  %v4190_v25 = vmax.f32 %v4079_v22, %v4174_v23  ;;  %v8347_v27 = vpop.f32.mrb[33].mxu1  ;;  %v7517_v21 = vld [vmem:[%s10206_s5 + $0x80] sm:$0xff]  ;;  %v7518_v22 = vld [vmem:[%s10206_s5 + $0x88] sm:$0xff] }
 0x2ca   : > { %v8776_v23 = vpack.c.bf16 %v7518_v22, %v7517_v21  ;;  %v6901_v26 = vld [vmem:[%s10208_s7] sm:$0xff]  ;;  %v6902_v27 = vld [vmem:[%s10208_s7 + $0x8] sm:$0xff] }
 0x2cb   : > { %v4205_v28 = vmax.f32 %v4202_v24, 0.0  ;;  %v4193_v29 = vmax.f32 %v4187_v8, %v4190_v25  ;;  %v4084_v30 = vpop.f32.mrb[18].mxu0 }
 0x2cc   : > { %v4179_v31 = vpop.f32.mrb[34].mxu1  ;;  %v8339_v34 = vpop.f32.mrb[19].mxu0 }
 0x2cd   : > { %4209 = vst.msk [vmem:[#allocation4] sm:$0xff] %vm4208_vm5, %v4205_v28  ;;  %v4203_v32 = vadd.f32 %v7470_v20, %v4193_v29  ;;  %v4191_v33 = vmax.f32 %v4084_v30, %v4179_v31  ;;  %v8350_v35 = vpop.f32.mrb[35].mxu1  ;;  %v6903_v28 = vld [vmem:[%s10208_s7 + $0x10] sm:$0xff]  ;;  %v8788_v29 = vpack.c.bf16 %v6902_v27, %v6901_v26  ;;  %v6904_v30 = vld [vmem:[%s10208_s7 + $0x18] sm:$0xff] }
 0x2ce   : > { %v8791_v31 = vpack.c.bf16 %v6904_v30, %v6903_v28 }
 0x2cf   : > { %v4206_v36 = vmax.f32 %v4203_v32, 0.0  ;;  %v4194_v37 = vmax.f32 %v4188_v40, %v4191_v33  ;;  %v7505_v40 = vld [vmem:[%s10206_s5 + $0x60] sm:$0xff] }
 0x2d0   : > { %v8752_v14 = vpack.c.bf16 %v7506_v13, %v7505_v40 }
 0x2d1   : > { %4210 = vst.msk [vmem:[#allocation4 + $0x8] sm:$0xff] %vm4208_vm5, %v4206_v36  ;;  %v4204_v38 = vadd.f32 %v7470_v20, %v4194_v37 }
 0x2d3   : > { %v4207_v41 = vmax.f32 %v4204_v38, 0.0 }
 0x2d4   : > { %v4228_v42 = vld [vmem:[#allocation4 + $0x5] ss:$2 sm:$0x3]  ;;  %v4235_v43 = vld [vmem:[#allocation4 + $0x1] ss:$2 sm:$0x3] }
 0x2d5   : > { %v4241_v44 = vld [vmem:[#allocation4] ss:$2 sm:$0x3]  ;;  %4211 = vst.msk [vmem:[#allocation4 + $0x10] sm:$0xff] %vm4208_vm5, %v4207_v41 }
 0x2d6   : > { %4230 = vst.msk [vmem:[#allocation5 + $0x13] sm:$0x3] %vm4222_vm6, %v4228_v42  ;;  %4237 = vst.msk [vmem:[#allocation5 + $0x21] sm:$0x3] %vm4222_vm6, %v4235_v43 }
 0x2d7   : > { %4243 = vst.msk [vmem:[#allocation5 + $0x30] sm:$0x3] %vm4222_vm6, %v4241_v44  ;;  %v7523_v44 = vld [vmem:[%s10207_s6] ss:$0 sm:$0xff] }
 0x2d8   : > { %v4221_v45 = vld [vmem:[#allocation4 + $0x6] ss:$2 sm:$0x3]  ;;  %v4239_v46 = vld [vmem:[#allocation4 + $0xb] ss:$2 sm:$0x3] }
 0x2d9   : > { %v4245_v47 = vld [vmem:[#allocation4 + $0xa] ss:$2 sm:$0x3]  ;;  %4223 = vst.msk [vmem:[#allocation5 + $0x4] sm:$0x3] %vm4222_vm6, %v4221_v45 }
 0x2da   : > { %4240 = vst.msk [vmem:[#allocation5 + $0x24] sm:$0x3] %vm4222_vm6, %v4239_v46  ;;  %4246 = vst.msk [vmem:[#allocation5 + $0x33] sm:$0x3] %vm4222_vm6, %v4245_v47 }
 0x2dc   : > { %v4225_v48 = vld [vmem:[#allocation4 + $0x10] ss:$2 sm:$0x3]  ;;  %v4232_v49 = vld [vmem:[#allocation4 + $0xf] ss:$2 sm:$0x3] }
 0x2dd   : > { %4233 = vst.msk [vmem:[#allocation5 + $0x16] sm:$0x3] %vm4222_vm6, %v4232_v49  ;;  %4226 = vst.msk [vmem:[#allocation5 + $0x7] sm:$0x3] %vm4222_vm6, %v4225_v48  ;;  %v7525_v48 = vld [vmem:[%s10208_s7 + $0x20] sm:$0xff]  ;;  %v7526_v49 = vld [vmem:[%s10208_s7 + $0x28] sm:$0xff] }
 0x2de   : > { %v8794_v50 = vpack.c.bf16 %v7526_v49, %v7525_v48 }
 0x2e1   : > { %v9931_v56 = vld [vmem:[#allocation5 + $0x30] sm:$0xff]  ;;  %v9934_v57 = vld [vmem:[#allocation5 + $0x21] sm:$0xff] }
 0x2e2   : > { %v4251_v61 = vld [vmem:[#allocation5 + $0x20] sm:$0xff]  ;;  %v5056_v3 = vld [vmem:[#allocation5 + $0x31] sm:$0xff] }
 0x2e3   : > { %v6153_v19 = vld [vmem:[#allocation5 + $0x23] sm:$0xff]  ;;  %v6228_v20 = vld [vmem:[#allocation5 + $0x33] sm:$0xff] }
 0x2e4   : > { %v4250_v53 = vld [vmem:[#allocation5 + $0x10] sm:$0xff]  ;;  %v4402_v54 = vld [vmem:[#allocation5 + $0x1] sm:$0xff] }
 0x2e5   : > { %8356 = vmatmul.mubr.msk.f32.vlgmr.msra.gmra.mrb[20].mxu0 %vm4208_vm5, %v4250_v53  ;;  %8370 = vmatmul.mubr.msk.f32.vlgmr.msra.gmra.mrb[36].mxu1 %vm4208_vm5, %v4402_v54  ;;  %v4249_v55 = vld [vmem:[#allocation5] sm:$0xff]  ;;  %v4910_v1 = vld [vmem:[#allocation5 + $0x11] sm:$0xff] }
 0x2e6   : > { %8684 = vmatpush3.bf16.msra.mxu0 %v8683_v52  ;;  %8690 = vmatpush3.bf16.msra.mxu1 %v8683_v52  ;;  %v5276_v7 = vld [vmem:[#allocation5 + $0x3] sm:$0xff]  ;;  %v9998_v8 = vld [vmem:[#allocation5 + $0x13] sm:$0xff] }
 0x2e7   : > { %8362 = vmatprep.mubr.msk.f32.mxu0 %vm9098_vm3, %v9097_v39  ;;  %8376 = vmatprep.mubr.msk.f32.mxu1 %vm9098_vm3, %v9097_v39  ;;  %v10025_v12 = vld [vmem:[#allocation5 + $0x4] sm:$0xff]  ;;  %v5933_v15 = vld [vmem:[#allocation5 + $0x14] sm:$0xff] }
 0x2e8   : > { %8691 = vmatprep.subr.bf16.mxu0 %v9099_v63  ;;  %8697 = vmatprep.subr.bf16.mxu1 %v9099_v63  ;;  %v6519_v24 = vld [vmem:[#allocation5 + $0x24] sm:$0xff]  ;;  %v6810_v25 = vld [vmem:[#allocation5 + $0x34] sm:$0xff] }
 0x2ed   : > { %8363 = vmatmul.mubr.msk.f32.vlgmr.msra.gmra.mrb[20].mxu0 %vm4208_vm5, %v4249_v55  ;;  %8377 = vmatmul.mubr.msk.f32.vlgmr.msra.gmra.mrb[36].mxu1 %vm4208_vm5, %v4250_v53  ;;  %v7530_v55 = vld [vmem:[%s10208_s7 + $0x40] sm:$0xff] }
 0x2ee   : > { %8693 = vmatpush3.bf16.msra.mxu0 %v9889_v0  ;;  %8699 = vmatpush3.bf16.msra.mxu1 %v9889_v0  ;;  %v7488_v0 = vld [vmem:[%s10206_s5 + $0x38] sm:$0xff] }
 0x2ef   : > { %8383 = vmatprep.mubr.msk.f32.mxu0 %vm9098_vm3, %v9097_v39  ;;  %8397 = vmatprep.mubr.msk.f32.mxu1 %vm9098_vm3, %v9097_v39  ;;  %v8716_v2 = vpack.c.bf16 %v7488_v0, %v7487_v62  ;;  %v7535_v62 = vld [vmem:[%s10208_s7 + $0x60] sm:$0xff]  ;;  %v7536_v0 = vld [vmem:[%s10208_s7 + $0x68] sm:$0xff] }
 0x2f0   : > { %8694 = vmatprep.subr.bf16.mxu0 %v9099_v63  ;;  %8700 = vmatprep.subr.bf16.mxu1 %v9099_v63 }
 0x2f1   : > { %8384 = vmatmul.mubr.msk.f32.vlgmr.msra.gmra.mrb[22].mxu0 %vm4208_vm5, %v9931_v56  ;;  %8398 = vmatmul.mubr.msk.f32.vlgmr.msra.gmra.mrb[38].mxu1 %vm4208_vm5, %v9934_v57 }
 0x2f2   : > { %8696 = vmatpush3.bf16.msra.mxu0 %v8683_v52  ;;  %8702 = vmatpush3.bf16.msra.mxu1 %v8683_v52  ;;  %v7528_v52 = vld [vmem:[%s10208_s7 + $0x38] sm:$0xff] }
 0x2f3   : > { %8390 = vmatprep.mubr.msk.f32.mxu0 %vm9098_vm3, %v9097_v39  ;;  %8404 = vmatprep.mubr.msk.f32.mxu1 %vm9098_vm3, %v9097_v39 }
 0x2f4   : > { %8703 = vmatprep.subr.bf16.mxu0 %v9099_v63  ;;  %8706 = vmatprep.subr.bf16.mxu1 %v9099_v63 }
 0x2f9   : > { %8391 = vmatmul.mubr.msk.f32.vlgmr.msra.gmra.mrb[22].mxu0 %vm4208_vm5, %v4251_v61  ;;  %8405 = vmatmul.mubr.msk.f32.vlgmr.msra.gmra.mrb[38].mxu1 %vm4208_vm5, %v9931_v56 }
 0x2fa   : > { %8705 = vmatpush3.bf16.msra.mxu0 %v8704_v60  ;;  %8708 = vmatpush3.bf16.msra.mxu1 %v8704_v60 }
 0x2fb   : > { %8411 = vmatprep.mubr.msk.f32.mxu0 %vm9098_vm3, %v9097_v39  ;;  %8418 = vmatprep.mubr.msk.f32.mxu1 %vm9098_vm3, %v9097_v39 }
 0x2fc   : > { %8709 = vmatprep.subr.bf16.mxu0 %v9099_v63  ;;  %8712 = vmatprep.subr.bf16.mxu1 %v9099_v63 }
 0x2fd   : > { %8412 = vmatmul.mubr.msk.f32.vlgmr.msra.gmra.mrb[20].mxu0 %vm4208_vm5, %v4402_v54  ;;  %8419 = vmatmul.mubr.msk.f32.vlgmr.msra.gmra.mrb[36].mxu1 %vm4208_vm5, %v4910_v1  ;;  %v8797_v54 = vpack.c.bf16 %v7528_v52, %v7527_v51  ;;  %v8806_v1 = vpack.c.bf16 %v7536_v0, %v7535_v62 }
 0x2fe   : > { %8711 = vmatpush3.bf16.msra.mxu0 %v8704_v60  ;;  %8714 = vmatpush3.bf16.msra.mxu1 %v8704_v60 }
 0x2ff   : > { %8425 = vmatprep.mubr.msk.f32.mxu0 %vm9098_vm3, %v9097_v39  ;;  %8432 = vmatprep.mubr.msk.f32.mxu1 %vm9098_vm3, %v9097_v39 }
 0x300   : > { %8715 = vmatprep.subr.bf16.mxu0 %v9099_v63  ;;  %8718 = vmatprep.subr.bf16.mxu1 %v9099_v63 }
 0x301   : > { %8426 = vmatmul.mubr.msk.f32.vlgmr.msra.gmra.mrb[22].mxu0 %vm4208_vm5, %v9934_v57  ;;  %8433 = vmatmul.mubr.msk.f32.vlgmr.msra.gmra.mrb[38].mxu1 %vm4208_vm5, %v5056_v3 }
 0x302   : > { %8717 = vmatpush3.bf16.msra.mxu0 %v8716_v2  ;;  %8720 = vmatpush3.bf16.msra.mxu1 %v8716_v2 }
 0x303   : > { %8439 = vmatprep.mubr.msk.f32.mxu0 %vm9098_vm3, %v9097_v39  ;;  %8446 = vmatprep.mubr.msk.f32.mxu1 %vm9098_vm3, %v9097_v39 }
 0x304   : > { %8721 = vmatprep.subr.bf16.mxu0 %v9099_v63  ;;  %8724 = vmatprep.subr.bf16.mxu1 %v9099_v63 }
 0x305   : > { %8440 = vmatmul.mubr.msk.f32.vlgmr.msra.gmra.mrb[20].mxu0 %vm4208_vm5, %v4251_v61  ;;  %8447 = vmatmul.mubr.msk.f32.vlgmr.msra.gmra.mrb[36].mxu1 %vm4208_vm5, %v9931_v56  ;;  %v8803_v61 = vpack.c.bf16 %v7533_v59, %v7532_v58 }
 0x306   : > { %8723 = vmatpush3.bf16.msra.mxu0 %v8716_v2  ;;  %8726 = vmatpush3.bf16.msra.mxu1 %v8716_v2  ;;  %v7537_v2 = vld [vmem:[%s10208_s7 + $0x70] sm:$0xff] }
 0x307   : > { %8453 = vmatprep.mubr.msk.f32.mxu0 %vm9098_vm3, %v9097_v39  ;;  %8460 = vmatprep.mubr.msk.f32.mxu1 %vm9098_vm3, %v9097_v39 }
 0x308   : > { %8727 = vmatprep.subr.bf16.mxu0 %v9099_v63  ;;  %8730 = vmatprep.subr.bf16.mxu1 %v9099_v63 }
 0x309   : > { %8454 = vmatmul.mubr.msk.f32.vlgmr.msra.gmra.mrb[22].mxu0 %vm4208_vm5, %v5276_v7  ;;  %8461 = vmatmul.mubr.msk.f32.vlgmr.msra.gmra.mrb[38].mxu1 %vm4208_vm5, %v9998_v8 }
 0x30a   : > { %8729 = vmatpush3.bf16.msra.mxu0 %v8728_v6  ;;  %8732 = vmatpush3.bf16.msra.mxu1 %v8728_v6 }
 0x30b   : > { %8467 = vmatprep.mubr.msk.f32.mxu0 %vm9098_vm3, %v9097_v39  ;;  %8474 = vmatprep.mubr.msk.f32.mxu1 %vm9098_vm3, %v9097_v39 }
 0x30c   : > { %8733 = vmatprep.subr.bf16.mxu0 %v9099_v63  ;;  %8736 = vmatprep.subr.bf16.mxu1 %v9099_v63 }
 0x30d   : > { %8468 = vmatmul.mubr.msk.f32.vlgmr.msra.gmra.mrb[20].mxu0 %vm4208_vm5, %v9931_v56  ;;  %8475 = vmatmul.mubr.msk.f32.vlgmr.msra.gmra.mrb[36].mxu1 %vm4208_vm5, %v9934_v57  ;;  %v7531_v56 = vld [vmem:[%s10208_s7 + $0x48] sm:$0xff] }
 0x30e   : > { %8735 = vmatpush3.bf16.msra.mxu0 %v8728_v6  ;;  %8738 = vmatpush3.bf16.msra.mxu1 %v8728_v6 }
 0x30f   : > { %8481 = vmatprep.mubr.msk.f32.mxu0 %vm9098_vm3, %v9097_v39  ;;  %8488 = vmatprep.mubr.msk.f32.mxu1 %vm9098_vm3, %v9097_v39 }
 0x310   : > { %8739 = vmatprep.subr.bf16.mxu0 %v9099_v63  ;;  %8742 = vmatprep.subr.bf16.mxu1 %v9099_v63 }
 0x311   : > { %8482 = vmatmul.mubr.msk.f32.vlgmr.msra.gmra.mrb[22].mxu0 %vm4208_vm5, %v9998_v8  ;;  %8489 = vmatmul.mubr.msk.f32.vlgmr.msra.gmra.mrb[38].mxu1 %vm4208_vm5, %v10025_v12 }
 0x312   : > { %8741 = vmatpush3.bf16.msra.mxu0 %v8740_v11  ;;  %8744 = vmatpush3.bf16.msra.mxu1 %v8740_v11 }
 0x313   : > { %8495 = vmatprep.mubr.msk.f32.mxu0 %vm9098_vm3, %v9097_v39  ;;  %8502 = vmatprep.mubr.msk.f32.mxu1 %vm9098_vm3, %v9097_v39 }
 0x314   : > { %8745 = vmatprep.subr.bf16.mxu0 %v9099_v63  ;;  %8748 = vmatprep.subr.bf16.mxu1 %v9099_v63 }
 0x315   : > { %8496 = vmatmul.mubr.msk.f32.vlgmr.msra.gmra.mrb[20].mxu0 %vm4208_vm5, %v9934_v57  ;;  %8503 = vmatmul.mubr.msk.f32.vlgmr.msra.gmra.mrb[36].mxu1 %vm4208_vm5, %v5056_v3  ;;  %v8800_v57 = vpack.c.bf16 %v7531_v56, %v7530_v55  ;;  %v7538_v3 = vld [vmem:[%s10208_s7 + $0x78] sm:$0xff] }
 0x316   : > { %8747 = vmatpush3.bf16.msra.mxu0 %v8740_v11  ;;  %8750 = vmatpush3.bf16.msra.mxu1 %v8740_v11  ;;  %v8809_v5 = vpack.c.bf16 %v7538_v3, %v7537_v2 }
 0x317   : > { %8509 = vmatprep.mubr.msk.f32.mxu0 %vm9098_vm3, %v9097_v39  ;;  %8516 = vmatprep.mubr.msk.f32.mxu1 %vm9098_vm3, %v9097_v39 }
 0x318   : > { %8751 = vmatprep.subr.bf16.mxu0 %v9099_v63  ;;  %8754 = vmatprep.subr.bf16.mxu1 %v9099_v63 }
 0x319   : > { %8510 = vmatmul.mubr.msk.f32.vlgmr.msra.gmra.mrb[22].mxu0 %vm4208_vm5, %v10025_v12  ;;  %8517 = vmatmul.mubr.msk.f32.vlgmr.msra.gmra.mrb[38].mxu1 %vm4208_vm5, %v5933_v15 }
 0x31a   : > { %8753 = vmatpush3.bf16.msra.mxu0 %v8752_v14  ;;  %8756 = vmatpush3.bf16.msra.mxu1 %v8752_v14 }
 0x31b   : > { %8523 = vmatprep.mubr.msk.f32.mxu0 %vm9098_vm3, %v9097_v39  ;;  %8530 = vmatprep.mubr.msk.f32.mxu1 %vm9098_vm3, %v9097_v39 }
 0x31c   : > { %8757 = vmatprep.subr.bf16.mxu0 %v9099_v63  ;;  %8760 = vmatprep.subr.bf16.mxu1 %v9099_v63 }
 0x31d   : > { %8524 = vmatmul.mubr.msk.f32.vlgmr.msra.gmra.mrb[20].mxu0 %vm4208_vm5, %v5276_v7  ;;  %8531 = vmatmul.mubr.msk.f32.vlgmr.msra.gmra.mrb[36].mxu1 %vm4208_vm5, %v9998_v8  ;;  %v6899_v7 = vld [vmem:[%s10209_s8] sm:$0x1] }
 0x31e   : > { %8759 = vmatpush3.bf16.msra.mxu0 %v8752_v14  ;;  %8762 = vmatpush3.bf16.msra.mxu1 %v8752_v14 }
 0x31f   : > { %8537 = vmatprep.mubr.msk.f32.mxu0 %vm9098_vm3, %v9097_v39  ;;  %8544 = vmatprep.mubr.msk.f32.mxu1 %vm9098_vm3, %v9097_v39 }
 0x320   : > { %8763 = vmatprep.subr.bf16.mxu0 %v9099_v63  ;;  %8766 = vmatprep.subr.bf16.mxu1 %v9099_v63 }
 0x321   : > { %8538 = vmatmul.mubr.msk.f32.vlgmr.msra.gmra.mrb[22].mxu0 %vm4208_vm5, %v6153_v19  ;;  %8545 = vmatmul.mubr.msk.f32.vlgmr.msra.gmra.mrb[38].mxu1 %vm4208_vm5, %v6228_v20 }
 0x322   : > { %8765 = vmatpush3.bf16.msra.mxu0 %v8764_v18  ;;  %8768 = vmatpush3.bf16.msra.mxu1 %v8764_v18 }
 0x323   : > { %8551 = vmatprep.mubr.msk.f32.mxu0 %vm9098_vm3, %v9097_v39  ;;  %8558 = vmatprep.mubr.msk.f32.mxu1 %vm9098_vm3, %v9097_v39 }
 0x324   : > { %8769 = vmatprep.subr.bf16.mxu0 %v9099_v63  ;;  %8772 = vmatprep.subr.bf16.mxu1 %v9099_v63 }
 0x325   : > { %8552 = vmatmul.mubr.msk.f32.vlgmr.msra.gmra.mrb[20].mxu0 %vm4208_vm5, %v9998_v8  ;;  %8559 = vmatmul.mubr.msk.f32.vlgmr.msra.gmra.mrb[36].mxu1 %vm4208_vm5, %v10025_v12 }
 0x326   : > { %8771 = vmatpush3.bf16.msra.mxu0 %v8764_v18  ;;  %8774 = vmatpush3.bf16.msra.mxu1 %v8764_v18 }
 0x327   : > { %8565 = vmatprep.mubr.msk.f32.mxu0 %vm9098_vm3, %v9097_v39  ;;  %8572 = vmatprep.mubr.msk.f32.mxu1 %vm9098_vm3, %v9097_v39 }
 0x328   : > { %8775 = vmatprep.subr.bf16.mxu0 %v9099_v63  ;;  %8778 = vmatprep.subr.bf16.mxu1 %v9099_v63 }
 0x329   : > { %8566 = vmatmul.mubr.msk.f32.vlgmr.msra.gmra.mrb[22].mxu0 %vm4208_vm5, %v6228_v20  ;;  %8573 = vmatmul.mubr.msk.f32.vlgmr.msra.gmra.mrb[38].mxu1 %vm4208_vm5, %v6519_v24 }
 0x32a   : > { %8777 = vmatpush3.bf16.msra.mxu0 %v8776_v23  ;;  %8780 = vmatpush3.bf16.msra.mxu1 %v8776_v23 }
 0x32b   : > { %8579 = vmatprep.mubr.msk.f32.mxu0 %vm9098_vm3, %v9097_v39  ;;  %8586 = vmatprep.mubr.msk.f32.mxu1 %vm9098_vm3, %v9097_v39 }
 0x32c   : > { %8781 = vmatprep.subr.bf16.mxu0 %v9099_v63  ;;  %8784 = vmatprep.subr.bf16.mxu1 %v9099_v63 }
 0x32d   : > { %8580 = vmatmul.mubr.msk.f32.vlgmr.msra.gmra.mrb[20].mxu0 %vm4208_vm5, %v10025_v12  ;;  %8587 = vmatmul.mubr.msk.f32.vlgmr.msra.gmra.mrb[36].mxu1 %vm4208_vm5, %v5933_v15 }
 0x32e   : > { %8783 = vmatpush3.bf16.msra.mxu0 %v8776_v23  ;;  %8786 = vmatpush3.bf16.msra.mxu1 %v8776_v23 }
 0x32f   : > { %8593 = vmatprep.mubr.msk.f32.mxu0 %vm9098_vm3, %v9097_v39  ;;  %8600 = vmatprep.mubr.msk.f32.mxu1 %vm9098_vm3, %v9097_v39 }
 0x330   : > { %8787 = vmatprep.subr.bf16.mxu0 %v9099_v63 }
 0x331   : > { %8594 = vmatmul.mubr.msk.f32.vlgmr.msra.gmra.mrb[22].mxu0 %vm4208_vm5, %v6519_v24  ;;  %8601 = vmatmul.mubr.msk.f32.vlgmr.msra.gmra.mrb[38].mxu1 %vm4208_vm5, %v6810_v25 }
 0x332   : > { %8611 = vmatprep.mubr.msk.f32.mxu0 %vm9098_vm3, %v9097_v39  ;;  %8789 = vmatpush3.bf16.msra.mxu0 %v8788_v29 }
 0x333   : > { %8790 = vmatprep.subr.bf16.mxu0 %v9099_v63 }
 0x336   : > { %8792 = vmatpush3.bf16.msra.mxu0 %v8791_v31 }
 0x337   : > { %8793 = vmatprep.subr.bf16.mxu0 %v9099_v63 }
 0x400   : > { %v6663_v32 = vpop.f32.mrb[20].mxu0  ;;  %v6734_v33 = vpop.f32.mrb[36].mxu1 }
 0x401   : > { %v6885_v34 = vmax.f32 %v6663_v32, %v6734_v33  ;;  %v8581_v35 = vpop.f32.mrb[21].mxu0  ;;  %v8588_v36 = vpop.f32.mrb[37].mxu1 }
 0x404   : > { %v6805_v37 = vpop.f32.mrb[22].mxu0  ;;  %v6880_v38 = vpop.f32.mrb[38].mxu1 }
 0x405   : > { %v6886_v41 = vmax.f32 %v6805_v37, %v6880_v38  ;;  %v8595_v42 = vpop.f32.mrb[23].mxu0  ;;  %v8602_v43 = vpop.f32.mrb[39].mxu1 }
 0x407   : > { %v6887_v45 = vmax.f32 %v6885_v34, %v6886_v41 }
 0x409   : > { %v6895_v46 = vadd.f32 %v7523_v44, %v6887_v45 }
 0x40b   : > { %v6896_v47 = vmax.f32 %v6895_v46, 0.0 }
 0x40d   : > { %6898 = vst.msk [vmem:[#allocation6] sm:$0xff] %vm6897_vm7, %v6896_v47 }
 0x414   : > { %v6900_v53 = vld [vmem:[#allocation6] sm:$0x1]  ;;  %v6979_v60 = vld [vmem:[#allocation6 + $0x1] sm:$0x1]  ;;  %v7059_v4 = vld [vmem:[#allocation6 + $0x3] sm:$0x1] }
 0x415   : > { %8612 = vmatmul.mubr.msk.f32.vlgmr.msra.gmra.mrb[24].mxu0 %vm6897_vm7, %v6900_v53  ;;  %v7139_v6 = vld [vmem:[#allocation6 + $0x4] sm:$0x1] }
 0x416   : > { %8795 = vmatpush3.bf16.msra.mxu0 %v8794_v50  ;;  %8622 = vmatprep.mubr.msk.f32.mxu0 %vm9098_vm3, %v9097_v39 }
 0x417   : > { %8796 = vmatprep.subr.bf16.mxu0 %v9099_v63 }
 0x41a   : > { %8798 = vmatpush3.bf16.msra.mxu0 %v8797_v54 }
 0x41b   : > { %8799 = vmatprep.subr.bf16.mxu0 %v9099_v63 }
 0x41d   : > { %8623 = vmatmul.mubr.msk.f32.vlgmr.msra.gmra.mrb[24].mxu0 %vm6897_vm7, %v6979_v60 }
 0x41e   : > { %8801 = vmatpush3.bf16.msra.mxu0 %v8800_v57  ;;  %8633 = vmatprep.mubr.msk.f32.mxu0 %vm9098_vm3, %v9097_v39 }
 0x41f   : > { %8802 = vmatprep.subr.bf16.mxu0 %v9099_v63 }
 0x422   : > { %8804 = vmatpush3.bf16.msra.mxu0 %v8803_v61 }
 0x423   : > { %8805 = vmatprep.subr.bf16.mxu0 %v9099_v63 }
 0x425   : > { %8634 = vmatmul.mubr.msk.f32.vlgmr.msra.gmra.mrb[24].mxu0 %vm6897_vm7, %v7059_v4 }
 0x426   : > { %8807 = vmatpush3.bf16.msra.mxu0 %v8806_v1  ;;  %8644 = vmatprep.mubr.msk.f32.mxu0 %vm9098_vm3, %v9097_v39 }
 0x427   : > { %8808 = vmatprep.subr.bf16.mxu0 %v9099_v63  ;;  %v7219_v63 = vlaneseq }
 0x429   : > { %v7220_v17 = vand.u32 127, %v7219_v63 }
 0x42a   : > { %8810 = vmatpush3.bf16.msra.mxu0 %v8809_v5 }
 0x42b   : > { %vm7236_vm10 = vcmp.lt.s32.totalorder %v7220_v17, 16 }
 0x42d   : > { %8645 = vmatmul.mubr.msk.f32.vlgmr.msra.gmra.mrb[24].mxu0 %vm6897_vm7, %v7139_v6 }
 0x500   : > { %v7214_v8 = vpop.f32.mrb[24].mxu0 }
 0x501   : > { %v8811_v9 = vadd.f32 %v7214_v8, %v6899_v7  ;;  %v8646_v10 = vpop.f32.mrb[25].mxu0 }
 0x503   : > { %v7222_v11 = vmin.f32 %v8811_v9, 20.0  ;;  %vm7221_vm9 = vcmp.gt.f32.partialorder %v8811_v9, 20.0 }
 0x505   : > { %v7223_v12 = vmul.f32 1.442695, %v7222_v11 }
 0x507   : > { %9085 = vpow2.f32 %v7223_v12 }
 0x511   : > { %v9086_v40 = vpop.eup %9085 }
 0x512   : > { %v7225_v13 = vadd.f32 1.0, %v9086_v40  ;;  %v7228_v39 = vmul.f32 -0.5, %v9086_v40  ;;  %v7231_v15 = vand.u32 2147483647, %v9086_v40 }
 0x514   : > { %9087 = vlog2.f32 %v7225_v13  ;;  %v7229_v14 = vadd.f32 1.0, %v7228_v39  ;;  %vm7232_vm8 = vcmp.lt.f32.partialorder %v7231_v15, 0.0004427343 }
 0x516   : > { %v7230_v19 = vmul.f32 %v9086_v40, %v7229_v14 }
 0x51e   : > { %v9088_v16 = vpop.eup %9087 }
 0x51f   : > { %v7227_v18 = vmul.f32 0.6931472, %v9088_v16 }
 0x521   : > { %v7233_v20 = vsel %vm7232_vm8, %v7230_v19, %v7227_v18 }
 0x522   : > { %v7234_v21 = vsel %vm7221_vm9, %v8811_v9, %v7233_v20 }
 0x523   : > { %v7235_v22 = vadd.f32 1e-08, %v7234_v21 }
 0x525   : > { %v7237_v23 = vsel %vm7236_vm10, %v8811_v9, %v7235_v22 }
 0x526   : > { %7238 = vst [vmem:[%s328_s26] sm:$0x1] %v7237_v23 }
 0x527 PF: > { %s19_s30 = sadd.s32 1, %s9095_s30  }
 0x528   : > { %p16_p4 = scmp.ge.s32.totalorder %s19_s30, 4  }
 0x52a   :  { %18 = sbr.rel (!%p16_p4) target bundleno = 1 (0x1), region = 136 }

</bundles_post_ra>
